<compile_context>
chip_gen: v5e
topology: v5e:2x2
jax: 0.10.0
libtpu: 0.0.40
codegen_flags: <defaults>
</compile_context>

<pallas_src>
import functools

import jax
import jax.numpy as jnp
from jax.experimental import pallas as pl
from jax.experimental.pallas import tpu as pltpu


def _expand_norm_kernel(x_ref, w_ref, red_ref, bcast_ref, g_ref, b_ref, o_ref,
                        *, eps):
    # x_ref:     (tm, dim)       bf16 token tile
    # w_ref:     (dim, 16*dim)   bf16 expand weight (x @ W form), grid-invariant
    # red_ref:   (16*dim, 16)    f32 block-diagonal group-mean reduce matrix (1/dim)
    # bcast_ref: (16, 16*dim)    f32 group -> channel broadcast matrix (0/1)
    # g_ref:     (1, 16*dim)     f32 LayerNorm gamma, pre-tiled over the 16 groups
    # b_ref:     (1, 16*dim)     f32 LayerNorm beta, pre-tiled over the 16 groups
    # o_ref:     (tm, 16*dim)    bf16 output tile
    y = jnp.dot(x_ref[...], w_ref[...], preferred_element_type=jnp.float32)

    red = red_ref[...]
    bcast = bcast_ref[...]

    # Grouped LayerNorm over contiguous `dim`-channel chunks, done full-width:
    # group means / variances come from tiny MXU matmuls instead of 16
    # lane-masked XLU reductions, every elementwise op is (tm, 16*dim) wide,
    # and the output is written with a single unmasked lane-dense store.
    mean_g = jnp.dot(y, red, preferred_element_type=jnp.float32)         # (tm, 16)
    mean_b = jnp.dot(mean_g, bcast, preferred_element_type=jnp.float32)  # (tm, 16*dim)
    d = y - mean_b
    var_g = jnp.dot(d * d, red, preferred_element_type=jnp.float32)      # (tm, 16)
    inv_g = jax.lax.rsqrt(var_g + eps)
    inv_b = jnp.dot(inv_g, bcast, preferred_element_type=jnp.float32)    # (tm, 16*dim)

    o_ref[...] = ((d * inv_b) * g_ref[...] + b_ref[...]).astype(o_ref.dtype)


def _pick_token_tile(n_tokens, dim, vmem_budget_bytes):
    """Largest bf16-friendly token tile whose working set fits the budget."""
    d16 = 16 * dim
    bytes_per_row = (
        2 * dim * 2        # input block (bf16), double-buffered
        + 2 * d16 * 2      # output block (bf16), double-buffered
        + 4 * d16 * 4      # ~4 live full-width f32 temporaries (y, d, mean_b, inv_b)
    )
    fixed = (
        2 * dim * d16 * 2              # weight (bf16), double-buffered
        + 2 * (d16 * 16 + 16 * d16) * 4  # reduce/broadcast matrices (f32), dbl-buf
        + 4 * d16 * 4                  # gamma/beta tiles (f32), dbl-buf
    )
    avail = max(vmem_budget_bytes - fixed, 0)
    tm = avail // bytes_per_row
    tm = min(tm, 1024)
    if n_tokens < tm:
        tm = n_tokens
    tm = max(16, (tm // 16) * 16)      # multiple of 16: bf16 sublane packing
    return int(tm)


def patch_expand_final4(x, expand_w, gamma, beta, *, dim_scale=4, eps=1e-5):
    """Forward pass of PatchExpand_final4.

    x:        (B, dim, H, W)  NCHW, matching the PyTorch module input.
    expand_w: (16*dim, dim)   nn.Linear(dim, 16*dim, bias=False).weight
    gamma:    (dim,)          LayerNorm weight
    beta:     (dim,)          LayerNorm bias
    returns   (B, dim, 4*H, 4*W) in x.dtype
    """
    assert dim_scale == 4, "module hard-codes a 16x channel expand (dim_scale=4)"
    b, c, h, w = x.shape
    dim = c
    d16 = 16 * dim
    n_tok = b * h * w

    # --- glue: NCHW -> (tokens, dim) bf16 slab (matches flatten(2).transpose) --
    x_tok = x.reshape(b, dim, h * w).transpose(0, 2, 1).reshape(n_tok, dim)
    x_tok = x_tok.astype(jnp.bfloat16)
    w_mat = expand_w.T.astype(jnp.bfloat16)                       # (dim, 16*dim)

    # Grouped-LayerNorm helper constants (depend only on `dim`, folded at trace).
    eye16 = jnp.eye(16, dtype=jnp.float32)
    red = jnp.kron(eye16, jnp.ones((dim, 1), jnp.float32)) / dim  # (16*dim, 16)
    bcast = jnp.kron(eye16, jnp.ones((1, dim), jnp.float32))      # (16, 16*dim)
    gamma_t = jnp.tile(gamma.astype(jnp.float32), 16).reshape(1, d16)
    beta_t = jnp.tile(beta.astype(jnp.float32), 16).reshape(1, d16)

    # --- VMEM budgeting per generation (v7x: 64 MiB, v5e/v6e: 128 MiB) --------
    try:
        vmem_cap = int(pltpu.get_tpu_info().vmem_capacity_bytes)
    except Exception:  # conservative fallback if the query is unavailable
        vmem_cap = 64 * 1024 * 1024
    vmem_limit = int(0.75 * vmem_cap)          # ~48 MiB v7x, ~96 MiB v5e/v6e
    tm = _pick_token_tile(n_tok, dim, int(0.6 * vmem_limit))
    n_tiles = pl.cdiv(n_tok, tm)               # no padding: Pallas clips the
                                               # trailing partial block.

    kernel = functools.partial(_expand_norm_kernel, eps=eps)
    y = pl.pallas_call(
        kernel,
        out_shape=jax.ShapeDtypeStruct((n_tok, d16), jnp.bfloat16),
        grid_spec=pltpu.PrefetchScalarGridSpec(
            num_scalar_prefetch=0,
            grid=(n_tiles,),
            in_specs=[
                pl.BlockSpec((tm, dim), lambda i: (i, 0)),    # tokens
                pl.BlockSpec((dim, d16), lambda i: (0, 0)),   # expand weight
                pl.BlockSpec((d16, 16), lambda i: (0, 0)),    # group reduce
                pl.BlockSpec((16, d16), lambda i: (0, 0)),    # group broadcast
                pl.BlockSpec((1, d16), lambda i: (0, 0)),     # gamma (tiled)
                pl.BlockSpec((1, d16), lambda i: (0, 0)),     # beta (tiled)
            ],
            out_specs=pl.BlockSpec((tm, d16), lambda i: (i, 0)),
        ),
        compiler_params=pltpu.CompilerParams(
            dimension_semantics=("parallel",),
            vmem_limit_bytes=vmem_limit,
        ),
    )(x_tok, w_mat, red, bcast, gamma_t, beta_t)

    # --- glue: einops 'b h w (p1 p2 c) -> b (h p1) (w p2) c' + transpose(1,2)
    # + view(B, dim, 4H, 4W) collapse to ONE permutation of the bf16 slab:
    # (b, h, w, p1, p2, c) -> (b, c, h, p1, w, p2), then a free view + cast.
    y = y.reshape(b, h, w, 4, 4, dim)
    y = y.transpose(0, 5, 1, 3, 2, 4)
    return y.reshape(b, dim, 4 * h, 4 * w).astype(x.dtype)


def _reference(x, expand_w, gamma, beta, eps=1e-5):
    """Pure-JAX f32 reference mirroring the PyTorch forward exactly."""
    b, c, h, w = x.shape
    dim = c
    xt = x.reshape(b, c, h * w).transpose(0, 2, 1)               # (B, L, dim)
    xe = jnp.einsum("blc,oc->blo", xt, expand_w)                 # (B, L, 16*dim)
    xe = xe.reshape(b, h, w, 4, 4, dim)
    xe = xe.transpose(0, 1, 3, 2, 4, 5).reshape(b, 4 * h, 4 * w, dim)
    xe = xe.reshape(b, -1, dim)
    mean = xe.mean(-1, keepdims=True)
    var = ((xe - mean) ** 2).mean(-1, keepdims=True)
    xn = (xe - mean) / jnp.sqrt(var + eps) * gamma + beta
    return xn.transpose(0, 2, 1).reshape(b, dim, 4 * h, 4 * w)


if __name__ == "__main__":
    key = jax.random.PRNGKey(0)
    k_x, k_w, k_g, k_b = jax.random.split(key, 4)

    B, DIM, H, W = 2, 16, 16, 16
    x = jax.random.normal(k_x, (B, DIM, H, W), dtype=jnp.float32)

    # Deterministic "module" parameters (nn.Linear(dim, 16*dim, bias=False),
    # nn.LayerNorm(dim)).
    expand_w = jax.random.normal(k_w, (16 * DIM, DIM), dtype=jnp.float32) * 0.05
    gamma = 1.0 + 0.1 * jax.random.normal(k_g, (DIM,), dtype=jnp.float32)
    beta = 0.1 * jax.random.normal(k_b, (DIM,), dtype=jnp.float32)

    out = jax.jit(patch_expand_final4)(x, expand_w, gamma, beta)
    out = jax.block_until_ready(out)
    assert out.shape == (B, DIM, 4 * H, 4 * W), out.shape

    ref = _reference(x, expand_w, gamma, beta)
    # The kernel feeds the expand matmul bf16 operands and writes a bf16 slab
    # (f32 accumulation & stats in-kernel), so the comparison against the f32
    # reference uses a correspondingly loose tolerance.
    max_err = float(jnp.max(jnp.abs(out - ref)))
    assert jnp.allclose(out, ref, atol=7.5e-2, rtol=5e-2), max_err

    print("KERNEL_OK")
</pallas_src>

<mosaic_0001>
module attributes {stable_mosaic.version = 11 : i64} {
  func.func @_expand_norm_kernel(%arg0: i32, %arg1: memref<512x16xbf16, #tpu.memory_space<vmem>>, %arg2: memref<16x256xbf16, #tpu.memory_space<vmem>>, %arg3: memref<256x16xf32, #tpu.memory_space<vmem>>, %arg4: memref<16x256xf32, #tpu.memory_space<vmem>>, %arg5: memref<1x256xf32, #tpu.memory_space<vmem>>, %arg6: memref<1x256xf32, #tpu.memory_space<vmem>>, %arg7: memref<512x256xbf16, #tpu.memory_space<vmem>>) attributes {dimension_semantics = [#tpu.dimension_semantics<parallel>], iteration_bounds = array<i64: 1>, scalar_prefetch = 0 : i64, scratch_operands = 0 : i64, tpu.core_type = #tpu.core_type<tc>, window_params = [{transform_indices = @transform_0, window_bounds = array<i64: 512, 16>}, {pipeline_mode = #tpu.pipeline_mode<synchronous>, transform_indices = @transform_1, window_bounds = array<i64: 16, 256>}, {pipeline_mode = #tpu.pipeline_mode<synchronous>, transform_indices = @transform_2, window_bounds = array<i64: 256, 16>}, {pipeline_mode = #tpu.pipeline_mode<synchronous>, transform_indices = @transform_3, window_bounds = array<i64: 16, 256>}, {pipeline_mode = #tpu.pipeline_mode<synchronous>, transform_indices = @transform_4, window_bounds = array<i64: 1, 256>}, {pipeline_mode = #tpu.pipeline_mode<synchronous>, transform_indices = @transform_5, window_bounds = array<i64: 1, 256>}, {transform_indices = @transform_6, window_bounds = array<i64: 512, 256>}]} {
    %c0 = arith.constant 0 : index
    %c0_0 = arith.constant 0 : index
    %0 = vector.load %arg1[%c0, %c0_0] : memref<512x16xbf16, #tpu.memory_space<vmem>>, vector<512x16xbf16>
    %c0_1 = arith.constant 0 : index
    %c0_2 = arith.constant 0 : index
    %1 = vector.load %arg2[%c0_1, %c0_2] : memref<16x256xbf16, #tpu.memory_space<vmem>>, vector<16x256xbf16>
    %cst = arith.constant dense<0.000000e+00> : vector<512x256xf32>
    %2 = tpu.matmul %0, %1, %cst {dimension_numbers = #tpu.dot_dimension_numbers<[1], [0], [0], [1], [0, 0, 1, 1], [], []>} : vector<512x16xbf16>, vector<16x256xbf16>, vector<512x256xf32> -> vector<512x256xf32>
    %c0_3 = arith.constant 0 : index
    %c0_4 = arith.constant 0 : index
    %3 = vector.load %arg3[%c0_3, %c0_4] : memref<256x16xf32, #tpu.memory_space<vmem>>, vector<256x16xf32>
    %c0_5 = arith.constant 0 : index
    %c0_6 = arith.constant 0 : index
    %4 = vector.load %arg4[%c0_5, %c0_6] : memref<16x256xf32, #tpu.memory_space<vmem>>, vector<16x256xf32>
    %cst_7 = arith.constant dense<0.000000e+00> : vector<512x16xf32>
    %5 = tpu.matmul %2, %3, %cst_7 {dimension_numbers = #tpu.dot_dimension_numbers<[1], [0], [0], [1], [0, 0, 1, 1], [], []>} : vector<512x256xf32>, vector<256x16xf32>, vector<512x16xf32> -> vector<512x16xf32>
    %cst_8 = arith.constant dense<0.000000e+00> : vector<512x256xf32>
    %6 = tpu.matmul %5, %4, %cst_8 {dimension_numbers = #tpu.dot_dimension_numbers<[1], [0], [0], [1], [0, 0, 1, 1], [], []>} : vector<512x16xf32>, vector<16x256xf32>, vector<512x256xf32> -> vector<512x256xf32>
    %7 = arith.subf %2, %6 : vector<512x256xf32>
    %8 = arith.mulf %7, %7 : vector<512x256xf32>
    %cst_9 = arith.constant dense<0.000000e+00> : vector<512x16xf32>
    %9 = tpu.matmul %8, %3, %cst_9 {dimension_numbers = #tpu.dot_dimension_numbers<[1], [0], [0], [1], [0, 0, 1, 1], [], []>} : vector<512x256xf32>, vector<256x16xf32>, vector<512x16xf32> -> vector<512x16xf32>
    %cst_10 = arith.constant 9.99999974E-6 : f32
    %10 = vector.broadcast %cst_10 : f32 to vector<512x16xf32>
    %11 = arith.addf %9, %10 : vector<512x16xf32>
    %12 = math.rsqrt %11 : vector<512x16xf32>
    %cst_11 = arith.constant dense<0.000000e+00> : vector<512x256xf32>
    %13 = tpu.matmul %12, %4, %cst_11 {dimension_numbers = #tpu.dot_dimension_numbers<[1], [0], [0], [1], [0, 0, 1, 1], [], []>} : vector<512x16xf32>, vector<16x256xf32>, vector<512x256xf32> -> vector<512x256xf32>
    %14 = arith.mulf %7, %13 : vector<512x256xf32>
    %c0_12 = arith.constant 0 : index
    %c0_13 = arith.constant 0 : index
    %15 = vector.load %arg5[%c0_12, %c0_13] : memref<1x256xf32, #tpu.memory_space<vmem>>, vector<1x256xf32>
    %16 = vector.broadcast %15 : vector<1x256xf32> to vector<512x256xf32>
    %17 = arith.mulf %14, %16 : vector<512x256xf32>
    %c0_14 = arith.constant 0 : index
    %c0_15 = arith.constant 0 : index
    %18 = vector.load %arg6[%c0_14, %c0_15] : memref<1x256xf32, #tpu.memory_space<vmem>>, vector<1x256xf32>
    %19 = vector.broadcast %18 : vector<1x256xf32> to vector<512x256xf32>
    %20 = arith.addf %17, %19 : vector<512x256xf32>
    %21 = arith.truncf %20 : vector<512x256xf32> to vector<512x256xbf16>
    %c0_16 = arith.constant 0 : index
    %c0_17 = arith.constant 0 : index
    %22 = vector.load %arg7[%c0_16, %c0_17] : memref<512x256xbf16, #tpu.memory_space<vmem>>, vector<512x256xbf16>
    tpu.vector_store %arg7[%c0_16, %c0_17], %21 {strides = array<i32>} : memref<512x256xbf16, #tpu.memory_space<vmem>>, vector<512x256xbf16>,
    return
  }
  func.func @transform_0(%arg0: i32) -> (i32, i32) {
    %c0_i32 = arith.constant 0 : i32
    %c0_i32_0 = arith.constant 0 : i32
    return %arg0, %c0_i32 : i32, i32
  }
  func.func @transform_1(%arg0: i32) -> (i32, i32) {
    %c0_i32 = arith.constant 0 : i32
    %c0_i32_0 = arith.constant 0 : i32
    %c0_i32_1 = arith.constant 0 : i32
    return %c0_i32, %c0_i32_0 : i32, i32
  }
  func.func @transform_2(%arg0: i32) -> (i32, i32) {
    %c0_i32 = arith.constant 0 : i32
    %c0_i32_0 = arith.constant 0 : i32
    %c0_i32_1 = arith.constant 0 : i32
    return %c0_i32, %c0_i32_0 : i32, i32
  }
  func.func @transform_3(%arg0: i32) -> (i32, i32) {
    %c0_i32 = arith.constant 0 : i32
    %c0_i32_0 = arith.constant 0 : i32
    %c0_i32_1 = arith.constant 0 : i32
    return %c0_i32, %c0_i32_0 : i32, i32
  }
  func.func @transform_4(%arg0: i32) -> (i32, i32) {
    %c0_i32 = arith.constant 0 : i32
    %c0_i32_0 = arith.constant 0 : i32
    %c0_i32_1 = arith.constant 0 : i32
    return %c0_i32, %c0_i32_0 : i32, i32
  }
  func.func @transform_5(%arg0: i32) -> (i32, i32) {
    %c0_i32 = arith.constant 0 : i32
    %c0_i32_0 = arith.constant 0 : i32
    %c0_i32_1 = arith.constant 0 : i32
    return %c0_i32, %c0_i32_0 : i32, i32
  }
  func.func @transform_6(%arg0: i32) -> (i32, i32) {
    %c0_i32 = arith.constant 0 : i32
    %c0_i32_0 = arith.constant 0 : i32
    return %arg0, %c0_i32 : i32, i32
  }
}

</mosaic_0001>

<bundles_post_ra>
// kernel: tile.13
= control target key start
LH: loop header
LB: loop body
LE: loop exit
PB: predicated region body
PF: predicated region fallthrough
CT: control target
= control target key end

     0   :  { %2 = vsyncpa [#allocation1], 0  ;;  %s51_s8 = smov [#allocation0]   ;;  %s71_s0 = inlined_call_operand.hbm [shape: f32[16], index: 0, kind: input, shape index: {}]   ;;  %s72_s1 = inlined_call_operand.vmem [shape: f32[16,16], index: 1, kind: output, shape index: {}]  }
   0x1   :  { %s8_s0 = sshll.u32 %s71_s0, 4  ;;  %s10_s9 = sshll.u32 %s51_s8, 4  ;;  %s9_s0 = int_to_ptr.hbm [resolvable:$true] %s8_s0  ;;  %s11_s9 = int_to_ptr.vmem [resolvable:$true] %s10_s9 }
   0x2   :  { %13 = dma.hbm_to_vmem [thread:$0]  %s9_s0, 16, %s11_s9, [#allocation1]  }
   0x3   :  { %49 = dma.done.wait [#allocation1], 16  }
   0x4   :  { %50 = vsyncadd [#allocation1], 4294967280  ;;  %v18_v0 = vld [vmem:[#allocation0] ss:$0 sm:$0xff] }
   0x5   :  { %19 = vst [vmem:[%s72_s1] sm:$0xff] %v18_v0 }
   0x6   :  { %23 = vst [vmem:[%s72_s1 + $0x8] sm:$0xff] %v18_v0 }
   0x7   :  { %22 = vsyncpa [#allocation1], 1 }

// kernel: tile.14
= control target key start
LH: loop header
LB: loop body
LE: loop exit
PB: predicated region body
PF: predicated region fallthrough
CT: control target
= control target key end

     0   :  { %s7_s6 = smov 3  ;;  %s21_s9 = smov 3  ;;  %vm4_vm0 = vcmask 130048   ;;  %vm11_vm1 = vcmask 1048448   ;;  %vm18_vm2 = vcmask 917248   ;;  %vm25_vm3 = vcmask 786048   ;;  %s129_s0 = inlined_call_operand.vmem [shape: f32[16,16], index: 0, kind: input, shape index: {}]   ;;  %s130_s1 = inlined_call_operand.vmem [shape: f32[1,256], index: 1, kind: output, shape index: {}]  }
   0x1   :  { %v67_v0 = vld [vmem:[%s129_s0 + $0x7] ss:$8 sm:%s7_s6]   ;;  %s82_s10 = smov 112   ;;  %v69_v1 = vld [vmem:[%s129_s0 + $0x5] ss:$8 sm:%s21_s9]   ;;  %s83_s13 = smov 80  }
   0x2   :  { %9 = vrot.lane.b32.xlu0 %v67_v0, %s82_s10  ;;  %23 = vrot.lane.b32.xlu1 %v69_v1, %s83_s13  ;;  %s14_s14 = smov 3  ;;  %s28_s15 = smov 3  ;;  %vm32_vm4 = vcmask 654848   ;;  %vm39_vm5 = vcmask 523648   ;;  %vm46_vm6 = vcmask 392448   ;;  %vm53_vm7 = vcmask 261248  }
   0x3   :  { %s35_s16 = smov 3  ;;  %v68_v3 = vld [vmem:[%s129_s0 + $0x6] ss:$8 sm:%s14_s14]   ;;  %s84_s21 = smov 48   ;;  %v70_v4 = vld [vmem:[%s129_s0 + $0x4] ss:$8 sm:%s28_s15]  }
   0x4   :  { %v71_v2 = vld [vmem:[%s129_s0 + $0x3] ss:$8 sm:%s35_s16]   ;;  %s42_s24 = smov 3  ;;  %s85_s25 = smov 96  }
   0x5   :  { %37 = vrot.lane.b32.xlu2 %v71_v2, %s84_s21  ;;  %s86_s26 = smov 64   ;;  %s49_s27 = smov 3  ;;  %v72_v5 = vld [vmem:[%s129_s0 + $0x2] ss:$8 sm:%s42_s24]  }
   0x6   :  { %v73_v6 = vld [vmem:[%s129_s0 + $0x1] ss:$8 sm:%s49_s27]   ;;  %s87_s3 = smov 32   ;;  %s88_s4 = smov 16  }
   0x7   :  { %s2_s5 = smov 3 }
   0x8   :  { %v3_v7 = vld [vmem:[%s129_s0] ss:$8 sm:%s2_s5]  }
   0x9   :  { %5 = vst.msk [vmem:[#allocation0] ss:$8 sm:$0x3] %vm4_vm0, %v3_v7  }
   0xa   :  { %16 = vrot.lane.b32.xlu0 %v68_v3, %s85_s25  ;;  %30 = vrot.lane.b32.xlu1 %v70_v4, %s86_s26 }
   0xd   :  { %44 = vrot.lane.b32.xlu2 %v72_v5, %s87_s3 }
  0x12   :  { %51 = vrot.lane.b32.xlu0 %v73_v6, %s88_s4 }
  0x5f   :  { %v38_v8 = vpop.permute.xlu2 %37  }
  0x67   :  { %v45_v9 = vpop.permute.xlu2 %44  }
  0x74   :  { %v10_v10 = vpop.permute.xlu0 %9   ;;  %v24_v11 = vpop.permute.xlu1 %23  }
  0x75   :  { %12 = vst.msk [vmem:[#allocation0] ss:$8 sm:$0x3] %vm11_vm1, %v10_v10  }
  0x7c   :  { %v17_v12 = vpop.permute.xlu0 %16   ;;  %v31_v13 = vpop.permute.xlu1 %30  }
  0x7d   :  { %19 = vst.msk [vmem:[#allocation0] ss:$8 sm:$0x3] %vm18_vm2, %v17_v12  }
  0x7e   :  { %26 = vst.msk [vmem:[#allocation0] ss:$8 sm:$0x3] %vm25_vm3, %v24_v11  }
  0x7f   :  { %33 = vst.msk [vmem:[#allocation0] ss:$8 sm:$0x3] %vm32_vm4, %v31_v13  }
  0x80   :  { %40 = vst.msk [vmem:[#allocation0] ss:$8 sm:$0x3] %vm39_vm5, %v38_v8  }
  0x81   :  { %47 = vst.msk [vmem:[#allocation0] ss:$8 sm:$0x3] %vm46_vm6, %v45_v9  }
  0x84   :  { %v52_v14 = vpop.permute.xlu0 %51  }
  0x85   :  { %54 = vst.msk [vmem:[#allocation0] ss:$8 sm:$0x3] %vm53_vm7, %v52_v14  }
  0x8c   :  { %v57_v15 = vld [vmem:[#allocation0] sm:$0x1]  ;;  %v62_v16 = vld [vmem:[#allocation0 + $0x8] sm:$0x1] }
  0x8d   :  { %60 = vst [vmem:[%s130_s1] sm:$0x1] %v57_v15 }
  0x8e   :  { %74 = vst [vmem:[%s130_s1 + $0x1] sm:$0x1] %v62_v16 }

// kernel: patch_expand_final4.1
= control target key start
LH: loop header
LB: loop body
LE: loop exit
PB: predicated region body
PF: predicated region fallthrough
CT: control target
= control target key end

     0   :  { %vm260_vm0 = vcmask 130048   ;;  %s7838_s1 = inlined_call_operand.vmem [shape: bf16[16,256], index: 1, kind: input, shape index: {}]   ;;  %s7839_s0 = inlined_call_operand.vmem [shape: bf16[512,16], index: 0, kind: input, shape index: {}]   ;;  %s7840_s2 = inlined_call_operand.vmem [shape: f32[256,16], index: 2, kind: input, shape index: {}]   ;;  %s7841_s3 = inlined_call_operand.vmem [shape: f32[16,256], index: 3, kind: input, shape index: {}]   ;;  %s7842_s4 = inlined_call_operand.vmem [shape: f32[1,256], index: 4, kind: input, shape index: {}]   ;;  %s7843_s5 = inlined_call_operand.vmem [shape: f32[1,256], index: 5, kind: input, shape index: {}]   ;;  %s7844_s6 = inlined_call_operand.vmem [shape: bf16[512,256], index: 6, kind: output, shape index: {}]  }
   0x1   :  { %v4341_v0 = vld [vmem:[%s7838_s1] sm:$0xf]  ;;  %v4700_v1 = vld [vmem:[%s7838_s1 + $0x4] sm:$0xf0]  ;;  %v4699_v2 = vld [vmem:[%s7838_s1 + $0x4] sm:$0xf] }
   0x2   :  { %v4342_v3 = vor.u32 %v4700_v1, %v4341_v0  ;;  %v4343_v4 = vld [vmem:[%s7838_s1 + $0x8] sm:$0xf0]  ;;  %v4886_v7 = vld [vmem:[%s7840_s2 + $0xf8] sm:$0xff]  ;;  %v4896_v9 = vld [vmem:[%s7839_s0 + $0x80] sm:$0xff] }
   0x3   :  { %v4346_v5 = vor.u32 %v4699_v2, %v4343_v4  ;;  %v4684_v6 = vld [vmem:[%s7839_s0 + $0x88] sm:$0xff]  ;;  %v4891_v8 = vld [vmem:[%s7840_s2 + $0x78] sm:$0xff]  ;;  %v4902_v10 = vld [vmem:[%s7840_s2 + $0x70] sm:$0xff] }
   0x4   :  { %4701 = vmatpush.bf16.msra.mxu2 %v4342_v3  ;;  %364 = vmatpush.bf16.msra.mxu0 %v4342_v3  ;;  %v4908_v11 = vld [vmem:[%s7840_s2 + $0xf0] sm:$0xff]  ;;  %v4917_v12 = vld [vmem:[%s7840_s2 + $0xe8] sm:$0xff]  ;;  %v4935_v15 = vld [vmem:[%s7840_s2 + $0xe0] sm:$0xff] }
   0x5   :  { %4702 = vmatpush.bf16.msra.mxu3 %v4346_v5  ;;  %533 = vmatpush.bf16.msra.mxu1 %v4346_v5  ;;  %v4922_v13 = vld [vmem:[%s7840_s2 + $0x68] sm:$0xff]  ;;  %v4685_v14 = vld [vmem:[%s7839_s0 + $0x90] sm:$0xff]  ;;  %v4940_v16 = vld [vmem:[%s7840_s2 + $0x60] sm:$0xff] }
   0x6   :  { %v4686_v17 = vld [vmem:[%s7839_s0 + $0x98] sm:$0xff]  ;;  %v4687_v20 = vld [vmem:[%s7839_s0 + $0xa0] sm:$0xff]  ;;  %v4969_v21 = vld [vmem:[%s7840_s2 + $0xd0] sm:$0xff] }
   0x7   :  { %4364 = vmatmul.msk.bf16.vlgmr.msra.gmra.mxu2 %vm260_vm0, %v4684_v6  ;;  %v4952_v18 = vld [vmem:[%s7840_s2 + $0xd8] sm:$0xff]  ;;  %v4974_v22 = vld [vmem:[%s7840_s2 + $0x50] sm:$0xff]  ;;  %v4688_v23 = vld [vmem:[%s7839_s0 + $0xa8] sm:$0xff] }
   0x8   :  { %731 = vmatpush.msrb.mxu2 %v4891_v8  ;;  %4395 = vmatmul.msk.bf16.vlgmr.msra.gmra.mxu3 %vm260_vm0, %v4896_v9  ;;  %v4957_v19 = vld [vmem:[%s7840_s2 + $0x58] sm:$0xff]  ;;  %v4986_v24 = vld [vmem:[%s7840_s2 + $0xc8] sm:$0xff]  ;;  %v4689_v26 = vld [vmem:[%s7839_s0 + $0xb0] sm:$0xff] }
   0x9   :  { %940 = vmatpush.msrb.mxu3 %v4886_v7  ;;  %v4991_v25 = vld [vmem:[%s7840_s2 + $0x48] sm:$0xff]  ;;  %v5003_v27 = vld [vmem:[%s7840_s2 + $0xc0] sm:$0xff]  ;;  %v4690_v30 = vld [vmem:[%s7839_s0 + $0xb8] sm:$0xff] }
   0xa   :  { %732 = vmatpush.msrb.mxu2 %v4902_v10  ;;  %v4667_v28 = vld [vmem:[%s7839_s0] sm:$0xff]  ;;  %v5025_v31 = vld [vmem:[%s7840_s2 + $0xb8] sm:$0xff]  ;;  %v4668_v32 = vld [vmem:[%s7839_s0 + $0x8] sm:$0xff] }
   0xb   :  { %941 = vmatpush.msrb.mxu3 %v4908_v11  ;;  %v5011_v29 = vld [vmem:[%s7840_s2 + $0x40] sm:$0xff]  ;;  %4347 = vmatmul.msk.bf16.vlgmr.msra.gmra.mxu0 %vm260_vm0, %v4667_v28  ;;  %v5036_v33 = vld [vmem:[%s7840_s2 + $0x38] sm:$0xff]  ;;  %v5047_v35 = vld [vmem:[%s7840_s2 + $0xb0] sm:$0xff] }
   0xc   :  { %733 = vmatpush.msrb.mxu2 %v4922_v13  ;;  %4379 = vmatmul.msk.bf16.vlgmr.msra.gmra.mxu1 %vm260_vm0, %v4667_v28  ;;  %v4691_v34 = vld [vmem:[%s7839_s0 + $0xc0] sm:$0xff]  ;;  %v4669_v36 = vld [vmem:[%s7839_s0 + $0x10] sm:$0xff]  ;;  %v4692_v38 = vld [vmem:[%s7839_s0 + $0xc8] sm:$0xff] }
   0xd   :  { %942 = vmatpush.msrb.mxu3 %v4917_v12  ;;  %v5058_v37 = vld [vmem:[%s7840_s2 + $0x30] sm:$0xff]  ;;  %v5072_v40 = vld [vmem:[%s7841_s3 + $0x18] sm:$0xff]  ;;  %v5081_v41 = vld [vmem:[%s7840_s2 + $0xa8] sm:$0xff] }
   0xe   :  { %734 = vmatpush.msrb.mxu2 %v4940_v16  ;;  %v5067_v39 = vld [vmem:[%s7841_s3 + $0x10] sm:$0xff]  ;;  %1564 = vmatpush.msrb.mxu1 %v5072_v40  ;;  %v4670_v42 = vld [vmem:[%s7839_s0 + $0x18] sm:$0xff]  ;;  %v5096_v45 = vld [vmem:[%s7840_s2 + $0x28] sm:$0xff] }
   0xf   :  { %943 = vmatpush.msrb.mxu3 %v4935_v15  ;;  %1355 = vmatpush.msrb.mxu0 %v5067_v39  ;;  %v4693_v48 = vld [vmem:[%s7839_s0 + $0xd0] sm:$0xff]  ;;  %v5111_v49 = vld [vmem:[%s7840_s2 + $0xa0] sm:$0xff]  ;;  %v4694_v56 = vld [vmem:[%s7839_s0 + $0xd8] sm:$0xff] }
  0x10   :  { %735 = vmatpush.msrb.mxu2 %v4957_v19  ;;  %v4671_v50 = vld [vmem:[%s7839_s0 + $0x20] sm:$0xff]  ;;  %v5141_v57 = vld [vmem:[%s7840_s2 + $0x98] sm:$0xff]  ;;  %v4672_v58 = vld [vmem:[%s7839_s0 + $0x28] sm:$0xff] }
  0x11   :  { %944 = vmatpush.msrb.mxu3 %v4952_v18  ;;  %v5126_v53 = vld [vmem:[%s7840_s2 + $0x20] sm:$0xff]  ;;  %v5149_v59 = vld [vmem:[%s7840_s2 + $0x18] sm:$0xff]  ;;  %v5171_v1 = vld [vmem:[%s7840_s2 + $0x90] sm:$0xff] }
  0x12   :  { %736 = vmatpush.msrb.mxu2 %v4974_v22  ;;  %v4695_v0 = vld [vmem:[%s7839_s0 + $0xe0] sm:$0xff]  ;;  %v5176_v2 = vld [vmem:[%s7840_s2 + $0x10] sm:$0xff] }
  0x13   :  { %945 = vmatpush.msrb.mxu3 %v4969_v21  ;;  %v4673_v3 = vld [vmem:[%s7839_s0 + $0x30] sm:$0xff] }
  0x14   :  { %737 = vmatpush.msrb.mxu2 %v4991_v25 }
  0x15   :  { %946 = vmatpush.msrb.mxu3 %v4986_v24 }
  0x16   :  { %738 = vmatpush.msrb.mxu2 %v5011_v29 }
  0x17   :  { %4365 = vmatmul.msk.bf16.gmra.mxu2 %vm260_vm0, %v4685_v14  ;;  %947 = vmatpush.msrb.mxu3 %v5003_v27 }
  0x18   :  { %4396 = vmatmul.msk.bf16.gmra.mxu3 %vm260_vm0, %v4684_v6  ;;  %739 = vmatpush.msrb.mxu2 %v5036_v33 }
  0x19   :  { %948 = vmatpush.msrb.mxu3 %v5025_v31 }
  0x1a   :  { %740 = vmatpush.msrb.mxu2 %v5058_v37 }
  0x1b   :  { %4348 = vmatmul.msk.bf16.gmra.mxu0 %vm260_vm0, %v4668_v32  ;;  %949 = vmatpush.msrb.mxu3 %v5047_v35 }
  0x1c   :  { %4380 = vmatmul.msk.bf16.gmra.mxu1 %vm260_vm0, %v4668_v32  ;;  %741 = vmatpush.msrb.mxu2 %v5096_v45 }
  0x1d   :  { %950 = vmatpush.msrb.mxu3 %v5081_v41 }
  0x1e   :  { %742 = vmatpush.msrb.mxu2 %v5126_v53 }
  0x1f   :  { %951 = vmatpush.msrb.mxu3 %v5111_v49 }
  0x20   :  { %743 = vmatpush.msrb.mxu2 %v5149_v59 }
  0x21   :  { %952 = vmatpush.msrb.mxu3 %v5141_v57 }
  0x22   :  { %744 = vmatpush.msrb.mxu2 %v5176_v2 }
  0x23   :  { %953 = vmatpush.msrb.mxu3 %v5171_v1 }
  0x27   :  { %4366 = vmatmul.msk.bf16.gmra.mxu2 %vm260_vm0, %v4686_v17 }
  0x28   :  { %4397 = vmatmul.msk.bf16.gmra.mxu3 %vm260_vm0, %v4685_v14 }
  0x2b   :  { %4349 = vmatmul.msk.bf16.gmra.mxu0 %vm260_vm0, %v4669_v36 }
  0x2c   :  { %4381 = vmatmul.msk.bf16.gmra.mxu1 %vm260_vm0, %v4669_v36  ;;  %v4697_v36 = vld [vmem:[%s7839_s0 + $0xf0] sm:$0xff] }
  0x37   :  { %4367 = vmatmul.msk.bf16.gmra.mxu2 %vm260_vm0, %v4687_v20 }
  0x38   :  { %4398 = vmatmul.msk.bf16.gmra.mxu3 %vm260_vm0, %v4686_v17  ;;  %v4696_v17 = vld [vmem:[%s7839_s0 + $0xe8] sm:$0xff] }
  0x3b   :  { %4350 = vmatmul.msk.bf16.gmra.mxu0 %vm260_vm0, %v4670_v42 }
  0x3c   :  { %4382 = vmatmul.msk.bf16.gmra.mxu1 %vm260_vm0, %v4670_v42 }
  0x47   :  { %4368 = vmatmul.msk.bf16.gmra.mxu2 %vm260_vm0, %v4688_v23 }
  0x48   :  { %4399 = vmatmul.msk.bf16.gmra.mxu3 %vm260_vm0, %v4687_v20  ;;  %v5201_v20 = vld [vmem:[%s7840_s2 + $0x8] sm:$0xff] }
  0x49   :  { %745 = vmatpush.msrb.mxu2 %v5201_v20 }
  0x4b   :  { %4351 = vmatmul.msk.bf16.gmra.mxu0 %vm260_vm0, %v4671_v50 }
  0x4c   :  { %4383 = vmatmul.msk.bf16.gmra.mxu1 %vm260_vm0, %v4671_v50  ;;  %v4675_v50 = vld [vmem:[%s7839_s0 + $0x40] sm:$0xff] }
  0x57   :  { %4369 = vmatmul.msk.bf16.gmra.mxu2 %vm260_vm0, %v4689_v26 }
  0x58   :  { %4400 = vmatmul.msk.bf16.gmra.mxu3 %vm260_vm0, %v4688_v23  ;;  %v5206_v23 = vld [vmem:[%s7840_s2 + $0x88] sm:$0xff] }
  0x59   :  { %954 = vmatpush.msrb.mxu3 %v5206_v23 }
  0x5b   :  { %4352 = vmatmul.msk.bf16.gmra.mxu0 %vm260_vm0, %v4672_v58 }
  0x5c   :  { %4384 = vmatmul.msk.bf16.gmra.mxu1 %vm260_vm0, %v4672_v58 }
  0x67   :  { %4370 = vmatmul.msk.bf16.gmra.mxu2 %vm260_vm0, %v4690_v30 }
  0x68   :  { %4401 = vmatmul.msk.bf16.gmra.mxu3 %vm260_vm0, %v4689_v26  ;;  %v4674_v26 = vld [vmem:[%s7839_s0 + $0x38] sm:$0xff] }
  0x6b   :  { %4353 = vmatmul.msk.bf16.gmra.mxu0 %vm260_vm0, %v4673_v3 }
  0x6c   :  { %4385 = vmatmul.msk.bf16.gmra.mxu1 %vm260_vm0, %v4673_v3 }
  0x77   :  { %4371 = vmatmul.msk.bf16.gmra.mxu2 %vm260_vm0, %v4691_v34 }
  0x78   :  { %4402 = vmatmul.msk.bf16.gmra.mxu3 %vm260_vm0, %v4690_v30 }
  0x7b   :  { %4354 = vmatmul.msk.bf16.gmra.mxu0 %vm260_vm0, %v4674_v26 }
  0x7c   :  { %4386 = vmatmul.msk.bf16.gmra.mxu1 %vm260_vm0, %v4674_v26 }
  0x87   :  { %4372 = vmatmul.msk.bf16.gmra.mxu2 %vm260_vm0, %v4692_v38 }
  0x88   :  { %4403 = vmatmul.msk.bf16.gmra.mxu3 %vm260_vm0, %v4691_v34  ;;  %v5234_v42 = vpop.f32.mrf.mxu0 }
  0x89   :  { %8081 = vst [vmem:[#allocation22_spill] sm:$0xff] %v5234_v42  ;;  %v5250_v58 = vpop.f32.mrf.mxu1 }
  0x8a   :  { %v5087_v43 = vpop.f32.mrf.mxu2  ;;  %8084 = vst [vmem:[#allocation25_spill] sm:$0xff] %v5250_v58 }
  0x8b   :  { %8061 = vst [vmem:[#allocation2_spill] sm:$0xff] %v5087_v43  ;;  %v5091_v44 = vpop.f32.mrf.mxu3  ;;  %4355 = vmatmul.msk.bf16.gmra.mxu0 %vm260_vm0, %v4675_v50 }
  0x8c   :  { %8062 = vst [vmem:[#allocation3_spill] sm:$0xff] %v5091_v44  ;;  %4387 = vmatmul.msk.bf16.gmra.mxu1 %vm260_vm0, %v4675_v50 }
  0x92   :  { %v5099_v46 = vpop.f32.mrf.mxu2 }
  0x93   :  { %8063 = vst [vmem:[#allocation4_spill] sm:$0xff] %v5099_v46  ;;  %v5101_v47 = vpop.f32.mrf.mxu3 }
  0x94   :  { %8064 = vst [vmem:[#allocation5_spill] sm:$0xff] %v5101_v47 }
  0x97   :  { %4373 = vmatmul.msk.bf16.gmra.mxu2 %vm260_vm0, %v4693_v48 }
  0x98   :  { %4404 = vmatmul.msk.bf16.gmra.mxu3 %vm260_vm0, %v4692_v38  ;;  %v5229_v38 = vld [vmem:[%s7840_s2] sm:$0xff] }
  0x99   :  { %746 = vmatpush.msrb.mxu2 %v5229_v38 }
  0x9a   :  { %v5117_v51 = vpop.f32.mrf.mxu2 }
  0x9b   :  { %8065 = vst [vmem:[#allocation6_spill] sm:$0xff] %v5117_v51  ;;  %v5121_v52 = vpop.f32.mrf.mxu3  ;;  %2015 = vmatpush.msra.mxu2 %v4891_v8 }
  0x9c   :  { %8066 = vst [vmem:[#allocation7_spill] sm:$0xff] %v5121_v52 }
  0x9d   :  { %2016 = vmatpush.msra.mxu2 %v4902_v10  ;;  %v5256_v10 = vpop.f32.mrf.mxu0 }
  0x9e   :  { %8085 = vst [vmem:[#allocation26_spill] sm:$0xff] %v5256_v10 }
  0x9f   :  { %2017 = vmatpush.msra.mxu2 %v4922_v13  ;;  %v4676_v13 = vld [vmem:[%s7839_s0 + $0x48] sm:$0xff] }
  0xa0   :  { %4356 = vmatmul.msk.bf16.gmra.mxu0 %vm260_vm0, %v4676_v13  ;;  %4388 = vmatmul.msk.bf16.gmra.mxu1 %vm260_vm0, %v4676_v13 }
  0xa1   :  { %2018 = vmatpush.msra.mxu2 %v4940_v16 }
  0xa2   :  { %v5129_v54 = vpop.f32.mrf.mxu2 }
  0xa3   :  { %8067 = vst [vmem:[#allocation8_spill] sm:$0xff] %v5129_v54  ;;  %v5131_v55 = vpop.f32.mrf.mxu3  ;;  %2019 = vmatpush.msra.mxu2 %v4957_v19 }
  0xa4   :  { %8068 = vst [vmem:[#allocation9_spill] sm:$0xff] %v5131_v55 }
  0xa5   :  { %2020 = vmatpush.msra.mxu2 %v4974_v22 }
  0xa7   :  { %4374 = vmatmul.msk.bf16.gmra.mxu2 %vm260_vm0, %v4694_v56 }
  0xa8   :  { %4405 = vmatmul.msk.bf16.gmra.mxu3 %vm260_vm0, %v4693_v48  ;;  %v711_v48 = vld [vmem:[%s7840_s2 + $0x80] sm:$0xff]  ;;  %2021 = vmatpush.msra.mxu2 %v4991_v25 }
  0xa9   :  { %955 = vmatpush.msrb.mxu3 %v711_v48 }
  0xaa   :  { %v5153_v60 = vpop.f32.mrf.mxu2  ;;  %2022 = vmatpush.msra.mxu2 %v5011_v29 }
  0xab   :  { %8069 = vst [vmem:[#allocation10_spill] sm:$0xff] %v5153_v60  ;;  %v5157_v61 = vpop.f32.mrf.mxu3  ;;  %2224 = vmatpush.msra.mxu3 %v4886_v7  ;;  %v4698_v7 = vld [vmem:[%s7839_s0 + $0xf8] sm:$0xff] }
  0xac   :  { %8070 = vst [vmem:[#allocation11_spill] sm:$0xff] %v5157_v61  ;;  %2023 = vmatpush.msra.mxu2 %v5036_v33 }
  0xad   :  { %2225 = vmatpush.msra.mxu3 %v4908_v11  ;;  %v5269_v11 = vpop.f32.mrf.mxu1 }
  0xae   :  { %8088 = vst [vmem:[#allocation29_spill] sm:$0xff] %v5269_v11  ;;  %2024 = vmatpush.msra.mxu2 %v5058_v37 }
  0xaf   :  { %2226 = vmatpush.msra.mxu3 %v4917_v12  ;;  %v5276_v12 = vpop.f32.mrf.mxu0 }
  0xb0   :  { %8089 = vst [vmem:[#allocation30_spill] sm:$0xff] %v5276_v12  ;;  %2025 = vmatpush.msra.mxu2 %v5096_v45  ;;  %v728_v45 = vld [vmem:[%s7841_s3 + $0x8] sm:$0xff] }
  0xb1   :  { %2227 = vmatpush.msra.mxu3 %v4935_v15  ;;  %1565 = vmatpush.msrb.mxu1 %v728_v45 }
  0xb2   :  { %v5159_v62 = vpop.f32.mrf.mxu2  ;;  %2026 = vmatpush.msra.mxu2 %v5126_v53 }
  0xb3   :  { %8071 = vst [vmem:[#allocation12_spill] sm:$0xff] %v5159_v62  ;;  %v5161_v63 = vpop.f32.mrf.mxu3  ;;  %2228 = vmatpush.msra.mxu3 %v4952_v18  ;;  %3488 = vmatpush.msra.mxu1 %v5072_v40  ;;  %v727_v40 = vld [vmem:[%s7841_s3] sm:$0xff] }
  0xb4   :  { %8072 = vst [vmem:[#allocation13_spill] sm:$0xff] %v5161_v63  ;;  %2027 = vmatpush.msra.mxu2 %v5149_v59  ;;  %1356 = vmatpush.msrb.mxu0 %v727_v40 }
  0xb5   :  { %2229 = vmatpush.msra.mxu3 %v4969_v21  ;;  %v5291_v18 = vpop.f32.mrf.mxu1  ;;  %3489 = vmatpush.msra.mxu1 %v728_v45 }
  0xb6   :  { %8092 = vst [vmem:[#allocation33_spill] sm:$0xff] %v5291_v18  ;;  %2028 = vmatpush.msra.mxu2 %v5176_v2  ;;  %3279 = vmatpush.msra.mxu0 %v5067_v39 }
  0xb7   :  { %4375 = vmatmul.msk.bf16.gmra.mxu2 %vm260_vm0, %v4695_v0  ;;  %2230 = vmatpush.msra.mxu3 %v4986_v24  ;;  %v5297_v19 = vpop.f32.mrf.mxu0 }
  0xb8   :  { %4406 = vmatmul.msk.bf16.gmra.mxu3 %vm260_vm0, %v4694_v56  ;;  %8093 = vst [vmem:[#allocation34_spill] sm:$0xff] %v5297_v19  ;;  %2029 = vmatpush.msra.mxu2 %v5201_v20 }
  0xb9   :  { %2231 = vmatpush.msra.mxu3 %v5003_v27  ;;  %v4677_v27 = vld [vmem:[%s7839_s0 + $0x50] sm:$0xff]  ;;  %3280 = vmatpush.msra.mxu0 %v727_v40 }
  0xba   :  { %v5183_v4 = vpop.f32.mrf.mxu2  ;;  %2030 = vmatpush.msra.mxu2 %v5229_v38  ;;  %4357 = vmatmul.msk.bf16.gmra.mxu0 %vm260_vm0, %v4677_v27 }
  0xbb   :  { %8073 = vst [vmem:[#allocation14_spill] sm:$0xff] %v5183_v4  ;;  %v5187_v5 = vpop.f32.mrf.mxu3  ;;  %2232 = vmatpush.msra.mxu3 %v5025_v31  ;;  %4389 = vmatmul.msk.bf16.gmra.mxu1 %vm260_vm0, %v4677_v27 }
  0xbc   :  { %8074 = vst [vmem:[#allocation15_spill] sm:$0xff] %v5187_v5 }
  0xbd   :  { %2233 = vmatpush.msra.mxu3 %v5047_v35  ;;  %v5307_v24 = vpop.f32.mrf.mxu1 }
  0xbe   :  { %8096 = vst [vmem:[#allocation37_spill] sm:$0xff] %v5307_v24 }
  0xbf   :  { %2234 = vmatpush.msra.mxu3 %v5081_v41  ;;  %v5314_v25 = vpop.f32.mrf.mxu0 }
  0xc0   :  { %8097 = vst [vmem:[#allocation38_spill] sm:$0xff] %v5314_v25 }
  0xc1   :  { %2235 = vmatpush.msra.mxu3 %v5111_v49 }
  0xc2   :  { %v5189_v6 = vpop.f32.mrf.mxu2 }
  0xc3   :  { %8075 = vst [vmem:[#allocation16_spill] sm:$0xff] %v5189_v6  ;;  %v5191_v14 = vpop.f32.mrf.mxu3  ;;  %2236 = vmatpush.msra.mxu3 %v5141_v57  ;;  %v4678_v57 = vld [vmem:[%s7839_s0 + $0x58] sm:$0xff] }
  0xc4   :  { %8076 = vst [vmem:[#allocation17_spill] sm:$0xff] %v5191_v14 }
  0xc5   :  { %2237 = vmatpush.msra.mxu3 %v5171_v1  ;;  %v5329_v33 = vpop.f32.mrf.mxu1 }
  0xc6   :  { %8100 = vst [vmem:[#allocation41_spill] sm:$0xff] %v5329_v33 }
  0xc7   :  { %4376 = vmatmul.msk.bf16.gmra.mxu2 %vm260_vm0, %v4696_v17  ;;  %2238 = vmatpush.msra.mxu3 %v5206_v23  ;;  %v5332_v35 = vpop.f32.mrf.mxu0 }
  0xc8   :  { %4407 = vmatmul.msk.bf16.gmra.mxu3 %vm260_vm0, %v4695_v0  ;;  %8101 = vst [vmem:[#allocation42_spill] sm:$0xff] %v5332_v35 }
  0xc9   :  { %2239 = vmatpush.msra.mxu3 %v711_v48 }
  0xca   :  { %v5213_v28 = vpop.f32.mrf.mxu2  ;;  %4358 = vmatmul.msk.bf16.gmra.mxu0 %vm260_vm0, %v4678_v57 }
  0xcb   :  { %8077 = vst [vmem:[#allocation18_spill] sm:$0xff] %v5213_v28  ;;  %v5217_v30 = vpop.f32.mrf.mxu3  ;;  %4390 = vmatmul.msk.bf16.gmra.mxu1 %vm260_vm0, %v4678_v57 }
  0xcc   :  { %8078 = vst [vmem:[#allocation19_spill] sm:$0xff] %v5217_v30 }
  0xcd   :  { %v5341_v49 = vpop.f32.mrf.mxu1 }
  0xce   :  { %8104 = vst [vmem:[#allocation45_spill] sm:$0xff] %v5341_v49 }
  0xcf   :  { %v5345_v53 = vpop.f32.mrf.mxu0 }
  0xd0   :  { %8105 = vst [vmem:[#allocation46_spill] sm:$0xff] %v5345_v53 }
  0xd2   :  { %v5219_v32 = vpop.f32.mrf.mxu2 }
  0xd3   :  { %8079 = vst [vmem:[#allocation20_spill] sm:$0xff] %v5219_v32  ;;  %v5221_v34 = vpop.f32.mrf.mxu3 }
  0xd4   :  { %8080 = vst [vmem:[#allocation21_spill] sm:$0xff] %v5221_v34 }
  0xd5   :  { %v5360_v2 = vpop.f32.mrf.mxu1 }
  0xd6   :  { %8108 = vst [vmem:[#allocation49_spill] sm:$0xff] %v5360_v2 }
  0xd7   :  { %4377 = vmatmul.msk.bf16.gmra.mxu2 %vm260_vm0, %v4697_v36 }
  0xd8   :  { %4408 = vmatmul.msk.bf16.gmra.mxu3 %vm260_vm0, %v4696_v17  ;;  %v5364_v17 = vpop.f32.mrf.mxu0 }
  0xd9   :  { %8109 = vst [vmem:[#allocation50_spill] sm:$0xff] %v5364_v17 }
  0xda   :  { %v5244_v56 = vpop.f32.mrf.mxu2 }
  0xdb   :  { %8082 = vst [vmem:[#allocation23_spill] sm:$0xff] %v5244_v56  ;;  %v5248_v8 = vpop.f32.mrf.mxu3 }
  0xdc   :  { %8083 = vst [vmem:[#allocation24_spill] sm:$0xff] %v5248_v8 }
  0xdd   :  { %v5371_v26 = vpop.f32.mrf.mxu1 }
  0xde   :  { %8112 = vst [vmem:[#allocation53_spill] sm:$0xff] %v5371_v26 }
  0xe2   :  { %v5262_v0 = vpop.f32.mrf.mxu2 }
  0xe3   :  { %8086 = vst [vmem:[#allocation27_spill] sm:$0xff] %v5262_v0  ;;  %v5264_v3 = vpop.f32.mrf.mxu3 }
  0xe4   :  { %8087 = vst [vmem:[#allocation28_spill] sm:$0xff] %v5264_v3 }
  0xe5   :  { %v5386_v50 = vpop.f32.mrf.mxu1 }
  0xe6   :  { %8116 = vst [vmem:[#allocation57_spill] sm:$0xff] %v5386_v50 }
  0xe7   :  { %4378 = vmatmul.msk.bf16.gmra.mxu2 %vm260_vm0, %v4698_v7 }
  0xe8   :  { %4409 = vmatmul.msk.bf16.gmra.mxu3 %vm260_vm0, %v4697_v36  ;;  %v5374_v36 = vpop.f32.mrf.mxu0 }
  0xe9   :  { %8113 = vst [vmem:[#allocation54_spill] sm:$0xff] %v5374_v36 }
  0xea   :  { %v5285_v15 = vpop.f32.mrf.mxu2 }
  0xeb   :  { %8090 = vst [vmem:[#allocation31_spill] sm:$0xff] %v5285_v15  ;;  %v5289_v16 = vpop.f32.mrf.mxu3 }
  0xec   :  { %8091 = vst [vmem:[#allocation32_spill] sm:$0xff] %v5289_v16 }
  0xed   :  { %v5396_v45 = vpop.f32.mrf.mxu1 }
  0xee   :  { %8120 = vst [vmem:[#allocation61_spill] sm:$0xff] %v5396_v45 }
  0xf2   :  { %v5303_v21 = vpop.f32.mrf.mxu2 }
  0xf3   :  { %8094 = vst [vmem:[#allocation35_spill] sm:$0xff] %v5303_v21  ;;  %v5305_v22 = vpop.f32.mrf.mxu3 }
  0xf4   :  { %8095 = vst [vmem:[#allocation36_spill] sm:$0xff] %v5305_v22 }
  0xf7   :  { %747 = vmatmul.f32.vlgmr.msrb.gmra.mxu2 %v5234_v42 }
  0xf8   :  { %4410 = vmatmul.msk.bf16.gmra.mxu3 %vm260_vm0, %v4698_v7  ;;  %4703 = vmatpush.msrb.mxu2 %v5067_v39  ;;  %v4679_v39 = vld [vmem:[%s7839_s0 + $0x60] sm:$0xff]  ;;  %v5389_v7 = vpop.f32.mrf.mxu0 }
  0xf9   :  { %4359 = vmatmul.msk.bf16.gmra.mxu0 %vm260_vm0, %v4679_v39  ;;  %4391 = vmatmul.msk.bf16.gmra.mxu1 %vm260_vm0, %v4679_v39  ;;  %8117 = vst [vmem:[#allocation58_spill] sm:$0xff] %v5389_v7 }
  0xfa   :  { %v5323_v29 = vpop.f32.mrf.mxu2  ;;  %4704 = vmatpush.msrb.mxu2 %v727_v40  ;;  %v4680_v40 = vld [vmem:[%s7839_s0 + $0x68] sm:$0xff] }
  0xfb   :  { %8098 = vst [vmem:[#allocation39_spill] sm:$0xff] %v5323_v29  ;;  %v5327_v31 = vpop.f32.mrf.mxu3 }
  0xfc   :  { %8099 = vst [vmem:[#allocation40_spill] sm:$0xff] %v5327_v31 }
  0xff   :  { %750 = vmatmul.f32.gmra.mxu2 %v5256_v10 }
 0x100   :  { %v5399_v57 = vpop.f32.mrf.mxu0 }
 0x101   :  { %8121 = vst [vmem:[#allocation62_spill] sm:$0xff] %v5399_v57 }
 0x102   :  { %v5334_v37 = vpop.f32.mrf.mxu2 }
 0x103   :  { %8102 = vst [vmem:[#allocation43_spill] sm:$0xff] %v5334_v37  ;;  %v5336_v41 = vpop.f32.mrf.mxu3 }
 0x104   :  { %8103 = vst [vmem:[#allocation44_spill] sm:$0xff] %v5336_v41 }
 0x107   :  { %753 = vmatmul.f32.gmra.mxu2 %v5276_v12 }
 0x108   :  { %956 = vmatmul.f32.vlgmr.msrb.gmra.mxu3 %v5250_v58 }
 0x109   :  { %4360 = vmatmul.msk.bf16.gmra.mxu0 %vm260_vm0, %v4680_v40  ;;  %4392 = vmatmul.msk.bf16.gmra.mxu1 %vm260_vm0, %v4680_v40  ;;  %v4681_v40 = vld [vmem:[%s7839_s0 + $0x70] sm:$0xff] }
 0x10a   :  { %v5351_v59 = vpop.f32.mrf.mxu2 }
 0x10b   :  { %8106 = vst [vmem:[#allocation47_spill] sm:$0xff] %v5351_v59  ;;  %v5355_v1 = vpop.f32.mrf.mxu3 }
 0x10c   :  { %8107 = vst [vmem:[#allocation48_spill] sm:$0xff] %v5355_v1 }
 0x10f   :  { %756 = vmatmul.f32.gmra.mxu2 %v5297_v19 }
 0x110   :  { %959 = vmatmul.f32.gmra.mxu3 %v5269_v11 }
 0x112   :  { %v5367_v20 = vpop.f32.mrf.mxu2 }
 0x113   :  { %8110 = vst [vmem:[#allocation51_spill] sm:$0xff] %v5367_v20  ;;  %v5369_v23 = vpop.f32.mrf.mxu3 }
 0x114   :  { %8111 = vst [vmem:[#allocation52_spill] sm:$0xff] %v5369_v23 }
 0x117   :  { %759 = vmatmul.f32.gmra.mxu2 %v5314_v25 }
 0x118   :  { %962 = vmatmul.f32.gmra.mxu3 %v5291_v18 }
 0x119   :  { %4361 = vmatmul.msk.bf16.gmra.mxu0 %vm260_vm0, %v4681_v40  ;;  %4393 = vmatmul.msk.bf16.gmra.mxu1 %vm260_vm0, %v4681_v40  ;;  %v4682_v40 = vld [vmem:[%s7839_s0 + $0x78] sm:$0xff] }
 0x11a   :  { %v5380_v38 = vpop.f32.mrf.mxu2 }
 0x11b   :  { %8114 = vst [vmem:[#allocation55_spill] sm:$0xff] %v5380_v38  ;;  %v5384_v48 = vpop.f32.mrf.mxu3 }
 0x11c   :  { %8115 = vst [vmem:[#allocation56_spill] sm:$0xff] %v5384_v48 }
 0x11f   :  { %762 = vmatmul.f32.gmra.mxu2 %v5332_v35  ;;  %v5411_v35 = vpop.f32.mrf.mxu1 }
 0x120   :  { %965 = vmatmul.f32.gmra.mxu3 %v5307_v24  ;;  %8124 = vst [vmem:[#allocation65_spill] sm:$0xff] %v5411_v35 }
 0x122   :  { %v5392_v13 = vpop.f32.mrf.mxu2 }
 0x123   :  { %8118 = vst [vmem:[#allocation59_spill] sm:$0xff] %v5392_v13  ;;  %v5394_v27 = vpop.f32.mrf.mxu3 }
 0x124   :  { %8119 = vst [vmem:[#allocation60_spill] sm:$0xff] %v5394_v27 }
 0x127   :  { %765 = vmatmul.f32.gmra.mxu2 %v5345_v53  ;;  %v5414_v53 = vpop.f32.mrf.mxu0  ;;  %v5424_v11 = vpop.f32.mrf.mxu1 }
 0x128   :  { %968 = vmatmul.f32.gmra.mxu3 %v5329_v33  ;;  %8125 = vst [vmem:[#allocation66_spill] sm:$0xff] %v5414_v53 }
 0x129   :  { %8129 = vst [vmem:[#allocation70_spill] sm:$0xff] %v5424_v11  ;;  %4362 = vmatmul.msk.bf16.gmra.mxu0 %vm260_vm0, %v4682_v40  ;;  %4394 = vmatmul.msk.bf16.gmra.mxu1 %vm260_vm0, %v4682_v40 }
 0x12a   :  { %v5405_v39 = vpop.f32.mrf.mxu2 }
 0x12b   :  { %8122 = vst [vmem:[#allocation63_spill] sm:$0xff] %v5405_v39  ;;  %v5409_v24 = vpop.f32.mrf.mxu3 }
 0x12c   :  { %8123 = vst [vmem:[#allocation64_spill] sm:$0xff] %v5409_v24 }
 0x12f   :  { %768 = vmatmul.f32.gmra.mxu2 %v5364_v17  ;;  %v5422_v25 = vpop.f32.mrf.mxu0  ;;  %v5440_v19 = vpop.f32.mrf.mxu1 }
 0x130   :  { %971 = vmatmul.f32.gmra.mxu3 %v5341_v49  ;;  %8128 = vst [vmem:[#allocation69_spill] sm:$0xff] %v5422_v25 }
 0x131   :  { %8133 = vst [vmem:[#allocation74_spill] sm:$0xff] %v5440_v19 }
 0x132   :  { %v5417_v33 = vpop.f32.mrf.mxu2 }
 0x133   :  { %8126 = vst [vmem:[#allocation67_spill] sm:$0xff] %v5417_v33  ;;  %v5419_v18 = vpop.f32.mrf.mxu3 }
 0x134   :  { %8127 = vst [vmem:[#allocation68_spill] sm:$0xff] %v5419_v18 }
 0x137   :  { %771 = vmatmul.f32.gmra.mxu2 %v5374_v36  ;;  %v5437_v36 = vpop.f32.mrf.mxu0  ;;  %v5459_v10 = vpop.f32.mrf.mxu1 }
 0x138   :  { %974 = vmatmul.f32.gmra.mxu3 %v5360_v2  ;;  %8132 = vst [vmem:[#allocation73_spill] sm:$0xff] %v5437_v36 }
 0x139   :  { %8139 = vst [vmem:[#allocation80_spill] sm:$0xff] %v5459_v10  ;;  %4363 = vmatmul.msk.bf16.gmra.mxu0 %vm260_vm0, %v4896_v9 }
 0x13a   :  { %v5430_v17 = vpop.f32.mrf.mxu2 }
 0x13b   :  { %8130 = vst [vmem:[#allocation71_spill] sm:$0xff] %v5430_v17  ;;  %v5434_v49 = vpop.f32.mrf.mxu3 }
 0x13c   :  { %8131 = vst [vmem:[#allocation72_spill] sm:$0xff] %v5434_v49 }
 0x13f   :  { %774 = vmatmul.f32.gmra.mxu2 %v5389_v7  ;;  %v5447_v12 = vpop.f32.mrf.mxu0 }
 0x140   :  { %977 = vmatmul.f32.gmra.mxu3 %v5371_v26  ;;  %8136 = vst [vmem:[#allocation77_spill] sm:$0xff] %v5447_v12 }
 0x142   :  { %v5442_v2 = vpop.f32.mrf.mxu2 }
 0x143   :  { %8134 = vst [vmem:[#allocation75_spill] sm:$0xff] %v5442_v2  ;;  %v5444_v58 = vpop.f32.mrf.mxu3 }
 0x144   :  { %8135 = vst [vmem:[#allocation76_spill] sm:$0xff] %v5444_v58  ;;  %v5469_v58 = vpop.f32.mrf.mxu1 }
 0x145   :  { %8143 = vst [vmem:[#allocation84_spill] sm:$0xff] %v5469_v58 }
 0x147   :  { %777 = vmatmul.f32.gmra.mxu2 %v5399_v57  ;;  %v5462_v57 = vpop.f32.mrf.mxu0 }
 0x148   :  { %980 = vmatmul.f32.gmra.mxu3 %v5386_v50  ;;  %8140 = vst [vmem:[#allocation81_spill] sm:$0xff] %v5462_v57 }
 0x14a   :  { %v5453_v7 = vpop.f32.mrf.mxu2 }
 0x14b   :  { %8137 = vst [vmem:[#allocation78_spill] sm:$0xff] %v5453_v7  ;;  %v5457_v26 = vpop.f32.mrf.mxu3 }
 0x14c   :  { %8138 = vst [vmem:[#allocation79_spill] sm:$0xff] %v5457_v26 }
 0x14f   :  { %780 = vmatmul.f32.gmra.mxu2 %v5414_v53  ;;  %v5472_v7 = vpop.f32.mrf.mxu0 }
 0x150   :  { %983 = vmatmul.f32.gmra.mxu3 %v5396_v45  ;;  %8144 = vst [vmem:[#allocation85_spill] sm:$0xff] %v5472_v7  ;;  %v5482_v45 = vpop.f32.mrf.mxu1 }
 0x151   :  { %8147 = vst [vmem:[#allocation88_spill] sm:$0xff] %v5482_v45 }
 0x152   :  { %v5465_v50 = vpop.f32.mrf.mxu2 }
 0x153   :  { %8141 = vst [vmem:[#allocation82_spill] sm:$0xff] %v5465_v50  ;;  %v5467_v42 = vpop.f32.mrf.mxu3 }
 0x154   :  { %8142 = vst [vmem:[#allocation83_spill] sm:$0xff] %v5467_v42 }
 0x157   :  { %783 = vmatmul.f32.gmra.mxu2 %v5422_v25  ;;  %v5484_v42 = vpop.f32.mrf.mxu0 }
 0x158   :  { %986 = vmatmul.f32.gmra.mxu3 %v5411_v35  ;;  %8148 = vst [vmem:[#allocation89_spill] sm:$0xff] %v5484_v42  ;;  %v5495_v9 = vpop.f32.mrf.mxu1 }
 0x15a   :  { %v5475_v40 = vpop.f32.mrf.mxu2 }
 0x15b   :  { %8145 = vst [vmem:[#allocation86_spill] sm:$0xff] %v5475_v40  ;;  %v5479_v53 = vpop.f32.mrf.mxu3 }
 0x15c   :  { %8146 = vst [vmem:[#allocation87_spill] sm:$0xff] %v5479_v53 }
 0x15f   :  { %786 = vmatmul.f32.gmra.mxu2 %v5437_v36  ;;  %v5492_v35 = vpop.f32.mrf.mxu0 }
 0x160   :  { %989 = vmatmul.f32.gmra.mxu3 %v5424_v11  ;;  %8151 = vst [vmem:[#allocation92_spill] sm:$0xff] %v5492_v35 }
 0x162   :  { %v5487_v25 = vpop.f32.mrf.mxu2 }
 0x163   :  { %8149 = vst [vmem:[#allocation90_spill] sm:$0xff] %v5487_v25  ;;  %v5489_v50 = vpop.f32.mrf.mxu3 }
 0x164   :  { %8150 = vst [vmem:[#allocation91_spill] sm:$0xff] %v5489_v50 }
 0x167   :  { %789 = vmatmul.f32.gmra.mxu2 %v5447_v12  ;;  %v5503_v11 = vpop.f32.mrf.mxu0  ;;  %v5509_v12 = vpop.f32.mrf.mxu1 }
 0x168   :  { %992 = vmatmul.f32.gmra.mxu3 %v5440_v19  ;;  %8154 = vst [vmem:[#allocation95_spill] sm:$0xff] %v5503_v11 }
 0x169   :  { %8157 = vst [vmem:[#allocation98_spill] sm:$0xff] %v5509_v12 }
 0x16a   :  { %v5497_v53 = vpop.f32.mrf.mxu2 }
 0x16b   :  { %8152 = vst [vmem:[#allocation93_spill] sm:$0xff] %v5497_v53  ;;  %v5499_v36 = vpop.f32.mrf.mxu3 }
 0x16c   :  { %8153 = vst [vmem:[#allocation94_spill] sm:$0xff] %v5499_v36 }
 0x16f   :  { %792 = vmatmul.f32.gmra.mxu2 %v5462_v57  ;;  %v5513_v53 = vpop.f32.mrf.mxu0  ;;  %v5517_v57 = vpop.f32.mrf.mxu1 }
 0x170   :  { %995 = vmatmul.f32.gmra.mxu3 %v5459_v10  ;;  %8158 = vst [vmem:[#allocation99_spill] sm:$0xff] %v5513_v53 }
 0x171   :  { %8160 = vst [vmem:[#allocation101_spill] sm:$0xff] %v5517_v57 }
 0x172   :  { %v5505_v25 = vpop.f32.mrf.mxu2 }
 0x173   :  { %8155 = vst [vmem:[#allocation96_spill] sm:$0xff] %v5505_v25  ;;  %v5507_v50 = vpop.f32.mrf.mxu3 }
 0x174   :  { %8156 = vst [vmem:[#allocation97_spill] sm:$0xff] %v5507_v50 }
 0x177   :  { %795 = vmatmul.f32.gmra.mxu2 %v5472_v7  ;;  %v5523_v50 = vpop.f32.mrf.mxu0  ;;  %v5526_v7 = vpop.f32.mrf.mxu1 }
 0x178   :  { %998 = vmatmul.f32.gmra.mxu3 %v5469_v58  ;;  %8162 = vst [vmem:[#allocation103_spill] sm:$0xff] %v5523_v50 }
 0x17a   :  { %v748_v19 = vpop.f32.mrf.mxu2 }
 0x17b   :  { %v5515_v36 = vpop.f32.mrf.mxu3 }
 0x17c   :  { %8159 = vst [vmem:[#allocation100_spill] sm:$0xff] %v5515_v36 }
 0x17f   :  { %798 = vmatmul.f32.gmra.mxu2 %v5484_v42  ;;  %v5531_v42 = vpop.f32.mrf.mxu0 }
 0x180   :  { %1001 = vmatmul.f32.gmra.mxu3 %v5482_v45  ;;  %8163 = vst [vmem:[#allocation104_spill] sm:$0xff] %v5531_v42  ;;  %v5535_v45 = vpop.f32.mrf.mxu1 }
 0x181   :  { %8164 = vst [vmem:[#allocation105_spill] sm:$0xff] %v5535_v45 }
 0x182   :  { %v751_v10 = vpop.f32.mrf.mxu2 }
 0x183   :  { %v5521_v25 = vpop.f32.mrf.mxu3 }
 0x184   :  { %8161 = vst [vmem:[#allocation102_spill] sm:$0xff] %v5521_v25 }
 0x187   :  { %801 = vmatmul.f32.gmra.mxu2 %v5492_v35 }
 0x188   :  { %1004 = vmatmul.f32.gmra.mxu3 %v5495_v9 }
 0x18a   :  { %v754_v58 = vpop.f32.mrf.mxu2 }
 0x18b   :  { %v957_v40 = vpop.f32.mrf.mxu3 }
 0x18c   :  { %v958_v36 = vadd.f32 %v957_v40, %v748_v19  ;;  %v5541_v19 = vpop.f32.mrf.mxu0 }
 0x18d   :  { %8165 = vst [vmem:[#allocation106_spill] sm:$0xff] %v5541_v19 }
 0x18e   :  { %4411 = vmatmul.msk.f32.vlgmr.msrb.gmra.mxu0 %vm260_vm0, %v958_v36  ;;  %4475 = vmatmul.msk.f32.vlgmr.msrb.gmra.mxu1 %vm260_vm0, %v958_v36 }
 0x18f   :  { %804 = vmatmul.f32.gmra.mxu2 %v5503_v11  ;;  %v5543_v11 = vpop.f32.mrf.mxu1 }
 0x190   :  { %1007 = vmatmul.f32.gmra.mxu3 %v5509_v12 }
 0x192   :  { %v757_v35 = vpop.f32.mrf.mxu2 }
 0x193   :  { %v960_v25 = vpop.f32.mrf.mxu3 }
 0x194   :  { %v961_v26 = vadd.f32 %v960_v25, %v751_v10  ;;  %v5549_v25 = vpop.f32.mrf.mxu0 }
 0x195   :  { %8166 = vst [vmem:[#allocation107_spill] sm:$0xff] %v5549_v25 }
 0x196   :  { %4412 = vmatmul.msk.f32.gmra.mxu0 %vm260_vm0, %v961_v26  ;;  %4476 = vmatmul.msk.f32.gmra.mxu1 %vm260_vm0, %v961_v26 }
 0x197   :  { %807 = vmatmul.f32.gmra.mxu2 %v5513_v53  ;;  %v5551_v53 = vpop.f32.mrf.mxu1 }
 0x198   :  { %1010 = vmatmul.f32.gmra.mxu3 %v5517_v57  ;;  %8167 = vst [vmem:[#allocation108_spill] sm:$0xff] %v5551_v53 }
 0x19a   :  { %v760_v36 = vpop.f32.mrf.mxu2 }
 0x19b   :  { %v963_v40 = vpop.f32.mrf.mxu3 }
 0x19c   :  { %v964_v12 = vadd.f32 %v963_v40, %v754_v58 }
 0x19e   :  { %4413 = vmatmul.msk.f32.gmra.mxu0 %vm260_vm0, %v964_v12  ;;  %4477 = vmatmul.msk.f32.gmra.mxu1 %vm260_vm0, %v964_v12 }
 0x19f   :  { %810 = vmatmul.f32.gmra.mxu2 %v5523_v50  ;;  %v5557_v50 = vpop.f32.mrf.mxu0 }
 0x1a0   :  { %1013 = vmatmul.f32.gmra.mxu3 %v5526_v7  ;;  %8168 = vst [vmem:[#allocation109_spill] sm:$0xff] %v5557_v50 }
 0x1a2   :  { %v763_v10 = vpop.f32.mrf.mxu2 }
 0x1a3   :  { %v966_v26 = vpop.f32.mrf.mxu3 }
 0x1a4   :  { %v967_v57 = vadd.f32 %v966_v26, %v757_v35  ;;  %v5562_v35 = vpop.f32.mrf.mxu1 }
 0x1a5   :  { %8169 = vst [vmem:[#allocation110_spill] sm:$0xff] %v5562_v35 }
 0x1a6   :  { %4414 = vmatmul.msk.f32.gmra.mxu0 %vm260_vm0, %v967_v57  ;;  %4478 = vmatmul.msk.f32.gmra.mxu1 %vm260_vm0, %v967_v57 }
 0x1a7   :  { %813 = vmatmul.f32.gmra.mxu2 %v5531_v42 }
 0x1a8   :  { %1016 = vmatmul.f32.gmra.mxu3 %v5535_v45 }
 0x1aa   :  { %v766_v58 = vpop.f32.mrf.mxu2 }
 0x1ab   :  { %v969_v12 = vpop.f32.mrf.mxu3 }
 0x1ac   :  { %v970_v40 = vadd.f32 %v969_v12, %v760_v36  ;;  %v5567_v36 = vpop.f32.mrf.mxu0  ;;  %v5571_v12 = vpop.f32.mrf.mxu1 }
 0x1ad   :  { %8170 = vst [vmem:[#allocation111_spill] sm:$0xff] %v5567_v36 }
 0x1ae   :  { %4415 = vmatmul.msk.f32.gmra.mxu0 %vm260_vm0, %v970_v40  ;;  %4479 = vmatmul.msk.f32.gmra.mxu1 %vm260_vm0, %v970_v40  ;;  %8171 = vst [vmem:[#allocation112_spill] sm:$0xff] %v5571_v12 }
 0x1af   :  { %816 = vmatmul.f32.gmra.mxu2 %v5541_v19 }
 0x1b0   :  { %1019 = vmatmul.f32.gmra.mxu3 %v5543_v11 }
 0x1b2   :  { %v769_v57 = vpop.f32.mrf.mxu2 }
 0x1b3   :  { %v972_v26 = vpop.f32.mrf.mxu3 }
 0x1b4   :  { %v973_v42 = vadd.f32 %v972_v26, %v763_v10 }
 0x1b6   :  { %4416 = vmatmul.msk.f32.gmra.mxu0 %vm260_vm0, %v973_v42  ;;  %4480 = vmatmul.msk.f32.gmra.mxu1 %vm260_vm0, %v973_v42  ;;  %v5577_v42 = vpop.f32.mrf.mxu0 }
 0x1b7   :  { %819 = vmatmul.f32.gmra.mxu2 %v5549_v25  ;;  %8172 = vst [vmem:[#allocation113_spill] sm:$0xff] %v5577_v42  ;;  %v5579_v25 = vpop.f32.mrf.mxu1 }
 0x1b8   :  { %1022 = vmatmul.f32.gmra.mxu3 %v5551_v53  ;;  %8173 = vst [vmem:[#allocation114_spill] sm:$0xff] %v5579_v25 }
 0x1ba   :  { %v772_v40 = vpop.f32.mrf.mxu2 }
 0x1bb   :  { %v975_v19 = vpop.f32.mrf.mxu3 }
 0x1bc   :  { %v976_v45 = vadd.f32 %v975_v19, %v766_v58 }
 0x1be   :  { %4417 = vmatmul.msk.f32.gmra.mxu0 %vm260_vm0, %v976_v45  ;;  %4481 = vmatmul.msk.f32.gmra.mxu1 %vm260_vm0, %v976_v45  ;;  %v5585_v19 = vpop.f32.mrf.mxu0 }
 0x1bf   :  { %822 = vmatmul.f32.gmra.mxu2 %v5557_v50  ;;  %8174 = vst [vmem:[#allocation115_spill] sm:$0xff] %v5585_v19  ;;  %v5587_v50 = vpop.f32.mrf.mxu1 }
 0x1c0   :  { %1025 = vmatmul.f32.gmra.mxu3 %v5562_v35  ;;  %8175 = vst [vmem:[#allocation116_spill] sm:$0xff] %v5587_v50 }
 0x1c2   :  { %v775_v10 = vpop.f32.mrf.mxu2 }
 0x1c3   :  { %v978_v26 = vpop.f32.mrf.mxu3 }
 0x1c4   :  { %v979_v53 = vadd.f32 %v978_v26, %v769_v57 }
 0x1c6   :  { %4418 = vmatmul.msk.f32.gmra.mxu0 %vm260_vm0, %v979_v53  ;;  %4482 = vmatmul.msk.f32.gmra.mxu1 %vm260_vm0, %v979_v53 }
 0x1c7   :  { %825 = vmatmul.f32.gmra.mxu2 %v5567_v36  ;;  %v5593_v36 = vpop.f32.mrf.mxu0 }
 0x1c8   :  { %1028 = vmatmul.f32.gmra.mxu3 %v5571_v12  ;;  %8176 = vst [vmem:[#allocation117_spill] sm:$0xff] %v5593_v36 }
 0x1ca   :  { %v778_v45 = vpop.f32.mrf.mxu2 }
 0x1cb   :  { %v981_v58 = vpop.f32.mrf.mxu3 }
 0x1cc   :  { %v982_v35 = vadd.f32 %v981_v58, %v772_v40  ;;  %v5597_v40 = vpop.f32.mrf.mxu1 }
 0x1cd   :  { %8177 = vst [vmem:[#allocation118_spill] sm:$0xff] %v5597_v40 }
 0x1ce   :  { %4419 = vmatmul.msk.f32.gmra.mxu0 %vm260_vm0, %v982_v35  ;;  %4483 = vmatmul.msk.f32.gmra.mxu1 %vm260_vm0, %v982_v35 }
 0x1cf   :  { %828 = vmatmul.f32.gmra.mxu2 %v5577_v42 }
 0x1d0   :  { %1031 = vmatmul.f32.gmra.mxu3 %v5579_v25 }
 0x1d2   :  { %v781_v53 = vpop.f32.mrf.mxu2 }
 0x1d3   :  { %v984_v57 = vpop.f32.mrf.mxu3 }
 0x1d4   :  { %v985_v26 = vadd.f32 %v984_v57, %v775_v10  ;;  %v5603_v10 = vpop.f32.mrf.mxu0  ;;  %v5607_v57 = vpop.f32.mrf.mxu1 }
 0x1d5   :  { %8178 = vst [vmem:[#allocation119_spill] sm:$0xff] %v5603_v10 }
 0x1d6   :  { %4420 = vmatmul.msk.f32.gmra.mxu0 %vm260_vm0, %v985_v26  ;;  %4484 = vmatmul.msk.f32.gmra.mxu1 %vm260_vm0, %v985_v26  ;;  %8179 = vst [vmem:[#allocation120_spill] sm:$0xff] %v5607_v57 }
 0x1d7   :  { %831 = vmatmul.f32.gmra.mxu2 %v5585_v19 }
 0x1d8   :  { %1034 = vmatmul.f32.gmra.mxu3 %v5587_v50 }
 0x1da   :  { %v784_v35 = vpop.f32.mrf.mxu2 }
 0x1db   :  { %v987_v58 = vpop.f32.mrf.mxu3 }
 0x1dc   :  { %v988_v42 = vadd.f32 %v987_v58, %v778_v45  ;;  %v5615_v58 = vpop.f32.mrf.mxu1 }
 0x1dd   :  { %8181 = vst [vmem:[#allocation122_spill] sm:$0xff] %v5615_v58 }
 0x1de   :  { %4421 = vmatmul.msk.f32.gmra.mxu0 %vm260_vm0, %v988_v42  ;;  %4485 = vmatmul.msk.f32.gmra.mxu1 %vm260_vm0, %v988_v42  ;;  %v5613_v42 = vpop.f32.mrf.mxu0 }
 0x1df   :  { %834 = vmatmul.f32.gmra.mxu2 %v5593_v36  ;;  %8180 = vst [vmem:[#allocation121_spill] sm:$0xff] %v5613_v42 }
 0x1e0   :  { %1037 = vmatmul.f32.gmra.mxu3 %v5597_v40 }
 0x1e2   :  { %v787_v26 = vpop.f32.mrf.mxu2 }
 0x1e3   :  { %v990_v25 = vpop.f32.mrf.mxu3 }
 0x1e4   :  { %v991_v19 = vadd.f32 %v990_v25, %v781_v53 }
 0x1e6   :  { %4422 = vmatmul.msk.f32.gmra.mxu0 %vm260_vm0, %v991_v19  ;;  %4486 = vmatmul.msk.f32.gmra.mxu1 %vm260_vm0, %v991_v19  ;;  %v5621_v19 = vpop.f32.mrf.mxu0 }
 0x1e7   :  { %837 = vmatmul.f32.gmra.mxu2 %v5603_v10  ;;  %8182 = vst [vmem:[#allocation123_spill] sm:$0xff] %v5621_v19  ;;  %v5623_v10 = vpop.f32.mrf.mxu1 }
 0x1e8   :  { %1040 = vmatmul.f32.gmra.mxu3 %v5607_v57  ;;  %8183 = vst [vmem:[#allocation124_spill] sm:$0xff] %v5623_v10 }
 0x1ea   :  { %v790_v45 = vpop.f32.mrf.mxu2 }
 0x1eb   :  { %v993_v36 = vpop.f32.mrf.mxu3 }
 0x1ec   :  { %v994_v40 = vadd.f32 %v993_v36, %v784_v35 }
 0x1ee   :  { %4423 = vmatmul.msk.f32.gmra.mxu0 %vm260_vm0, %v994_v40  ;;  %4487 = vmatmul.msk.f32.gmra.mxu1 %vm260_vm0, %v994_v40 }
 0x1ef   :  { %840 = vmatmul.f32.gmra.mxu2 %v5613_v42  ;;  %v5629_v42 = vpop.f32.mrf.mxu0 }
 0x1f0   :  { %1043 = vmatmul.f32.gmra.mxu3 %v5615_v58  ;;  %8184 = vst [vmem:[#allocation125_spill] sm:$0xff] %v5629_v42 }
 0x1f2   :  { %v793_v25 = vpop.f32.mrf.mxu2 }
 0x1f3   :  { %v996_v53 = vpop.f32.mrf.mxu3 }
 0x1f4   :  { %v997_v57 = vadd.f32 %v996_v53, %v787_v26  ;;  %v5633_v26 = vpop.f32.mrf.mxu1 }
 0x1f5   :  { %8185 = vst [vmem:[#allocation126_spill] sm:$0xff] %v5633_v26 }
 0x1f6   :  { %4424 = vmatmul.msk.f32.gmra.mxu0 %vm260_vm0, %v997_v57  ;;  %4488 = vmatmul.msk.f32.gmra.mxu1 %vm260_vm0, %v997_v57 }
 0x1f7   :  { %843 = vmatmul.f32.gmra.mxu2 %v5621_v19 }
 0x1f8   :  { %1046 = vmatmul.f32.gmra.mxu3 %v5623_v10 }
 0x1fa   :  { %v796_v36 = vpop.f32.mrf.mxu2 }
 0x1fb   :  { %v999_v40 = vpop.f32.mrf.mxu3 }
 0x1fc   :  { %v1000_v35 = vadd.f32 %v999_v40, %v790_v45 }
 0x1fe   :  { %4425 = vmatmul.msk.f32.gmra.mxu0 %vm260_vm0, %v1000_v35  ;;  %4489 = vmatmul.msk.f32.gmra.mxu1 %vm260_vm0, %v1000_v35 }
 0x1ff   :  { %846 = vmatmul.f32.gmra.mxu2 %v5629_v42 }
 0x200   :  { %1049 = vmatmul.f32.gmra.mxu3 %v5633_v26 }
 0x202   :  { %v799_v57 = vpop.f32.mrf.mxu2 }
 0x203   :  { %v1002_v53 = vpop.f32.mrf.mxu3 }
 0x204   :  { %v1003_v19 = vadd.f32 %v1002_v53, %v793_v25 }
 0x206   :  { %4426 = vmatmul.msk.f32.gmra.mxu0 %vm260_vm0, %v1003_v19  ;;  %4490 = vmatmul.msk.f32.gmra.mxu1 %vm260_vm0, %v1003_v19 }
 0x207   :  { %849 = vmatmul.f32.gmra.mxu2 %v5087_v43 }
 0x208   :  { %1052 = vmatmul.f32.gmra.mxu3 %v5091_v44 }
 0x20a   :  { %v802_v45 = vpop.f32.mrf.mxu2 }
 0x20b   :  { %v1005_v40 = vpop.f32.mrf.mxu3  ;;  %v5641_v35 = vpop.f32.mrf.mxu0 }
 0x20c   :  { %v1006_v10 = vadd.f32 %v1005_v40, %v796_v36  ;;  %v5643_v58 = vpop.f32.mrf.mxu1 }
 0x20e   :  { %4427 = vmatmul.msk.f32.gmra.mxu0 %vm260_vm0, %v1006_v10  ;;  %4491 = vmatmul.msk.f32.gmra.mxu1 %vm260_vm0, %v1006_v10 }
 0x20f   :  { %852 = vmatmul.f32.gmra.mxu2 %v5099_v46 }
 0x210   :  { %1055 = vmatmul.f32.gmra.mxu3 %v5101_v47 }
 0x212   :  { %v805_v25 = vpop.f32.mrf.mxu2 }
 0x213   :  { %v1008_v19 = vpop.f32.mrf.mxu3  ;;  %v5649_v53 = vpop.f32.mrf.mxu0 }
 0x214   :  { %v1009_v44 = vadd.f32 %v1008_v19, %v799_v57  ;;  %v5651_v43 = vpop.f32.mrf.mxu1 }
 0x216   :  { %4428 = vmatmul.msk.f32.gmra.mxu0 %vm260_vm0, %v1009_v44  ;;  %4492 = vmatmul.msk.f32.gmra.mxu1 %vm260_vm0, %v1009_v44 }
 0x217   :  { %855 = vmatmul.f32.gmra.mxu2 %v5117_v51 }
 0x218   :  { %1058 = vmatmul.f32.gmra.mxu3 %v5121_v52 }
 0x21a   :  { %v808_v10 = vpop.f32.mrf.mxu2 }
 0x21b   :  { %v1011_v36 = vpop.f32.mrf.mxu3  ;;  %v5657_v40 = vpop.f32.mrf.mxu0 }
 0x21c   :  { %v1012_v47 = vadd.f32 %v1011_v36, %v802_v45  ;;  %v5659_v46 = vpop.f32.mrf.mxu1 }
 0x21e   :  { %4429 = vmatmul.msk.f32.gmra.mxu0 %vm260_vm0, %v1012_v47  ;;  %4493 = vmatmul.msk.f32.gmra.mxu1 %vm260_vm0, %v1012_v47 }
 0x21f   :  { %858 = vmatmul.f32.gmra.mxu2 %v5129_v54 }
 0x220   :  { %1061 = vmatmul.f32.gmra.mxu3 %v5131_v55 }
 0x222   :  { %v811_v44 = vpop.f32.mrf.mxu2 }
 0x223   :  { %v1014_v57 = vpop.f32.mrf.mxu3  ;;  %v5665_v19 = vpop.f32.mrf.mxu0 }
 0x224   :  { %v1015_v52 = vadd.f32 %v1014_v57, %v805_v25  ;;  %v5667_v51 = vpop.f32.mrf.mxu1 }
 0x226   :  { %4430 = vmatmul.msk.f32.gmra.mxu0 %vm260_vm0, %v1015_v52  ;;  %4494 = vmatmul.msk.f32.gmra.mxu1 %vm260_vm0, %v1015_v52 }
 0x227   :  { %861 = vmatmul.f32.gmra.mxu2 %v5153_v60 }
 0x228   :  { %1064 = vmatmul.f32.gmra.mxu3 %v5157_v61 }
 0x22a   :  { %v814_v47 = vpop.f32.mrf.mxu2 }
 0x22b   :  { %v1017_v45 = vpop.f32.mrf.mxu3  ;;  %v5673_v36 = vpop.f32.mrf.mxu0 }
 0x22c   :  { %v1018_v55 = vadd.f32 %v1017_v45, %v808_v10  ;;  %v5675_v54 = vpop.f32.mrf.mxu1 }
 0x22e   :  { %4431 = vmatmul.msk.f32.gmra.mxu0 %vm260_vm0, %v1018_v55  ;;  %4495 = vmatmul.msk.f32.gmra.mxu1 %vm260_vm0, %v1018_v55 }
 0x22f   :  { %864 = vmatmul.f32.gmra.mxu2 %v5159_v62 }
 0x230   :  { %1067 = vmatmul.f32.gmra.mxu3 %v5161_v63 }
 0x232   :  { %v817_v52 = vpop.f32.mrf.mxu2 }
 0x233   :  { %v1020_v25 = vpop.f32.mrf.mxu3  ;;  %v5681_v57 = vpop.f32.mrf.mxu0 }
 0x234   :  { %v1021_v61 = vadd.f32 %v1020_v25, %v811_v44  ;;  %v5683_v60 = vpop.f32.mrf.mxu1 }
 0x236   :  { %4432 = vmatmul.msk.f32.gmra.mxu0 %vm260_vm0, %v1021_v61  ;;  %4496 = vmatmul.msk.f32.gmra.mxu1 %vm260_vm0, %v1021_v61 }
 0x237   :  { %867 = vmatmul.f32.gmra.mxu2 %v5183_v4 }
 0x238   :  { %1070 = vmatmul.f32.gmra.mxu3 %v5187_v5 }
 0x23a   :  { %v820_v55 = vpop.f32.mrf.mxu2 }
 0x23b   :  { %v1023_v10 = vpop.f32.mrf.mxu3  ;;  %v5689_v45 = vpop.f32.mrf.mxu0 }
 0x23c   :  { %v1024_v63 = vadd.f32 %v1023_v10, %v814_v47  ;;  %v5691_v62 = vpop.f32.mrf.mxu1 }
 0x23e   :  { %4433 = vmatmul.msk.f32.gmra.mxu0 %vm260_vm0, %v1024_v63  ;;  %4497 = vmatmul.msk.f32.gmra.mxu1 %vm260_vm0, %v1024_v63 }
 0x23f   :  { %870 = vmatmul.f32.gmra.mxu2 %v5189_v6 }
 0x240   :  { %1073 = vmatmul.f32.gmra.mxu3 %v5191_v14 }
 0x242   :  { %v823_v61 = vpop.f32.mrf.mxu2 }
 0x243   :  { %v1026_v44 = vpop.f32.mrf.mxu3  ;;  %v5697_v25 = vpop.f32.mrf.mxu0 }
 0x244   :  { %v1027_v5 = vadd.f32 %v1026_v44, %v817_v52  ;;  %v5699_v4 = vpop.f32.mrf.mxu1 }
 0x246   :  { %4434 = vmatmul.msk.f32.gmra.mxu0 %vm260_vm0, %v1027_v5  ;;  %4498 = vmatmul.msk.f32.gmra.mxu1 %vm260_vm0, %v1027_v5 }
 0x247   :  { %873 = vmatmul.f32.gmra.mxu2 %v5213_v28 }
 0x248   :  { %1076 = vmatmul.f32.gmra.mxu3 %v5217_v30 }
 0x24a   :  { %v826_v63 = vpop.f32.mrf.mxu2 }
 0x24b   :  { %v1029_v47 = vpop.f32.mrf.mxu3  ;;  %v5705_v10 = vpop.f32.mrf.mxu0 }
 0x24c   :  { %v1030_v14 = vadd.f32 %v1029_v47, %v820_v55  ;;  %v5707_v6 = vpop.f32.mrf.mxu1 }
 0x24e   :  { %4435 = vmatmul.msk.f32.gmra.mxu0 %vm260_vm0, %v1030_v14  ;;  %4499 = vmatmul.msk.f32.gmra.mxu1 %vm260_vm0, %v1030_v14 }
 0x24f   :  { %876 = vmatmul.f32.gmra.mxu2 %v5219_v32 }
 0x250   :  { %1079 = vmatmul.f32.gmra.mxu3 %v5221_v34 }
 0x252   :  { %v829_v5 = vpop.f32.mrf.mxu2 }
 0x253   :  { %v1032_v52 = vpop.f32.mrf.mxu3  ;;  %v5713_v44 = vpop.f32.mrf.mxu0 }
 0x254   :  { %v1033_v30 = vadd.f32 %v1032_v52, %v823_v61  ;;  %v5715_v28 = vpop.f32.mrf.mxu1 }
 0x256   :  { %4436 = vmatmul.msk.f32.gmra.mxu0 %vm260_vm0, %v1033_v30  ;;  %4500 = vmatmul.msk.f32.gmra.mxu1 %vm260_vm0, %v1033_v30 }
 0x257   :  { %879 = vmatmul.f32.gmra.mxu2 %v5244_v56 }
 0x258   :  { %1082 = vmatmul.f32.gmra.mxu3 %v5248_v8 }
 0x25a   :  { %v832_v14 = vpop.f32.mrf.mxu2 }
 0x25b   :  { %v1035_v55 = vpop.f32.mrf.mxu3  ;;  %v5721_v47 = vpop.f32.mrf.mxu0 }
 0x25c   :  { %v1036_v34 = vadd.f32 %v1035_v55, %v826_v63  ;;  %v5723_v32 = vpop.f32.mrf.mxu1 }
 0x25e   :  { %4437 = vmatmul.msk.f32.gmra.mxu0 %vm260_vm0, %v1036_v34  ;;  %4501 = vmatmul.msk.f32.gmra.mxu1 %vm260_vm0, %v1036_v34 }
 0x25f   :  { %882 = vmatmul.f32.gmra.mxu2 %v5262_v0 }
 0x260   :  { %1085 = vmatmul.f32.gmra.mxu3 %v5264_v3 }
 0x262   :  { %v835_v30 = vpop.f32.mrf.mxu2 }
 0x263   :  { %v1038_v61 = vpop.f32.mrf.mxu3  ;;  %v5729_v52 = vpop.f32.mrf.mxu0 }
 0x264   :  { %v1039_v8 = vadd.f32 %v1038_v61, %v829_v5  ;;  %v5731_v56 = vpop.f32.mrf.mxu1 }
 0x266   :  { %4438 = vmatmul.msk.f32.gmra.mxu0 %vm260_vm0, %v1039_v8  ;;  %4502 = vmatmul.msk.f32.gmra.mxu1 %vm260_vm0, %v1039_v8 }
 0x267   :  { %885 = vmatmul.f32.gmra.mxu2 %v5285_v15 }
 0x268   :  { %1088 = vmatmul.f32.gmra.mxu3 %v5289_v16 }
 0x26a   :  { %v838_v34 = vpop.f32.mrf.mxu2 }
 0x26b   :  { %v1041_v63 = vpop.f32.mrf.mxu3  ;;  %v5737_v55 = vpop.f32.mrf.mxu0 }
 0x26c   :  { %v1042_v3 = vadd.f32 %v1041_v63, %v832_v14  ;;  %v5739_v0 = vpop.f32.mrf.mxu1 }
 0x26e   :  { %4439 = vmatmul.msk.f32.gmra.mxu0 %vm260_vm0, %v1042_v3  ;;  %4503 = vmatmul.msk.f32.gmra.mxu1 %vm260_vm0, %v1042_v3 }
 0x26f   :  { %888 = vmatmul.f32.gmra.mxu2 %v5303_v21 }
 0x270   :  { %1091 = vmatmul.f32.gmra.mxu3 %v5305_v22 }
 0x272   :  { %v841_v8 = vpop.f32.mrf.mxu2 }
 0x273   :  { %v1044_v5 = vpop.f32.mrf.mxu3  ;;  %v5745_v61 = vpop.f32.mrf.mxu0 }
 0x274   :  { %v1045_v16 = vadd.f32 %v1044_v5, %v835_v30  ;;  %v5747_v15 = vpop.f32.mrf.mxu1 }
 0x276   :  { %4440 = vmatmul.msk.f32.gmra.mxu0 %vm260_vm0, %v1045_v16  ;;  %4504 = vmatmul.msk.f32.gmra.mxu1 %vm260_vm0, %v1045_v16 }
 0x277   :  { %891 = vmatmul.f32.gmra.mxu2 %v5323_v29 }
 0x278   :  { %1094 = vmatmul.f32.gmra.mxu3 %v5327_v31 }
 0x27a   :  { %v844_v3 = vpop.f32.mrf.mxu2 }
 0x27b   :  { %v1047_v14 = vpop.f32.mrf.mxu3  ;;  %v5753_v63 = vpop.f32.mrf.mxu0 }
 0x27c   :  { %v1048_v22 = vadd.f32 %v1047_v14, %v838_v34  ;;  %v5755_v21 = vpop.f32.mrf.mxu1 }
 0x27e   :  { %4441 = vmatmul.msk.f32.gmra.mxu0 %vm260_vm0, %v1048_v22  ;;  %4505 = vmatmul.msk.f32.gmra.mxu1 %vm260_vm0, %v1048_v22 }
 0x27f   :  { %894 = vmatmul.f32.gmra.mxu2 %v5334_v37 }
 0x280   :  { %1097 = vmatmul.f32.gmra.mxu3 %v5336_v41 }
 0x282   :  { %v847_v16 = vpop.f32.mrf.mxu2 }
 0x283   :  { %v1050_v30 = vpop.f32.mrf.mxu3  ;;  %v5761_v5 = vpop.f32.mrf.mxu0 }
 0x284   :  { %v1051_v31 = vadd.f32 %v1050_v30, %v841_v8  ;;  %v5763_v29 = vpop.f32.mrf.mxu1 }
 0x286   :  { %4442 = vmatmul.msk.f32.gmra.mxu0 %vm260_vm0, %v1051_v31  ;;  %4506 = vmatmul.msk.f32.gmra.mxu1 %vm260_vm0, %v1051_v31 }
 0x287   :  { %897 = vmatmul.f32.gmra.mxu2 %v5351_v59 }
 0x288   :  { %1100 = vmatmul.f32.gmra.mxu3 %v5355_v1 }
 0x28a   :  { %v850_v22 = vpop.f32.mrf.mxu2 }
 0x28b   :  { %v1053_v34 = vpop.f32.mrf.mxu3  ;;  %v5769_v14 = vpop.f32.mrf.mxu0 }
 0x28c   :  { %v1054_v41 = vadd.f32 %v1053_v34, %v844_v3  ;;  %v5771_v37 = vpop.f32.mrf.mxu1 }
 0x28e   :  { %4443 = vmatmul.msk.f32.gmra.mxu0 %vm260_vm0, %v1054_v41  ;;  %4507 = vmatmul.msk.f32.gmra.mxu1 %vm260_vm0, %v1054_v41 }
 0x28f   :  { %900 = vmatmul.f32.gmra.mxu2 %v5367_v20 }
 0x290   :  { %1103 = vmatmul.f32.gmra.mxu3 %v5369_v23 }
 0x292   :  { %v853_v31 = vpop.f32.mrf.mxu2 }
 0x293   :  { %v1056_v8 = vpop.f32.mrf.mxu3  ;;  %v5777_v30 = vpop.f32.mrf.mxu0 }
 0x294   :  { %v1057_v1 = vadd.f32 %v1056_v8, %v847_v16  ;;  %v5779_v59 = vpop.f32.mrf.mxu1 }
 0x296   :  { %4444 = vmatmul.msk.f32.gmra.mxu0 %vm260_vm0, %v1057_v1  ;;  %4508 = vmatmul.msk.f32.gmra.mxu1 %vm260_vm0, %v1057_v1 }
 0x297   :  { %903 = vmatmul.f32.gmra.mxu2 %v5380_v38 }
 0x298   :  { %1106 = vmatmul.f32.gmra.mxu3 %v5384_v48 }
 0x29a   :  { %v856_v41 = vpop.f32.mrf.mxu2 }
 0x29b   :  { %v1059_v3 = vpop.f32.mrf.mxu3  ;;  %v5785_v34 = vpop.f32.mrf.mxu0 }
 0x29c   :  { %v1060_v23 = vadd.f32 %v1059_v3, %v850_v22  ;;  %v5787_v20 = vpop.f32.mrf.mxu1 }
 0x29e   :  { %4445 = vmatmul.msk.f32.gmra.mxu0 %vm260_vm0, %v1060_v23  ;;  %4509 = vmatmul.msk.f32.gmra.mxu1 %vm260_vm0, %v1060_v23 }
 0x29f   :  { %906 = vmatmul.f32.gmra.mxu2 %v5392_v13 }
 0x2a0   :  { %1109 = vmatmul.f32.gmra.mxu3 %v5394_v27 }
 0x2a2   :  { %v859_v1 = vpop.f32.mrf.mxu2 }
 0x2a3   :  { %v1062_v16 = vpop.f32.mrf.mxu3  ;;  %v5793_v8 = vpop.f32.mrf.mxu0 }
 0x2a4   :  { %v1063_v48 = vadd.f32 %v1062_v16, %v853_v31  ;;  %v5795_v38 = vpop.f32.mrf.mxu1 }
 0x2a6   :  { %4446 = vmatmul.msk.f32.gmra.mxu0 %vm260_vm0, %v1063_v48  ;;  %4510 = vmatmul.msk.f32.gmra.mxu1 %vm260_vm0, %v1063_v48 }
 0x2a7   :  { %909 = vmatmul.f32.gmra.mxu2 %v5405_v39 }
 0x2a8   :  { %1112 = vmatmul.f32.gmra.mxu3 %v5409_v24 }
 0x2aa   :  { %v862_v23 = vpop.f32.mrf.mxu2 }
 0x2ab   :  { %v1065_v22 = vpop.f32.mrf.mxu3  ;;  %v5801_v3 = vpop.f32.mrf.mxu0 }
 0x2ac   :  { %v1066_v27 = vadd.f32 %v1065_v22, %v856_v41  ;;  %v5803_v13 = vpop.f32.mrf.mxu1 }
 0x2ae   :  { %4447 = vmatmul.msk.f32.gmra.mxu0 %vm260_vm0, %v1066_v27  ;;  %4511 = vmatmul.msk.f32.gmra.mxu1 %vm260_vm0, %v1066_v27 }
 0x2af   :  { %912 = vmatmul.f32.gmra.mxu2 %v5417_v33 }
 0x2b0   :  { %1115 = vmatmul.f32.gmra.mxu3 %v5419_v18 }
 0x2b2   :  { %v865_v48 = vpop.f32.mrf.mxu2 }
 0x2b3   :  { %v1068_v31 = vpop.f32.mrf.mxu3  ;;  %v5809_v16 = vpop.f32.mrf.mxu0 }
 0x2b4   :  { %v1069_v24 = vadd.f32 %v1068_v31, %v859_v1  ;;  %v5811_v39 = vpop.f32.mrf.mxu1  ;;  %v8187_v1 = vld [vmem:[#allocation76_spill] sm:$0xff] }
 0x2b6   :  { %4448 = vmatmul.msk.f32.gmra.mxu0 %vm260_vm0, %v1069_v24  ;;  %4512 = vmatmul.msk.f32.gmra.mxu1 %vm260_vm0, %v1069_v24 }
 0x2b7   :  { %915 = vmatmul.f32.gmra.mxu2 %v5430_v17 }
 0x2b8   :  { %1118 = vmatmul.f32.gmra.mxu3 %v5434_v49 }
 0x2ba   :  { %v868_v27 = vpop.f32.mrf.mxu2 }
 0x2bb   :  { %v1071_v41 = vpop.f32.mrf.mxu3  ;;  %v5817_v22 = vpop.f32.mrf.mxu0 }
 0x2bc   :  { %v1072_v18 = vadd.f32 %v1071_v41, %v862_v23  ;;  %v5819_v33 = vpop.f32.mrf.mxu1  ;;  %v8189_v23 = vld [vmem:[#allocation78_spill] sm:$0xff]  ;;  %v8190_v41 = vld [vmem:[#allocation79_spill] sm:$0xff] }
 0x2bd   :  { %8186 = vst [vmem:[#allocation127_spill] sm:$0xff] %v5819_v33 }
 0x2be   :  { %4449 = vmatmul.msk.f32.gmra.mxu0 %vm260_vm0, %v1072_v18  ;;  %4513 = vmatmul.msk.f32.gmra.mxu1 %vm260_vm0, %v1072_v18 }
 0x2bf   :  { %918 = vmatmul.f32.gmra.mxu2 %v5442_v2 }
 0x2c0   :  { %1121 = vmatmul.f32.gmra.mxu3 %v8187_v1 }
 0x2c2   :  { %v871_v24 = vpop.f32.mrf.mxu2 }
 0x2c3   :  { %v1074_v31 = vpop.f32.mrf.mxu3  ;;  %v5825_v17 = vpop.f32.mrf.mxu0 }
 0x2c4   :  { %v1075_v49 = vadd.f32 %v1074_v31, %v865_v48  ;;  %v5827_v26 = vpop.f32.mrf.mxu1  ;;  %v8192_v48 = vld [vmem:[#allocation82_spill] sm:$0xff]  ;;  %v8193_v31 = vld [vmem:[#allocation83_spill] sm:$0xff] }
 0x2c5   :  { %8188 = vst [vmem:[#allocation128_spill] sm:$0xff] %v5827_v26 }
 0x2c6   :  { %4450 = vmatmul.msk.f32.gmra.mxu0 %vm260_vm0, %v1075_v49  ;;  %4514 = vmatmul.msk.f32.gmra.mxu1 %vm260_vm0, %v1075_v49 }
 0x2c7   :  { %921 = vmatmul.f32.gmra.mxu2 %v8189_v23 }
 0x2c8   :  { %1124 = vmatmul.f32.gmra.mxu3 %v8190_v41 }
 0x2ca   :  { %v874_v18 = vpop.f32.mrf.mxu2 }
 0x2cb   :  { %v1077_v42 = vpop.f32.mrf.mxu3  ;;  %v5833_v2 = vpop.f32.mrf.mxu0 }
 0x2cc   :  { %v1078_v1 = vadd.f32 %v1077_v42, %v868_v27  ;;  %v5835_v50 = vpop.f32.mrf.mxu1  ;;  %v8196_v42 = vld [vmem:[#allocation86_spill] sm:$0xff]  ;;  %v8197_v27 = vld [vmem:[#allocation87_spill] sm:$0xff] }
 0x2cd   :  { %8191 = vst [vmem:[#allocation129_spill] sm:$0xff] %v5835_v50 }
 0x2ce   :  { %4451 = vmatmul.msk.f32.gmra.mxu0 %vm260_vm0, %v1078_v1  ;;  %4515 = vmatmul.msk.f32.gmra.mxu1 %vm260_vm0, %v1078_v1 }
 0x2cf   :  { %924 = vmatmul.f32.gmra.mxu2 %v8192_v48 }
 0x2d0   :  { %1127 = vmatmul.f32.gmra.mxu3 %v8193_v31 }
 0x2d2   :  { %v877_v49 = vpop.f32.mrf.mxu2 }
 0x2d3   :  { %v1080_v12 = vpop.f32.mrf.mxu3  ;;  %v5841_v23 = vpop.f32.mrf.mxu0 }
 0x2d4   :  { %8194 = vst [vmem:[#allocation130_spill] sm:$0xff] %v5841_v23  ;;  %v1081_v41 = vadd.f32 %v1080_v12, %v871_v24  ;;  %v5843_v26 = vpop.f32.mrf.mxu1  ;;  %v8200_v12 = vld [vmem:[#allocation90_spill] sm:$0xff]  ;;  %v8201_v24 = vld [vmem:[#allocation91_spill] sm:$0xff] }
 0x2d5   :  { %8195 = vst [vmem:[#allocation131_spill] sm:$0xff] %v5843_v26 }
 0x2d6   :  { %4452 = vmatmul.msk.f32.gmra.mxu0 %vm260_vm0, %v1081_v41  ;;  %4516 = vmatmul.msk.f32.gmra.mxu1 %vm260_vm0, %v1081_v41 }
 0x2d7   :  { %927 = vmatmul.f32.gmra.mxu2 %v8196_v42 }
 0x2d8   :  { %1130 = vmatmul.f32.gmra.mxu3 %v8197_v27 }
 0x2da   :  { %v880_v1 = vpop.f32.mrf.mxu2 }
 0x2db   :  { %v1083_v50 = vpop.f32.mrf.mxu3  ;;  %v5849_v48 = vpop.f32.mrf.mxu0 }
 0x2dc   :  { %8198 = vst [vmem:[#allocation132_spill] sm:$0xff] %v5849_v48  ;;  %v1084_v31 = vadd.f32 %v1083_v50, %v874_v18  ;;  %v5851_v33 = vpop.f32.mrf.mxu1  ;;  %v8204_v50 = vld [vmem:[#allocation93_spill] sm:$0xff]  ;;  %v8205_v18 = vld [vmem:[#allocation94_spill] sm:$0xff] }
 0x2dd   :  { %8199 = vst [vmem:[#allocation133_spill] sm:$0xff] %v5851_v33 }
 0x2de   :  { %4453 = vmatmul.msk.f32.gmra.mxu0 %vm260_vm0, %v1084_v31  ;;  %4517 = vmatmul.msk.f32.gmra.mxu1 %vm260_vm0, %v1084_v31 }
 0x2df   :  { %930 = vmatmul.f32.gmra.mxu2 %v8200_v12 }
 0x2e0   :  { %1133 = vmatmul.f32.gmra.mxu3 %v8201_v24 }
 0x2e2   :  { %v883_v41 = vpop.f32.mrf.mxu2 }
 0x2e3   :  { %v1086_v26 = vpop.f32.mrf.mxu3  ;;  %v5857_v42 = vpop.f32.mrf.mxu0 }
 0x2e4   :  { %8202 = vst [vmem:[#allocation134_spill] sm:$0xff] %v5857_v42  ;;  %v1087_v27 = vadd.f32 %v1086_v26, %v877_v49  ;;  %v5859_v23 = vpop.f32.mrf.mxu1  ;;  %v8208_v26 = vld [vmem:[#allocation96_spill] sm:$0xff]  ;;  %v8209_v49 = vld [vmem:[#allocation97_spill] sm:$0xff] }
 0x2e5   :  { %8203 = vst [vmem:[#allocation135_spill] sm:$0xff] %v5859_v23 }
 0x2e6   :  { %4454 = vmatmul.msk.f32.gmra.mxu0 %vm260_vm0, %v1087_v27  ;;  %4518 = vmatmul.msk.f32.gmra.mxu1 %vm260_vm0, %v1087_v27  ;;  %v8210_v27 = vld [vmem:[#allocation22_spill] sm:$0xff] }
 0x2e7   :  { %933 = vmatmul.f32.gmra.mxu2 %v8204_v50  ;;  %v5875_v50 = vsub.f32 %v8210_v27, %v5641_v35  ;;  %v8214_v35 = vld [vmem:[#allocation26_spill] sm:$0xff] }
 0x2e8   :  { %1136 = vmatmul.f32.gmra.mxu3 %v8205_v18  ;;  %v5888_v27 = vsub.f32 %v8214_v35, %v5649_v53  ;;  %v8218_v53 = vld [vmem:[#allocation30_spill] sm:$0xff]  ;;  %v8220_v35 = vld [vmem:[#allocation25_spill] sm:$0xff] }
 0x2e9   :  { %8211 = vst [vmem:[#allocation22_spill] sm:$0xff] %v5875_v50 }
 0x2ea   :  { %v886_v31 = vpop.f32.mrf.mxu2  ;;  %8215 = vst [vmem:[#allocation26_spill] sm:$0xff] %v5888_v27 }
 0x2eb   :  { %v1089_v33 = vpop.f32.mrf.mxu3  ;;  %v5865_v12 = vpop.f32.mrf.mxu0 }
 0x2ec   :  { %8206 = vst [vmem:[#allocation136_spill] sm:$0xff] %v5865_v12  ;;  %v1090_v24 = vadd.f32 %v1089_v33, %v880_v1  ;;  %v5867_v48 = vpop.f32.mrf.mxu1  ;;  %v1887_v1 = vmul.f32 %v5875_v50, %v5875_v50  ;;  %v1889_v50 = vmul.f32 %v5888_v27, %v5888_v27 }
 0x2ed   :  { %8207 = vst [vmem:[#allocation137_spill] sm:$0xff] %v5867_v48 }
 0x2ee   :  { %4455 = vmatmul.msk.f32.gmra.mxu0 %vm260_vm0, %v1090_v24  ;;  %4519 = vmatmul.msk.f32.gmra.mxu1 %vm260_vm0, %v1090_v24  ;;  %v8213_v24 = vld [vmem:[#allocation100_spill] sm:$0xff] }
 0x2ef   :  { %936 = vmatmul.f32.gmra.mxu2 %v8208_v26 }
 0x2f0   :  { %1139 = vmatmul.f32.gmra.mxu3 %v8209_v49 }
 0x2f2   :  { %v889_v18 = vpop.f32.mrf.mxu2 }
 0x2f3   :  { %v1092_v23 = vpop.f32.mrf.mxu3  ;;  %v5877_v42 = vpop.f32.mrf.mxu0 }
 0x2f4   :  { %v1093_v12 = vadd.f32 %v1092_v23, %v883_v41  ;;  %v5879_v33 = vpop.f32.mrf.mxu1 }
 0x2f5   :  { %8212 = vst [vmem:[#allocation138_spill] sm:$0xff] %v5879_v33 }
 0x2f6   :  { %4456 = vmatmul.msk.f32.gmra.mxu0 %vm260_vm0, %v1093_v12  ;;  %4520 = vmatmul.msk.f32.gmra.mxu1 %vm260_vm0, %v1093_v12  ;;  %v8217_v12 = vld [vmem:[#allocation102_spill] sm:$0xff] }
 0x2f7   :  { %2031 = vmatmul.f32.vlgmr.msra.gmra.mxu2 %v1887_v1  ;;  %v5901_v1 = vsub.f32 %v8218_v53, %v5657_v40 }
 0x2f8   :  { %1142 = vmatmul.f32.gmra.mxu3 %v8213_v24  ;;  %v5905_v24 = vsub.f32 %v8220_v35, %v5643_v58  ;;  %v8222_v58 = vld [vmem:[#allocation34_spill] sm:$0xff] }
 0x2f9   :  { %8219 = vst [vmem:[#allocation30_spill] sm:$0xff] %v5901_v1  ;;  %v5919_v40 = vsub.f32 %v8222_v58, %v5665_v19 }
 0x2fa   :  { %v892_v49 = vpop.f32.mrf.mxu2  ;;  %8221 = vst [vmem:[#allocation25_spill] sm:$0xff] %v5905_v24 }
 0x2fb   :  { %v1095_v26 = vpop.f32.mrf.mxu3  ;;  %v5890_v48 = vpop.f32.mrf.mxu0  ;;  %8223 = vst [vmem:[#allocation34_spill] sm:$0xff] %v5919_v40 }
 0x2fc   :  { %v1096_v23 = vadd.f32 %v1095_v26, %v886_v31  ;;  %v5892_v41 = vpop.f32.mrf.mxu1 }
 0x2fd   :  { %8216 = vst [vmem:[#allocation139_spill] sm:$0xff] %v5892_v41 }
 0x2fe   :  { %4457 = vmatmul.msk.f32.gmra.mxu0 %vm260_vm0, %v1096_v23  ;;  %4521 = vmatmul.msk.f32.gmra.mxu1 %vm260_vm0, %v1096_v23  ;;  %v1888_v23 = vmul.f32 %v5905_v24, %v5905_v24 }
 0x2ff   :  { %2034 = vmatmul.f32.gmra.mxu2 %v1889_v50  ;;  %v1891_v50 = vmul.f32 %v5901_v1, %v5901_v1 }
 0x300   :  { %1145 = vmatmul.f32.gmra.mxu3 %v8217_v12 }
 0x302   :  { %v895_v31 = vpop.f32.mrf.mxu2 }
 0x303   :  { %v1098_v26 = vpop.f32.mrf.mxu3  ;;  %v5907_v41 = vpop.f32.mrf.mxu0 }
 0x304   :  { %v1099_v27 = vadd.f32 %v1098_v26, %v889_v18  ;;  %v5909_v33 = vpop.f32.mrf.mxu1  ;;  %v8224_v18 = vld [vmem:[#allocation29_spill] sm:$0xff] }
 0x305   :  { %v5923_v53 = vsub.f32 %v8224_v18, %v5651_v43  ;;  %v8226_v43 = vld [vmem:[#allocation38_spill] sm:$0xff] }
 0x306   :  { %4458 = vmatmul.msk.f32.gmra.mxu0 %vm260_vm0, %v1099_v27  ;;  %4522 = vmatmul.msk.f32.gmra.mxu1 %vm260_vm0, %v1099_v27  ;;  %v1893_v27 = vmul.f32 %v5919_v40, %v5919_v40  ;;  %v5937_v19 = vsub.f32 %v8226_v43, %v5673_v36 }
 0x307   :  { %2037 = vmatmul.f32.gmra.mxu2 %v1891_v50  ;;  %8225 = vst [vmem:[#allocation29_spill] sm:$0xff] %v5923_v53  ;;  %v1890_v50 = vmul.f32 %v5923_v53, %v5923_v53 }
 0x308   :  { %2240 = vmatmul.f32.vlgmr.msra.gmra.mxu3 %v1888_v23  ;;  %8227 = vst [vmem:[#allocation38_spill] sm:$0xff] %v5937_v19 }
 0x30a   :  { %v898_v35 = vpop.f32.mrf.mxu2 }
 0x30b   :  { %v1101_v26 = vpop.f32.mrf.mxu3  ;;  %v5925_v12 = vpop.f32.mrf.mxu0 }
 0x30c   :  { %v1102_v1 = vadd.f32 %v1101_v26, %v892_v49  ;;  %v5927_v24 = vpop.f32.mrf.mxu1  ;;  %v8228_v49 = vld [vmem:[#allocation33_spill] sm:$0xff] }
 0x30d   :  { %v5941_v23 = vsub.f32 %v8228_v49, %v5659_v46  ;;  %v8230_v46 = vld [vmem:[#allocation42_spill] sm:$0xff] }
 0x30e   :  { %4459 = vmatmul.msk.f32.gmra.mxu0 %vm260_vm0, %v1102_v1  ;;  %4523 = vmatmul.msk.f32.gmra.mxu1 %vm260_vm0, %v1102_v1  ;;  %v1895_v1 = vmul.f32 %v5937_v19, %v5937_v19  ;;  %v5955_v36 = vsub.f32 %v8230_v46, %v5681_v57 }
 0x30f   :  { %2040 = vmatmul.f32.gmra.mxu2 %v1893_v27  ;;  %8229 = vst [vmem:[#allocation33_spill] sm:$0xff] %v5941_v23  ;;  %v1892_v27 = vmul.f32 %v5941_v23, %v5941_v23 }
 0x310   :  { %2243 = vmatmul.f32.gmra.mxu3 %v1890_v50  ;;  %8231 = vst [vmem:[#allocation42_spill] sm:$0xff] %v5955_v36 }
 0x312   :  { %v901_v58 = vpop.f32.mrf.mxu2 }
 0x313   :  { %v1104_v18 = vpop.f32.mrf.mxu3  ;;  %v5943_v26 = vpop.f32.mrf.mxu0 }
 0x314   :  { %v1105_v40 = vadd.f32 %v1104_v18, %v895_v31  ;;  %v5945_v53 = vpop.f32.mrf.mxu1  ;;  %v8232_v31 = vld [vmem:[#allocation37_spill] sm:$0xff] }
 0x315   :  { %v5959_v50 = vsub.f32 %v8232_v31, %v5667_v51  ;;  %v8234_v51 = vld [vmem:[#allocation46_spill] sm:$0xff] }
 0x316   :  { %4460 = vmatmul.msk.f32.gmra.mxu0 %vm260_vm0, %v1105_v40  ;;  %4524 = vmatmul.msk.f32.gmra.mxu1 %vm260_vm0, %v1105_v40  ;;  %v1897_v40 = vmul.f32 %v5955_v36, %v5955_v36  ;;  %v5973_v57 = vsub.f32 %v8234_v51, %v5689_v45 }
 0x317   :  { %2043 = vmatmul.f32.gmra.mxu2 %v1895_v1  ;;  %8233 = vst [vmem:[#allocation37_spill] sm:$0xff] %v5959_v50  ;;  %v1894_v1 = vmul.f32 %v5959_v50, %v5959_v50 }
 0x318   :  { %2246 = vmatmul.f32.gmra.mxu3 %v1892_v27  ;;  %8235 = vst [vmem:[#allocation46_spill] sm:$0xff] %v5973_v57 }
 0x31a   :  { %v904_v43 = vpop.f32.mrf.mxu2 }
 0x31b   :  { %v1107_v49 = vpop.f32.mrf.mxu3  ;;  %v5961_v18 = vpop.f32.mrf.mxu0 }
 0x31c   :  { %v1108_v19 = vadd.f32 %v1107_v49, %v898_v35  ;;  %v5963_v23 = vpop.f32.mrf.mxu1  ;;  %v8236_v35 = vld [vmem:[#allocation41_spill] sm:$0xff] }
 0x31d   :  { %v5977_v27 = vsub.f32 %v8236_v35, %v5675_v54  ;;  %v8238_v54 = vld [vmem:[#allocation50_spill] sm:$0xff] }
 0x31e   :  { %4461 = vmatmul.msk.f32.gmra.mxu0 %vm260_vm0, %v1108_v19  ;;  %4525 = vmatmul.msk.f32.gmra.mxu1 %vm260_vm0, %v1108_v19  ;;  %v1899_v19 = vmul.f32 %v5973_v57, %v5973_v57  ;;  %v5991_v45 = vsub.f32 %v8238_v54, %v5697_v25 }
 0x31f   :  { %2046 = vmatmul.f32.gmra.mxu2 %v1897_v40  ;;  %8237 = vst [vmem:[#allocation41_spill] sm:$0xff] %v5977_v27  ;;  %v1896_v40 = vmul.f32 %v5977_v27, %v5977_v27 }
 0x320   :  { %2249 = vmatmul.f32.gmra.mxu3 %v1894_v1  ;;  %8239 = vst [vmem:[#allocation50_spill] sm:$0xff] %v5991_v45 }
 0x322   :  { %v907_v46 = vpop.f32.mrf.mxu2 }
 0x323   :  { %v1110_v31 = vpop.f32.mrf.mxu3  ;;  %v5979_v49 = vpop.f32.mrf.mxu0 }
 0x324   :  { %v1111_v36 = vadd.f32 %v1110_v31, %v901_v58  ;;  %v5981_v50 = vpop.f32.mrf.mxu1  ;;  %v8240_v58 = vld [vmem:[#allocation45_spill] sm:$0xff] }
 0x325   :  { %v5995_v1 = vsub.f32 %v8240_v58, %v5683_v60  ;;  %v8242_v60 = vld [vmem:[#allocation54_spill] sm:$0xff] }
 0x326   :  { %4462 = vmatmul.msk.f32.gmra.mxu0 %vm260_vm0, %v1111_v36  ;;  %4526 = vmatmul.msk.f32.gmra.mxu1 %vm260_vm0, %v1111_v36  ;;  %v1901_v36 = vmul.f32 %v5991_v45, %v5991_v45  ;;  %v6009_v25 = vsub.f32 %v8242_v60, %v5705_v10 }
 0x327   :  { %2049 = vmatmul.f32.gmra.mxu2 %v1899_v19  ;;  %8241 = vst [vmem:[#allocation45_spill] sm:$0xff] %v5995_v1  ;;  %v1898_v19 = vmul.f32 %v5995_v1, %v5995_v1 }
 0x328   :  { %2252 = vmatmul.f32.gmra.mxu3 %v1896_v40  ;;  %8243 = vst [vmem:[#allocation54_spill] sm:$0xff] %v6009_v25 }
 0x32a   :  { %v910_v51 = vpop.f32.mrf.mxu2 }
 0x32b   :  { %v1113_v35 = vpop.f32.mrf.mxu3  ;;  %v5997_v31 = vpop.f32.mrf.mxu0 }
 0x32c   :  { %v1114_v57 = vadd.f32 %v1113_v35, %v904_v43  ;;  %v5999_v27 = vpop.f32.mrf.mxu1  ;;  %v8244_v43 = vld [vmem:[#allocation49_spill] sm:$0xff] }
 0x32d   :  { %v6013_v40 = vsub.f32 %v8244_v43, %v5691_v62  ;;  %v8246_v62 = vld [vmem:[#allocation58_spill] sm:$0xff] }
 0x32e   :  { %4463 = vmatmul.msk.f32.gmra.mxu0 %vm260_vm0, %v1114_v57  ;;  %4527 = vmatmul.msk.f32.gmra.mxu1 %vm260_vm0, %v1114_v57  ;;  %v1903_v57 = vmul.f32 %v6009_v25, %v6009_v25  ;;  %v6027_v10 = vsub.f32 %v8246_v62, %v5713_v44 }
 0x32f   :  { %2052 = vmatmul.f32.gmra.mxu2 %v1901_v36  ;;  %8245 = vst [vmem:[#allocation49_spill] sm:$0xff] %v6013_v40  ;;  %v1900_v36 = vmul.f32 %v6013_v40, %v6013_v40 }
 0x330   :  { %2255 = vmatmul.f32.gmra.mxu3 %v1898_v19  ;;  %8247 = vst [vmem:[#allocation58_spill] sm:$0xff] %v6027_v10 }
 0x332   :  { %v913_v54 = vpop.f32.mrf.mxu2 }
 0x333   :  { %v1116_v58 = vpop.f32.mrf.mxu3  ;;  %v6015_v35 = vpop.f32.mrf.mxu0 }
 0x334   :  { %v1117_v45 = vadd.f32 %v1116_v58, %v907_v46  ;;  %v6017_v1 = vpop.f32.mrf.mxu1  ;;  %v8248_v46 = vld [vmem:[#allocation53_spill] sm:$0xff] }
 0x335   :  { %v6031_v19 = vsub.f32 %v8248_v46, %v5699_v4  ;;  %v8250_v4 = vld [vmem:[#allocation62_spill] sm:$0xff] }
 0x336   :  { %4464 = vmatmul.msk.f32.gmra.mxu0 %vm260_vm0, %v1117_v45  ;;  %4528 = vmatmul.msk.f32.gmra.mxu1 %vm260_vm0, %v1117_v45  ;;  %v1905_v45 = vmul.f32 %v6027_v10, %v6027_v10  ;;  %v6045_v44 = vsub.f32 %v8250_v4, %v5721_v47 }
 0x337   :  { %2055 = vmatmul.f32.gmra.mxu2 %v1903_v57  ;;  %8249 = vst [vmem:[#allocation53_spill] sm:$0xff] %v6031_v19  ;;  %v1902_v57 = vmul.f32 %v6031_v19, %v6031_v19 }
 0x338   :  { %2258 = vmatmul.f32.gmra.mxu3 %v1900_v36  ;;  %8251 = vst [vmem:[#allocation62_spill] sm:$0xff] %v6045_v44 }
 0x33a   :  { %v916_v60 = vpop.f32.mrf.mxu2 }
 0x33b   :  { %v1119_v43 = vpop.f32.mrf.mxu3  ;;  %v6033_v58 = vpop.f32.mrf.mxu0 }
 0x33c   :  { %v1120_v25 = vadd.f32 %v1119_v43, %v910_v51  ;;  %v6035_v40 = vpop.f32.mrf.mxu1  ;;  %v8252_v51 = vld [vmem:[#allocation57_spill] sm:$0xff] }
 0x33d   :  { %v6049_v36 = vsub.f32 %v8252_v51, %v5707_v6  ;;  %v8254_v6 = vld [vmem:[#allocation66_spill] sm:$0xff] }
 0x33e   :  { %4465 = vmatmul.msk.f32.gmra.mxu0 %vm260_vm0, %v1120_v25  ;;  %4529 = vmatmul.msk.f32.gmra.mxu1 %vm260_vm0, %v1120_v25  ;;  %v1907_v25 = vmul.f32 %v6045_v44, %v6045_v44  ;;  %v6063_v47 = vsub.f32 %v8254_v6, %v5729_v52 }
 0x33f   :  { %2058 = vmatmul.f32.gmra.mxu2 %v1905_v45  ;;  %8253 = vst [vmem:[#allocation57_spill] sm:$0xff] %v6049_v36  ;;  %v1904_v45 = vmul.f32 %v6049_v36, %v6049_v36 }
 0x340   :  { %2261 = vmatmul.f32.gmra.mxu3 %v1902_v57  ;;  %8255 = vst [vmem:[#allocation66_spill] sm:$0xff] %v6063_v47 }
 0x342   :  { %v919_v62 = vpop.f32.mrf.mxu2 }
 0x343   :  { %v1122_v46 = vpop.f32.mrf.mxu3  ;;  %v6051_v43 = vpop.f32.mrf.mxu0 }
 0x344   :  { %v1123_v10 = vadd.f32 %v1122_v46, %v913_v54  ;;  %v6053_v19 = vpop.f32.mrf.mxu1  ;;  %v8256_v54 = vld [vmem:[#allocation61_spill] sm:$0xff] }
 0x345   :  { %v6067_v57 = vsub.f32 %v8256_v54, %v5715_v28  ;;  %v8258_v28 = vld [vmem:[#allocation69_spill] sm:$0xff] }
 0x346   :  { %4466 = vmatmul.msk.f32.gmra.mxu0 %vm260_vm0, %v1123_v10  ;;  %4530 = vmatmul.msk.f32.gmra.mxu1 %vm260_vm0, %v1123_v10  ;;  %v1909_v10 = vmul.f32 %v6063_v47, %v6063_v47  ;;  %v6081_v52 = vsub.f32 %v8258_v28, %v5737_v55 }
 0x347   :  { %2061 = vmatmul.f32.gmra.mxu2 %v1907_v25  ;;  %8257 = vst [vmem:[#allocation61_spill] sm:$0xff] %v6067_v57  ;;  %v1906_v25 = vmul.f32 %v6067_v57, %v6067_v57 }
 0x348   :  { %2264 = vmatmul.f32.gmra.mxu3 %v1904_v45  ;;  %8259 = vst [vmem:[#allocation69_spill] sm:$0xff] %v6081_v52 }
 0x34a   :  { %v922_v4 = vpop.f32.mrf.mxu2 }
 0x34b   :  { %v1125_v51 = vpop.f32.mrf.mxu3  ;;  %v6069_v46 = vpop.f32.mrf.mxu0 }
 0x34c   :  { %v1126_v44 = vadd.f32 %v1125_v51, %v916_v60  ;;  %v6071_v36 = vpop.f32.mrf.mxu1  ;;  %v8260_v60 = vld [vmem:[#allocation65_spill] sm:$0xff] }
 0x34d   :  { %v6085_v45 = vsub.f32 %v8260_v60, %v5723_v32  ;;  %v8262_v32 = vld [vmem:[#allocation73_spill] sm:$0xff] }
 0x34e   :  { %4467 = vmatmul.msk.f32.gmra.mxu0 %vm260_vm0, %v1126_v44  ;;  %4531 = vmatmul.msk.f32.gmra.mxu1 %vm260_vm0, %v1126_v44  ;;  %v1911_v44 = vmul.f32 %v6081_v52, %v6081_v52  ;;  %v6099_v55 = vsub.f32 %v8262_v32, %v5745_v61 }
 0x34f   :  { %2064 = vmatmul.f32.gmra.mxu2 %v1909_v10  ;;  %8261 = vst [vmem:[#allocation65_spill] sm:$0xff] %v6085_v45  ;;  %v1908_v10 = vmul.f32 %v6085_v45, %v6085_v45 }
 0x350   :  { %2267 = vmatmul.f32.gmra.mxu3 %v1906_v25  ;;  %8263 = vst [vmem:[#allocation73_spill] sm:$0xff] %v6099_v55 }
 0x352   :  { %v925_v6 = vpop.f32.mrf.mxu2 }
 0x353   :  { %v1128_v54 = vpop.f32.mrf.mxu3  ;;  %v6087_v51 = vpop.f32.mrf.mxu0 }
 0x354   :  { %v1129_v47 = vadd.f32 %v1128_v54, %v919_v62  ;;  %v6089_v57 = vpop.f32.mrf.mxu1  ;;  %v8264_v62 = vld [vmem:[#allocation70_spill] sm:$0xff] }
 0x355   :  { %v6103_v25 = vsub.f32 %v8264_v62, %v5731_v56  ;;  %v8266_v56 = vld [vmem:[#allocation77_spill] sm:$0xff] }
 0x356   :  { %4468 = vmatmul.msk.f32.gmra.mxu0 %vm260_vm0, %v1129_v47  ;;  %4532 = vmatmul.msk.f32.gmra.mxu1 %vm260_vm0, %v1129_v47  ;;  %v1913_v47 = vmul.f32 %v6099_v55, %v6099_v55  ;;  %v6117_v61 = vsub.f32 %v8266_v56, %v5753_v63 }
 0x357   :  { %2067 = vmatmul.f32.gmra.mxu2 %v1911_v44  ;;  %8265 = vst [vmem:[#allocation70_spill] sm:$0xff] %v6103_v25  ;;  %v1910_v44 = vmul.f32 %v6103_v25, %v6103_v25 }
 0x358   :  { %2270 = vmatmul.f32.gmra.mxu3 %v1908_v10  ;;  %8267 = vst [vmem:[#allocation77_spill] sm:$0xff] %v6117_v61 }
 0x35a   :  { %v928_v28 = vpop.f32.mrf.mxu2 }
 0x35b   :  { %v1131_v60 = vpop.f32.mrf.mxu3  ;;  %v6105_v54 = vpop.f32.mrf.mxu0 }
 0x35c   :  { %v1132_v52 = vadd.f32 %v1131_v60, %v922_v4  ;;  %v6107_v45 = vpop.f32.mrf.mxu1  ;;  %v8268_v4 = vld [vmem:[#allocation74_spill] sm:$0xff] }
 0x35d   :  { %v6121_v10 = vsub.f32 %v8268_v4, %v5739_v0  ;;  %v8270_v0 = vld [vmem:[#allocation81_spill] sm:$0xff] }
 0x35e   :  { %4469 = vmatmul.msk.f32.gmra.mxu0 %vm260_vm0, %v1132_v52  ;;  %4533 = vmatmul.msk.f32.gmra.mxu1 %vm260_vm0, %v1132_v52  ;;  %v1915_v52 = vmul.f32 %v6117_v61, %v6117_v61  ;;  %v6135_v63 = vsub.f32 %v8270_v0, %v5761_v5 }
 0x35f   :  { %2070 = vmatmul.f32.gmra.mxu2 %v1913_v47  ;;  %8269 = vst [vmem:[#allocation74_spill] sm:$0xff] %v6121_v10  ;;  %v1912_v47 = vmul.f32 %v6121_v10, %v6121_v10 }
 0x360   :  { %2273 = vmatmul.f32.gmra.mxu3 %v1910_v44  ;;  %8271 = vst [vmem:[#allocation81_spill] sm:$0xff] %v6135_v63 }
 0x362   :  { %v931_v32 = vpop.f32.mrf.mxu2 }
 0x363   :  { %v1134_v62 = vpop.f32.mrf.mxu3  ;;  %v6123_v60 = vpop.f32.mrf.mxu0 }
 0x364   :  { %v1135_v55 = vadd.f32 %v1134_v62, %v925_v6  ;;  %v6125_v25 = vpop.f32.mrf.mxu1  ;;  %v8272_v6 = vld [vmem:[#allocation80_spill] sm:$0xff] }
 0x365   :  { %v6139_v44 = vsub.f32 %v8272_v6, %v5747_v15  ;;  %v8274_v15 = vld [vmem:[#allocation85_spill] sm:$0xff] }
 0x366   :  { %4470 = vmatmul.msk.f32.gmra.mxu0 %vm260_vm0, %v1135_v55  ;;  %4534 = vmatmul.msk.f32.gmra.mxu1 %vm260_vm0, %v1135_v55  ;;  %v1917_v55 = vmul.f32 %v6135_v63, %v6135_v63  ;;  %v6153_v5 = vsub.f32 %v8274_v15, %v5769_v14 }
 0x367   :  { %2073 = vmatmul.f32.gmra.mxu2 %v1915_v52  ;;  %8273 = vst [vmem:[#allocation80_spill] sm:$0xff] %v6139_v44  ;;  %v1914_v52 = vmul.f32 %v6139_v44, %v6139_v44 }
 0x368   :  { %2276 = vmatmul.f32.gmra.mxu3 %v1912_v47  ;;  %8275 = vst [vmem:[#allocation85_spill] sm:$0xff] %v6153_v5 }
 0x36a   :  { %v934_v56 = vpop.f32.mrf.mxu2 }
 0x36b   :  { %v1137_v4 = vpop.f32.mrf.mxu3  ;;  %v6141_v62 = vpop.f32.mrf.mxu0 }
 0x36c   :  { %v1138_v61 = vadd.f32 %v1137_v4, %v928_v28  ;;  %v6143_v10 = vpop.f32.mrf.mxu1  ;;  %v8276_v28 = vld [vmem:[#allocation84_spill] sm:$0xff] }
 0x36d   :  { %v6157_v47 = vsub.f32 %v8276_v28, %v5755_v21  ;;  %v8278_v21 = vld [vmem:[#allocation89_spill] sm:$0xff] }
 0x36e   :  { %4471 = vmatmul.msk.f32.gmra.mxu0 %vm260_vm0, %v1138_v61  ;;  %4535 = vmatmul.msk.f32.gmra.mxu1 %vm260_vm0, %v1138_v61  ;;  %v1919_v61 = vmul.f32 %v6153_v5, %v6153_v5  ;;  %v6171_v14 = vsub.f32 %v8278_v21, %v5777_v30 }
 0x36f   :  { %2076 = vmatmul.f32.gmra.mxu2 %v1917_v55  ;;  %8277 = vst [vmem:[#allocation84_spill] sm:$0xff] %v6157_v47  ;;  %v1916_v55 = vmul.f32 %v6157_v47, %v6157_v47 }
 0x370   :  { %2279 = vmatmul.f32.gmra.mxu3 %v1914_v52  ;;  %8279 = vst [vmem:[#allocation89_spill] sm:$0xff] %v6171_v14 }
 0x372   :  { %v937_v0 = vpop.f32.mrf.mxu2 }
 0x373   :  { %v1140_v6 = vpop.f32.mrf.mxu3  ;;  %v6159_v4 = vpop.f32.mrf.mxu0 }
 0x374   :  { %v1141_v63 = vadd.f32 %v1140_v6, %v931_v32  ;;  %v6161_v44 = vpop.f32.mrf.mxu1  ;;  %v8280_v32 = vld [vmem:[#allocation88_spill] sm:$0xff] }
 0x375   :  { %v6175_v52 = vsub.f32 %v8280_v32, %v5763_v29  ;;  %v8282_v29 = vld [vmem:[#allocation92_spill] sm:$0xff] }
 0x376   :  { %4472 = vmatmul.msk.f32.gmra.mxu0 %vm260_vm0, %v1141_v63  ;;  %4536 = vmatmul.msk.f32.gmra.mxu1 %vm260_vm0, %v1141_v63  ;;  %v1921_v63 = vmul.f32 %v6171_v14, %v6171_v14  ;;  %v6189_v30 = vsub.f32 %v8282_v29, %v5785_v34  ;;  %v8288_v34 = vld [vmem:[#allocation98_spill] sm:$0xff] }
 0x377   :  { %2079 = vmatmul.f32.gmra.mxu2 %v1919_v61  ;;  %8281 = vst [vmem:[#allocation88_spill] sm:$0xff] %v6175_v52  ;;  %v1918_v61 = vmul.f32 %v6175_v52, %v6175_v52 }
 0x378   :  { %2282 = vmatmul.f32.gmra.mxu3 %v1916_v55  ;;  %8283 = vst [vmem:[#allocation92_spill] sm:$0xff] %v6189_v30 }
 0x37a   :  { %v2032_v15 = vpop.f32.mrf.mxu2 }
 0x37b   :  { %v1143_v28 = vpop.f32.mrf.mxu3  ;;  %v6177_v6 = vpop.f32.mrf.mxu0 }
 0x37c   :  { %v1144_v5 = vadd.f32 %v1143_v28, %v934_v56  ;;  %v6179_v47 = vpop.f32.mrf.mxu1  ;;  %v6193_v56 = vsub.f32 %v5495_v9, %v5771_v37  ;;  %v8286_v37 = vld [vmem:[#allocation95_spill] sm:$0xff] }
 0x37d   :  { %v6207_v9 = vsub.f32 %v8286_v37, %v5793_v8 }
 0x37e   :  { %4473 = vmatmul.msk.f32.gmra.mxu0 %vm260_vm0, %v1144_v5  ;;  %4537 = vmatmul.msk.f32.gmra.mxu1 %vm260_vm0, %v1144_v5  ;;  %8284 = vst [vmem:[#allocation140_spill] sm:$0xff] %v6193_v56  ;;  %v1923_v5 = vmul.f32 %v6189_v30, %v6189_v30 }
 0x37f   :  { %2082 = vmatmul.f32.gmra.mxu2 %v1921_v63  ;;  %v1920_v63 = vmul.f32 %v6193_v56, %v6193_v56  ;;  %8287 = vst [vmem:[#allocation95_spill] sm:$0xff] %v6207_v9 }
 0x380   :  { %2285 = vmatmul.f32.gmra.mxu3 %v1918_v61  ;;  %v2033_v61 = vadd.f32 1e-05, %v2032_v15  ;;  %v8293_v15 = vld [vmem:[#allocation101_spill] sm:$0xff] }
 0x382   :  { %v2035_v55 = vpop.f32.mrf.mxu2 }
 0x383   :  { %v1146_v21 = vpop.f32.mrf.mxu3  ;;  %v6195_v32 = vpop.f32.mrf.mxu0  ;;  %v2036_v37 = vadd.f32 1e-05, %v2035_v55 }
 0x384   :  { %v1147_v28 = vadd.f32 %v1146_v21, %v937_v0  ;;  %v6197_v14 = vpop.f32.mrf.mxu1  ;;  %v6211_v0 = vsub.f32 %v8288_v34, %v5779_v59  ;;  %v8291_v59 = vld [vmem:[#allocation99_spill] sm:$0xff] }
 0x385   :  { %8285 = vst [vmem:[#allocation141_spill] sm:$0xff] %v6197_v14  ;;  %v6223_v8 = vsub.f32 %v8291_v59, %v5801_v3 }
 0x386   :  { %4474 = vmatmul.msk.f32.gmra.mxu0 %vm260_vm0, %v1147_v28  ;;  %4538 = vmatmul.msk.f32.gmra.mxu1 %vm260_vm0, %v1147_v28  ;;  %8289 = vst [vmem:[#allocation98_spill] sm:$0xff] %v6211_v0  ;;  %v1925_v28 = vmul.f32 %v6207_v9, %v6207_v9 }
 0x387   :  { %2085 = vmatmul.f32.gmra.mxu2 %v1923_v5  ;;  %v1922_v5 = vmul.f32 %v6211_v0, %v6211_v0  ;;  %8292 = vst [vmem:[#allocation99_spill] sm:$0xff] %v6223_v8 }
 0x388   :  { %2288 = vmatmul.f32.gmra.mxu3 %v1920_v63  ;;  %v6227_v63 = vsub.f32 %v8293_v15, %v5787_v20  ;;  %v8297_v20 = vld [vmem:[#allocation103_spill] sm:$0xff] }
 0x389   :  { %v6239_v55 = vsub.f32 %v8297_v20, %v5809_v16  ;;  %v8300_v20 = vld [vmem:[#allocation104_spill] sm:$0xff] }
 0x38a   :  { %v2038_v29 = vpop.f32.mrf.mxu2  ;;  %8294 = vst [vmem:[#allocation101_spill] sm:$0xff] %v6227_v63  ;;  %v1924_v3 = vmul.f32 %v6227_v63, %v6227_v63 }
 0x38b   :  { %v6213_v21 = vpop.f32.mrf.mxu0  ;;  %v2241_v30 = vpop.f32.mrf.mxu3  ;;  %8298 = vst [vmem:[#allocation103_spill] sm:$0xff] %v6239_v55  ;;  %v1929_v16 = vmul.f32 %v6239_v55, %v6239_v55 }
 0x38c   :  { %v6215_v56 = vpop.f32.mrf.mxu1  ;;  %v2242_v52 = vadd.f32 %v2241_v30, %v2033_v61 }
 0x38d   :  { %8290 = vst [vmem:[#allocation142_spill] sm:$0xff] %v6215_v56 }
 0x38e   :  { %4705 = vrsqrt.f32 %v2242_v52  ;;  %vm2439_vm2 = vweird.f32 %v2242_v52 }
 0x38f   :  { %2088 = vmatmul.f32.gmra.mxu2 %v1925_v28  ;;  %v1927_v28 = vmul.f32 %v6223_v8, %v6223_v8 }
 0x390   :  { %2291 = vmatmul.f32.gmra.mxu3 %v1922_v5 }
 0x392   :  { %v2041_v34 = vpop.f32.mrf.mxu2 }
 0x393   :  { %v6229_v30 = vpop.f32.mrf.mxu0  ;;  %v2244_v61 = vpop.f32.mrf.mxu3 }
 0x394   :  { %8295 = vst [vmem:[#allocation143_spill] sm:$0xff] %v6229_v30  ;;  %v4706_v9 = vpop.eup %4705  ;;  %v6231_v56 = vpop.f32.mrf.mxu1  ;;  %v2245_v0 = vadd.f32 %v2244_v61, %v2036_v37  ;;  %v2039_v37 = vadd.f32 1e-05, %v2038_v29 }
 0x395   :  { %8296 = vst [vmem:[#allocation144_spill] sm:$0xff] %v6231_v56  ;;  %v2434_v5 = vmul.f32 %v4706_v9, %v2242_v52  ;;  %v6243_v56 = vsub.f32 %v5526_v7, %v5795_v38  ;;  %vm2440_vm1 = vweird.f32 %v4706_v9  ;;  %v8302_v52 = vld [vmem:[#allocation105_spill] sm:$0xff] }
 0x396   :  { %4707 = vrsqrt.f32 %v2245_v0  ;;  %vm2441_vm3 = vmor %vm2439_vm2, %vm2440_vm1  ;;  %vm2449_vm5 = vweird.f32 %v2245_v0 }
 0x397   :  { %v2435_v59 = vmul.f32 %v4706_v9, %v2434_v5  ;;  %2091 = vmatmul.f32.gmra.mxu2 %v1927_v28  ;;  %8299 = vst [vmem:[#allocation145_spill] sm:$0xff] %v6243_v56  ;;  %v1926_v38 = vmul.f32 %v6243_v56, %v6243_v56 }
 0x398   :  { %2294 = vmatmul.f32.gmra.mxu3 %v1924_v3 }
 0x399   :  { %v2436_v15 = vmul.f32 0.5, %v2435_v59 }
 0x39a   :  { %v2044_v61 = vpop.f32.mrf.mxu2 }
 0x39b   :  { %v2437_v8 = vsub.f32 1.5, %v2436_v15  ;;  %v6245_v14 = vpop.f32.mrf.mxu0  ;;  %v2247_v63 = vpop.f32.mrf.mxu3 }
 0x39c   :  { %v4708_v30 = vpop.eup %4707  ;;  %v6247_v5 = vpop.f32.mrf.mxu1  ;;  %v2248_v28 = vadd.f32 %v2247_v63, %v2039_v37  ;;  %v6256_v63 = vsub.f32 %v8300_v20, %v5817_v22  ;;  %v2042_v37 = vadd.f32 1e-05, %v2041_v34 }
 0x39d   :  { %v2438_v3 = vmul.f32 %v4706_v9, %v2437_v8  ;;  %v2444_v59 = vmul.f32 %v4708_v30, %v2245_v0  ;;  %v6261_v8 = vsub.f32 %v8302_v52, %v5803_v13  ;;  %vm2450_vm4 = vweird.f32 %v4708_v30 }
 0x39e   :  { %4709 = vrsqrt.f32 %v2248_v28  ;;  %8301 = vst [vmem:[#allocation104_spill] sm:$0xff] %v6256_v63  ;;  %v1931_v22 = vmul.f32 %v6256_v63, %v6256_v63  ;;  %vm2451_vm6 = vmor %vm2449_vm5, %vm2450_vm4  ;;  %v2045_v0 = vadd.f32 1e-05, %v2044_v61  ;;  %vm2459_vm8 = vweird.f32 %v2248_v28 }
 0x39f   :  { %v2445_v7 = vmul.f32 %v4708_v30, %v2444_v59  ;;  %2094 = vmatmul.f32.gmra.mxu2 %v1929_v16  ;;  %v2442_v29 = vsel %vm2441_vm3, %v4706_v9, %v2438_v3  ;;  %8303 = vst [vmem:[#allocation105_spill] sm:$0xff] %v6261_v8  ;;  %v1928_v13 = vmul.f32 %v6261_v8, %v6261_v8 }
 0x3a0   :  { %2297 = vmatmul.f32.gmra.mxu3 %v1926_v38  ;;  %4539 = vmatmul.msk.f32.vlgmr.msra.gmra.mxu0 %vm260_vm0, %v2442_v29 }
 0x3a1   :  { %v2446_v15 = vmul.f32 0.5, %v2445_v7  ;;  %4603 = vmatmul.msk.f32.vlgmr.msra.gmra.mxu1 %vm260_vm0, %v2442_v29 }
 0x3a2   :  { %v2047_v55 = vpop.f32.mrf.mxu2 }
 0x3a3   :  { %v2447_v56 = vsub.f32 1.5, %v2446_v15  ;;  %v6263_v59 = vpop.f32.mrf.mxu0  ;;  %v2250_v9 = vpop.f32.mrf.mxu3  ;;  %v8304_v15 = vld [vmem:[#allocation106_spill] sm:$0xff] }
 0x3a4   :  { %v4710_v16 = vpop.eup %4709  ;;  %v6265_v3 = vpop.f32.mrf.mxu1  ;;  %v2251_v38 = vadd.f32 %v2250_v9, %v2042_v37  ;;  %v6274_v52 = vsub.f32 %v8304_v15, %v5825_v17  ;;  %v8308_v15 = vld [vmem:[#allocation107_spill] sm:$0xff] }
 0x3a5   :  { %v2454_v7 = vmul.f32 %v4710_v16, %v2248_v28  ;;  %v2448_v29 = vmul.f32 %v4708_v30, %v2447_v56  ;;  %v6279_v56 = vsub.f32 %v5543_v11, %v5811_v39  ;;  %vm2460_vm7 = vweird.f32 %v4710_v16  ;;  %v8310_v28 = vld [vmem:[#allocation127_spill] sm:$0xff] }
 0x3a6   :  { %4711 = vrsqrt.f32 %v2251_v38  ;;  %8305 = vst [vmem:[#allocation106_spill] sm:$0xff] %v6274_v52  ;;  %v1933_v17 = vmul.f32 %v6274_v52, %v6274_v52  ;;  %vm2461_vm9 = vmor %vm2459_vm8, %vm2460_vm7  ;;  %v2048_v52 = vadd.f32 1e-05, %v2047_v55  ;;  %vm2469_vm11 = vweird.f32 %v2251_v38 }
 0x3a7   :  { %v2455_v34 = vmul.f32 %v4710_v16, %v2454_v7  ;;  %2097 = vmatmul.f32.gmra.mxu2 %v1931_v22  ;;  %v2452_v20 = vsel %vm2451_vm6, %v4708_v30, %v2448_v29  ;;  %8306 = vst [vmem:[#allocation146_spill] sm:$0xff] %v6279_v56  ;;  %v1930_v11 = vmul.f32 %v6279_v56, %v6279_v56 }
 0x3a8   :  { %2300 = vmatmul.f32.gmra.mxu3 %v1928_v13  ;;  %4540 = vmatmul.msk.f32.gmra.mxu0 %vm260_vm0, %v2452_v20 }
 0x3a9   :  { %v2456_v37 = vmul.f32 0.5, %v2455_v34  ;;  %4604 = vmatmul.msk.f32.gmra.mxu1 %vm260_vm0, %v2452_v20 }
 0x3aa   :  { %v2050_v9 = vpop.f32.mrf.mxu2 }
 0x3ab   :  { %v2457_v63 = vsub.f32 1.5, %v2456_v37  ;;  %v6281_v7 = vpop.f32.mrf.mxu0  ;;  %v2253_v30 = vpop.f32.mrf.mxu3  ;;  %v6292_v37 = vsub.f32 %v8308_v15, %v5833_v2 }
 0x3ac   :  { %v4712_v22 = vpop.eup %4711  ;;  %v6283_v29 = vpop.f32.mrf.mxu1  ;;  %v2254_v13 = vadd.f32 %v2253_v30, %v2045_v0 }
 0x3ad   :  { %8307 = vst [vmem:[#allocation147_spill] sm:$0xff] %v6283_v29  ;;  %v2464_v34 = vmul.f32 %v4712_v22, %v2251_v38  ;;  %v2458_v20 = vmul.f32 %v4710_v16, %v2457_v63  ;;  %v8311_v63 = vld [vmem:[#allocation108_spill] sm:$0xff]  ;;  %vm2470_vm10 = vweird.f32 %v4712_v22  ;;  %v1935_v2 = vmul.f32 %v6292_v37, %v6292_v37 }
 0x3ae   :  { %4713 = vrsqrt.f32 %v2254_v13  ;;  %8309 = vst [vmem:[#allocation107_spill] sm:$0xff] %v6292_v37  ;;  %v6297_v30 = vsub.f32 %v8311_v63, %v8310_v28  ;;  %vm2471_vm12 = vmor %vm2469_vm11, %vm2470_vm10  ;;  %v8314_v28 = vld [vmem:[#allocation130_spill] sm:$0xff]  ;;  %v8315_v63 = vld [vmem:[#allocation109_spill] sm:$0xff]  ;;  %vm2479_vm14 = vweird.f32 %v2254_v13 }
 0x3af   :  { %v2465_v39 = vmul.f32 %v4712_v22, %v2464_v34  ;;  %2100 = vmatmul.f32.gmra.mxu2 %v1933_v17  ;;  %v2462_v61 = vsel %vm2461_vm9, %v4710_v16, %v2458_v20  ;;  %v8317_v38 = vld [vmem:[#allocation128_spill] sm:$0xff] }
 0x3b0   :  { %2303 = vmatmul.f32.gmra.mxu3 %v1930_v11  ;;  %4541 = vmatmul.msk.f32.gmra.mxu0 %vm260_vm0, %v2462_v61  ;;  %8312 = vst [vmem:[#allocation127_spill] sm:$0xff] %v6297_v30  ;;  %v1932_v15 = vmul.f32 %v6297_v30, %v6297_v30  ;;  %v2051_v30 = vadd.f32 1e-05, %v2050_v9 }
 0x3b1   :  { %v2466_v0 = vmul.f32 0.5, %v2465_v39  ;;  %4605 = vmatmul.msk.f32.gmra.mxu1 %vm260_vm0, %v2462_v61 }
 0x3b2   :  { %v2053_v56 = vpop.f32.mrf.mxu2 }
 0x3b3   :  { %v2467_v8 = vsub.f32 1.5, %v2466_v0  ;;  %v6299_v34 = vpop.f32.mrf.mxu0  ;;  %v2256_v16 = vpop.f32.mrf.mxu3 }
 0x3b4   :  { %v4714_v17 = vpop.eup %4713  ;;  %v6301_v20 = vpop.f32.mrf.mxu1  ;;  %v2257_v11 = vadd.f32 %v2256_v16, %v2048_v52  ;;  %v6310_v52 = vsub.f32 %v8315_v63, %v8314_v28 }
 0x3b5   :  { %8313 = vst [vmem:[#allocation108_spill] sm:$0xff] %v6301_v20  ;;  %v2474_v39 = vmul.f32 %v4714_v17, %v2254_v13  ;;  %v2468_v61 = vmul.f32 %v4712_v22, %v2467_v8  ;;  %v8318_v8 = vld [vmem:[#allocation110_spill] sm:$0xff]  ;;  %vm2480_vm13 = vweird.f32 %v4714_v17  ;;  %v8325_v13 = vld [vmem:[#allocation129_spill] sm:$0xff] }
 0x3b6   :  { %4715 = vrsqrt.f32 %v2257_v11  ;;  %8316 = vst [vmem:[#allocation130_spill] sm:$0xff] %v6310_v52  ;;  %v6315_v37 = vsub.f32 %v8318_v8, %v8317_v38  ;;  %vm2481_vm15 = vmor %vm2479_vm14, %vm2480_vm13  ;;  %v8322_v38 = vld [vmem:[#allocation132_spill] sm:$0xff]  ;;  %v8323_v8 = vld [vmem:[#allocation111_spill] sm:$0xff]  ;;  %vm2489_vm2 = vweird.f32 %v2257_v11 }
 0x3b7   :  { %v2475_v55 = vmul.f32 %v4714_v17, %v2474_v39  ;;  %2103 = vmatmul.f32.gmra.mxu2 %v1935_v2  ;;  %v2472_v0 = vsel %vm2471_vm12, %v4712_v22, %v2468_v61 }
 0x3b8   :  { %2306 = vmatmul.f32.gmra.mxu3 %v1932_v15  ;;  %4542 = vmatmul.msk.f32.gmra.mxu0 %vm260_vm0, %v2472_v0  ;;  %8319 = vst [vmem:[#allocation109_spill] sm:$0xff] %v6315_v37  ;;  %v1934_v63 = vmul.f32 %v6315_v37, %v6315_v37  ;;  %v2054_v37 = vadd.f32 1e-05, %v2053_v56 }
 0x3b9   :  { %v2476_v16 = vmul.f32 0.5, %v2475_v55  ;;  %4606 = vmatmul.msk.f32.gmra.mxu1 %vm260_vm0, %v2472_v0  ;;  %v1937_v55 = vmul.f32 %v6310_v52, %v6310_v52 }
 0x3ba   :  { %v2056_v20 = vpop.f32.mrf.mxu2 }
 0x3bb   :  { %v2477_v29 = vsub.f32 1.5, %v2476_v16  ;;  %v6317_v39 = vpop.f32.mrf.mxu0  ;;  %v2259_v22 = vpop.f32.mrf.mxu3 }
 0x3bc   :  { %8320 = vst [vmem:[#allocation128_spill] sm:$0xff] %v6317_v39  ;;  %v4716_v2 = vpop.eup %4715  ;;  %v6319_v61 = vpop.f32.mrf.mxu1  ;;  %v2260_v15 = vadd.f32 %v2259_v22, %v2051_v30  ;;  %v6328_v30 = vsub.f32 %v8323_v8, %v8322_v38 }
 0x3bd   :  { %8321 = vst [vmem:[#allocation110_spill] sm:$0xff] %v6319_v61  ;;  %v2484_v0 = vmul.f32 %v4716_v2, %v2257_v11  ;;  %v2478_v28 = vmul.f32 %v4714_v17, %v2477_v29  ;;  %v8326_v29 = vld [vmem:[#allocation112_spill] sm:$0xff]  ;;  %vm2490_vm1 = vweird.f32 %v4716_v2 }
 0x3be   :  { %4717 = vrsqrt.f32 %v2260_v15  ;;  %8324 = vst [vmem:[#allocation132_spill] sm:$0xff] %v6328_v30  ;;  %v6333_v52 = vsub.f32 %v8326_v29, %v8325_v13  ;;  %vm2491_vm3 = vmor %vm2489_vm2, %vm2490_vm1  ;;  %v8331_v13 = vld [vmem:[#allocation113_spill] sm:$0xff]  ;;  %vm2499_vm5 = vweird.f32 %v2260_v15 }
 0x3bf   :  { %v2485_v9 = vmul.f32 %v4716_v2, %v2484_v0  ;;  %2106 = vmatmul.f32.gmra.mxu2 %v1937_v55  ;;  %v2482_v16 = vsel %vm2481_vm15, %v4714_v17, %v2478_v28  ;;  %v1939_v28 = vmul.f32 %v6328_v30, %v6328_v30 }
 0x3c0   :  { %2309 = vmatmul.f32.gmra.mxu3 %v1934_v63  ;;  %4543 = vmatmul.msk.f32.gmra.mxu0 %vm260_vm0, %v2482_v16  ;;  %8327 = vst [vmem:[#allocation111_spill] sm:$0xff] %v6333_v52 }
 0x3c1   :  { %v2486_v22 = vmul.f32 0.5, %v2485_v9  ;;  %4607 = vmatmul.msk.f32.gmra.mxu1 %vm260_vm0, %v2482_v16  ;;  %v1936_v16 = vmul.f32 %v6333_v52, %v6333_v52  ;;  %v2057_v52 = vadd.f32 1e-05, %v2056_v20 }
 0x3c2   :  { %v2059_v61 = vpop.f32.mrf.mxu2 }
 0x3c3   :  { %v2487_v39 = vsub.f32 1.5, %v2486_v22  ;;  %v2262_v0 = vpop.f32.mrf.mxu3  ;;  %v6337_v38 = vpop.f32.mrf.mxu0 }
 0x3c4   :  { %v4718_v17 = vpop.eup %4717  ;;  %v2263_v55 = vadd.f32 %v2262_v0, %v2054_v37  ;;  %8328 = vst [vmem:[#allocation129_spill] sm:$0xff] %v6337_v38  ;;  %v6341_v8 = vpop.f32.mrf.mxu1  ;;  %v8330_v37 = vld [vmem:[#allocation134_spill] sm:$0xff] }
 0x3c5   :  { %v2494_v63 = vmul.f32 %v4718_v17, %v2260_v15  ;;  %v2488_v9 = vmul.f32 %v4716_v2, %v2487_v39  ;;  %8329 = vst [vmem:[#allocation112_spill] sm:$0xff] %v6341_v8  ;;  %v6346_v11 = vsub.f32 %v8331_v13, %v8330_v37  ;;  %v8333_v39 = vld [vmem:[#allocation131_spill] sm:$0xff]  ;;  %v8334_v0 = vld [vmem:[#allocation114_spill] sm:$0xff]  ;;  %vm2500_vm4 = vweird.f32 %v4718_v17 }
 0x3c6   :  { %4719 = vrsqrt.f32 %v2263_v55  ;;  %v6351_v30 = vsub.f32 %v8334_v0, %v8333_v39  ;;  %vm2501_vm6 = vmor %vm2499_vm5, %vm2500_vm4  ;;  %v8338_v39 = vld [vmem:[#allocation115_spill] sm:$0xff]  ;;  %v8340_v0 = vld [vmem:[#allocation133_spill] sm:$0xff]  ;;  %vm2509_vm8 = vweird.f32 %v2263_v55 }
 0x3c7   :  { %v2495_v56 = vmul.f32 %v4718_v17, %v2494_v63  ;;  %2109 = vmatmul.f32.gmra.mxu2 %v1939_v28  ;;  %v2492_v22 = vsel %vm2491_vm3, %v4716_v2, %v2488_v9  ;;  %8332 = vst [vmem:[#allocation134_spill] sm:$0xff] %v6346_v11  ;;  %v1941_v9 = vmul.f32 %v6346_v11, %v6346_v11 }
 0x3c8   :  { %2312 = vmatmul.f32.gmra.mxu3 %v1936_v16  ;;  %4544 = vmatmul.msk.f32.gmra.mxu0 %vm260_vm0, %v2492_v22  ;;  %8335 = vst [vmem:[#allocation113_spill] sm:$0xff] %v6351_v30 }
 0x3c9   :  { %v2496_v29 = vmul.f32 0.5, %v2495_v56  ;;  %4608 = vmatmul.msk.f32.gmra.mxu1 %vm260_vm0, %v2492_v22  ;;  %v1938_v56 = vmul.f32 %v6351_v30, %v6351_v30 }
 0x3ca   :  { %v2062_v8 = vpop.f32.mrf.mxu2 }
 0x3cb   :  { %v2497_v38 = vsub.f32 1.5, %v2496_v29  ;;  %v2265_v63 = vpop.f32.mrf.mxu3  ;;  %v6357_v13 = vpop.f32.mrf.mxu0 }
 0x3cc   :  { %v4720_v2 = vpop.eup %4719  ;;  %v2266_v28 = vadd.f32 %v2265_v63, %v2057_v52  ;;  %v6359_v29 = vpop.f32.mrf.mxu1  ;;  %v8337_v52 = vld [vmem:[#allocation136_spill] sm:$0xff] }
 0x3cd   :  { %v2504_v16 = vmul.f32 %v4720_v2, %v2263_v55  ;;  %v2498_v37 = vmul.f32 %v4718_v17, %v2497_v38  ;;  %8336 = vst [vmem:[#allocation131_spill] sm:$0xff] %v6359_v29  ;;  %v6364_v15 = vsub.f32 %v8338_v39, %v8337_v52  ;;  %v8341_v63 = vld [vmem:[#allocation116_spill] sm:$0xff]  ;;  %vm2510_vm7 = vweird.f32 %v4720_v2  ;;  %v8345_v55 = vld [vmem:[#allocation135_spill] sm:$0xff] }
 0x3ce   :  { %4721 = vrsqrt.f32 %v2266_v28  ;;  %v6369_v11 = vsub.f32 %v8341_v63, %v8340_v0  ;;  %vm2511_vm9 = vmor %vm2509_vm8, %vm2510_vm7  ;;  %vm2519_vm11 = vweird.f32 %v2266_v28 }
 0x3cf   :  { %v2505_v22 = vmul.f32 %v4720_v2, %v2504_v16  ;;  %2112 = vmatmul.f32.gmra.mxu2 %v1941_v9  ;;  %v2502_v20 = vsel %vm2501_vm6, %v4718_v17, %v2498_v37  ;;  %8339 = vst [vmem:[#allocation114_spill] sm:$0xff] %v6364_v15  ;;  %v2060_v16 = vadd.f32 1e-05, %v2059_v61  ;;  %v1943_v29 = vmul.f32 %v6364_v15, %v6364_v15 }
 0x3d0   :  { %2315 = vmatmul.f32.gmra.mxu3 %v1938_v56  ;;  %4545 = vmatmul.msk.f32.gmra.mxu0 %vm260_vm0, %v2502_v20  ;;  %8342 = vst [vmem:[#allocation136_spill] sm:$0xff] %v6369_v11  ;;  %v2063_v15 = vadd.f32 1e-05, %v2062_v8 }
 0x3d1   :  { %v2506_v38 = vmul.f32 0.5, %v2505_v22  ;;  %4609 = vmatmul.msk.f32.gmra.mxu1 %vm260_vm0, %v2502_v20  ;;  %v1940_v22 = vmul.f32 %v6369_v11, %v6369_v11 }
 0x3d2   :  { %v2065_v30 = vpop.f32.mrf.mxu2 }
 0x3d3   :  { %v2507_v9 = vsub.f32 1.5, %v2506_v38  ;;  %v2268_v17 = vpop.f32.mrf.mxu3  ;;  %v8343_v38 = vld [vmem:[#allocation117_spill] sm:$0xff] }
 0x3d4   :  { %v4722_v37 = vpop.eup %4721  ;;  %v2269_v56 = vadd.f32 %v2268_v17, %v2060_v16  ;;  %v6378_v0 = vsub.f32 %v8343_v38, %v5877_v42  ;;  %v6380_v16 = vpop.f32.mrf.mxu0 }
 0x3d5   :  { %v2514_v52 = vmul.f32 %v4722_v37, %v2266_v28  ;;  %v2508_v39 = vmul.f32 %v4720_v2, %v2507_v9  ;;  %v8346_v9 = vld [vmem:[#allocation118_spill] sm:$0xff]  ;;  %vm2520_vm10 = vweird.f32 %v4722_v37  ;;  %v8351_v28 = vld [vmem:[#allocation137_spill] sm:$0xff] }
 0x3d6   :  { %4723 = vrsqrt.f32 %v2269_v56  ;;  %8344 = vst [vmem:[#allocation115_spill] sm:$0xff] %v6378_v0  ;;  %v6385_v17 = vsub.f32 %v8346_v9, %v8345_v55  ;;  %v1945_v42 = vmul.f32 %v6378_v0, %v6378_v0  ;;  %vm2521_vm12 = vmor %vm2519_vm11, %vm2520_vm10  ;;  %v2066_v0 = vadd.f32 1e-05, %v2065_v30 }
 0x3d7   :  { %v2515_v20 = vmul.f32 %v4722_v37, %v2514_v52  ;;  %2115 = vmatmul.f32.gmra.mxu2 %v1943_v29  ;;  %v2512_v61 = vsel %vm2511_vm9, %v4720_v2, %v2508_v39  ;;  %v6387_v52 = vpop.f32.mrf.mxu1  ;;  %vm2529_vm14 = vweird.f32 %v2269_v56 }
 0x3d8   :  { %2318 = vmatmul.f32.gmra.mxu3 %v1940_v22  ;;  %4546 = vmatmul.msk.f32.gmra.mxu0 %vm260_vm0, %v2512_v61  ;;  %8347 = vst [vmem:[#allocation133_spill] sm:$0xff] %v6385_v17 }
 0x3d9   :  { %v2516_v63 = vmul.f32 0.5, %v2515_v20  ;;  %4610 = vmatmul.msk.f32.gmra.mxu1 %vm260_vm0, %v2512_v61  ;;  %8348 = vst [vmem:[#allocation116_spill] sm:$0xff] %v6387_v52  ;;  %v1942_v61 = vmul.f32 %v6385_v17, %v6385_v17 }
 0x3da   :  { %v2068_v2 = vpop.f32.mrf.mxu2 }
 0x3db   :  { %v2517_v29 = vsub.f32 1.5, %v2516_v63  ;;  %v2271_v39 = vpop.f32.mrf.mxu3  ;;  %v8349_v63 = vld [vmem:[#allocation119_spill] sm:$0xff] }
 0x3dc   :  { %v4724_v22 = vpop.eup %4723  ;;  %v2272_v11 = vadd.f32 %v2271_v39, %v2063_v15  ;;  %v6396_v15 = vsub.f32 %v8349_v63, %v5890_v48 }
 0x3dd   :  { %v2524_v20 = vmul.f32 %v4724_v22, %v2269_v56  ;;  %v2518_v38 = vmul.f32 %v4722_v37, %v2517_v29  ;;  %v8352_v29 = vld [vmem:[#allocation120_spill] sm:$0xff]  ;;  %vm2530_vm13 = vweird.f32 %v4724_v22  ;;  %v8357_v56 = vld [vmem:[#allocation138_spill] sm:$0xff] }
 0x3de   :  { %4725 = vrsqrt.f32 %v2272_v11  ;;  %8350 = vst [vmem:[#allocation117_spill] sm:$0xff] %v6396_v15  ;;  %v6401_v39 = vsub.f32 %v8352_v29, %v8351_v28  ;;  %v1947_v48 = vmul.f32 %v6396_v15, %v6396_v15  ;;  %vm2531_vm15 = vmor %vm2529_vm14, %vm2530_vm13  ;;  %v8355_v28 = vld [vmem:[#allocation121_spill] sm:$0xff]  ;;  %v2069_v15 = vadd.f32 1e-05, %v2068_v2 }
 0x3df   :  { %v2525_v8 = vmul.f32 %v4724_v22, %v2524_v20  ;;  %2118 = vmatmul.f32.gmra.mxu2 %v1945_v42  ;;  %v2522_v55 = vsel %vm2521_vm12, %v4722_v37, %v2518_v38  ;;  %v6403_v20 = vpop.f32.mrf.mxu0  ;;  %v6405_v38 = vpop.f32.mrf.mxu1  ;;  %vm2539_vm2 = vweird.f32 %v2272_v11 }
 0x3e0   :  { %2321 = vmatmul.f32.gmra.mxu3 %v1942_v61  ;;  %4547 = vmatmul.msk.f32.gmra.mxu0 %vm260_vm0, %v2522_v55  ;;  %8353 = vst [vmem:[#allocation135_spill] sm:$0xff] %v6401_v39  ;;  %v1944_v63 = vmul.f32 %v6401_v39, %v6401_v39 }
 0x3e1   :  { %v2526_v9 = vmul.f32 0.5, %v2525_v8  ;;  %4611 = vmatmul.msk.f32.gmra.mxu1 %vm260_vm0, %v2522_v55  ;;  %8354 = vst [vmem:[#allocation118_spill] sm:$0xff] %v6405_v38 }
 0x3e2   :  { %v2071_v17 = vpop.f32.mrf.mxu2 }
 0x3e3   :  { %v2527_v52 = vsub.f32 1.5, %v2526_v9  ;;  %v2274_v37 = vpop.f32.mrf.mxu3 }
 0x3e4   :  { %v4726_v42 = vpop.eup %4725  ;;  %v2275_v61 = vadd.f32 %v2274_v37, %v2066_v0  ;;  %v6414_v0 = vsub.f32 %v8355_v28, %v5907_v41 }
 0x3e5   :  { %v2534_v8 = vmul.f32 %v4726_v42, %v2272_v11  ;;  %v2528_v55 = vmul.f32 %v4724_v22, %v2527_v52  ;;  %v8358_v52 = vld [vmem:[#allocation122_spill] sm:$0xff]  ;;  %vm2540_vm1 = vweird.f32 %v4726_v42 }
 0x3e6   :  { %4727 = vrsqrt.f32 %v2275_v61  ;;  %8356 = vst [vmem:[#allocation119_spill] sm:$0xff] %v6414_v0  ;;  %v6419_v37 = vsub.f32 %v8358_v52, %v8357_v56  ;;  %vm2541_vm3 = vmor %vm2539_vm2, %vm2540_vm1  ;;  %v8364_v52 = vld [vmem:[#allocation124_spill] sm:$0xff]  ;;  %vm2549_vm5 = vweird.f32 %v2275_v61 }
 0x3e7   :  { %v2535_v30 = vmul.f32 %v4726_v42, %v2534_v8  ;;  %2121 = vmatmul.f32.gmra.mxu2 %v1947_v48  ;;  %v2532_v9 = vsel %vm2531_vm15, %v4724_v22, %v2528_v55  ;;  %v1949_v55 = vmul.f32 %v6414_v0, %v6414_v0  ;;  %v6423_v41 = vpop.f32.mrf.mxu0  ;;  %v6427_v28 = vpop.f32.mrf.mxu1  ;;  %v2072_v0 = vadd.f32 1e-05, %v2071_v17 }
 0x3e8   :  { %2324 = vmatmul.f32.gmra.mxu3 %v1944_v63  ;;  %4548 = vmatmul.msk.f32.gmra.mxu0 %vm260_vm0, %v2532_v9  ;;  %8359 = vst [vmem:[#allocation137_spill] sm:$0xff] %v6419_v37 }
 0x3e9   :  { %v2536_v29 = vmul.f32 0.5, %v2535_v30  ;;  %4612 = vmatmul.msk.f32.gmra.mxu1 %vm260_vm0, %v2532_v9  ;;  %v1946_v9 = vmul.f32 %v6419_v37, %v6419_v37  ;;  %8360 = vst [vmem:[#allocation120_spill] sm:$0xff] %v6427_v28 }
 0x3ea   :  { %v2074_v39 = vpop.f32.mrf.mxu2 }
 0x3eb   :  { %v2537_v38 = vsub.f32 1.5, %v2536_v29  ;;  %v2277_v8 = vpop.f32.mrf.mxu3 }
 0x3ec   :  { %v4728_v22 = vpop.eup %4727  ;;  %v2278_v48 = vadd.f32 %v2277_v8, %v2069_v15  ;;  %v8361_v15 = vld [vmem:[#allocation123_spill] sm:$0xff] }
 0x3ed   :  { %v2544_v63 = vmul.f32 %v4728_v22, %v2275_v61  ;;  %v2538_v30 = vmul.f32 %v4726_v42, %v2537_v38  ;;  %v6432_v11 = vsub.f32 %v8361_v15, %v5925_v12  ;;  %v8363_v38 = vld [vmem:[#allocation139_spill] sm:$0xff]  ;;  %vm2550_vm4 = vweird.f32 %v4728_v22 }
 0x3ee   :  { %4729 = vrsqrt.f32 %v2278_v48  ;;  %v6437_v8 = vsub.f32 %v8364_v52, %v8363_v38  ;;  %vm2551_vm6 = vmor %vm2549_vm5, %vm2550_vm4  ;;  %v8368_v38 = vld [vmem:[#allocation126_spill] sm:$0xff]  ;;  %vm2559_vm8 = vweird.f32 %v2278_v48 }
 0x3ef   :  { %v2545_v2 = vmul.f32 %v4728_v22, %v2544_v63  ;;  %2124 = vmatmul.f32.gmra.mxu2 %v1949_v55  ;;  %v2542_v29 = vsel %vm2541_vm3, %v4726_v42, %v2538_v30  ;;  %8362 = vst [vmem:[#allocation121_spill] sm:$0xff] %v6432_v11  ;;  %v1951_v30 = vmul.f32 %v6432_v11, %v6432_v11 }
 0x3f0   :  { %2327 = vmatmul.f32.gmra.mxu3 %v1946_v9  ;;  %4549 = vmatmul.msk.f32.gmra.mxu0 %vm260_vm0, %v2542_v29  ;;  %8365 = vst [vmem:[#allocation138_spill] sm:$0xff] %v6437_v8  ;;  %v6455_v52 = vsub.f32 %v8368_v38, %v5909_v33 }
 0x3f1   :  { %v2546_v56 = vmul.f32 0.5, %v2545_v2  ;;  %4613 = vmatmul.msk.f32.gmra.mxu1 %vm260_vm0, %v2542_v29  ;;  %v1948_v2 = vmul.f32 %v6437_v8, %v6437_v8  ;;  %v6443_v29 = vpop.f32.mrf.mxu0 }
 0x3f2   :  { %v2077_v37 = vpop.f32.mrf.mxu2  ;;  %8369 = vst [vmem:[#allocation123_spill] sm:$0xff] %v6455_v52 }
 0x3f3   :  { %v2547_v28 = vsub.f32 1.5, %v2546_v56  ;;  %v2280_v63 = vpop.f32.mrf.mxu3  ;;  %v6445_v56 = vpop.f32.mrf.mxu1 }
 0x3f4   :  { %v4730_v42 = vpop.eup %4729  ;;  %v2281_v55 = vadd.f32 %v2280_v63, %v2072_v0  ;;  %v8366_v0 = vld [vmem:[#allocation125_spill] sm:$0xff]  ;;  %v2075_v63 = vadd.f32 1e-05, %v2074_v39 }
 0x3f5   :  { %v2554_v12 = vmul.f32 %v4730_v42, %v2278_v48  ;;  %v2548_v9 = vmul.f32 %v4728_v22, %v2547_v28  ;;  %v6450_v61 = vsub.f32 %v8366_v0, %v5943_v26  ;;  %vm2560_vm7 = vweird.f32 %v4730_v42 }
 0x3f6   :  { %4731 = vrsqrt.f32 %v2281_v55  ;;  %vm2561_vm9 = vmor %vm2559_vm8, %vm2560_vm7  ;;  %vm2569_vm11 = vweird.f32 %v2281_v55 }
 0x3f7   :  { %v2555_v17 = vmul.f32 %v4730_v42, %v2554_v12  ;;  %2127 = vmatmul.f32.gmra.mxu2 %v1951_v30  ;;  %v2552_v15 = vsel %vm2551_vm6, %v4728_v22, %v2548_v9  ;;  %8367 = vst [vmem:[#allocation122_spill] sm:$0xff] %v6450_v61  ;;  %v1953_v11 = vmul.f32 %v6450_v61, %v6450_v61 }
 0x3f8   :  { %2330 = vmatmul.f32.gmra.mxu3 %v1948_v2  ;;  %4550 = vmatmul.msk.f32.gmra.mxu0 %vm260_vm0, %v2552_v15 }
 0x3f9   :  { %v2556_v28 = vmul.f32 0.5, %v2555_v17  ;;  %4614 = vmatmul.msk.f32.gmra.mxu1 %vm260_vm0, %v2552_v15  ;;  %v1950_v17 = vmul.f32 %v6455_v52, %v6455_v52  ;;  %v8370_v15 = vld [vmem:[#allocation2_spill] sm:$0xff]  ;;  %v6466_v38 = vpop.f32.mrf.mxu0 }
 0x3fa   :  { %v2080_v12 = vpop.f32.mrf.mxu2 }
 0x3fb   :  { %v2557_v30 = vsub.f32 1.5, %v2556_v28  ;;  %v2283_v22 = vpop.f32.mrf.mxu3  ;;  %v6464_v28 = vsub.f32 %v8370_v15, %v5961_v18 }
 0x3fc   :  { %v4732_v9 = vpop.eup %4731  ;;  %v2284_v2 = vadd.f32 %v2283_v22, %v2075_v63  ;;  %v8372_v63 = vld [vmem:[#allocation3_spill] sm:$0xff]  ;;  %v6473_v22 = vpop.f32.mrf.mxu1 }
 0x3fd   :  { %v2564_v26 = vmul.f32 %v4732_v9, %v2281_v55  ;;  %v2558_v0 = vmul.f32 %v4730_v42, %v2557_v30  ;;  %8371 = vst [vmem:[#allocation139_spill] sm:$0xff] %v6464_v28  ;;  %v6471_v30 = vsub.f32 %v8372_v63, %v5927_v24  ;;  %vm2570_vm10 = vweird.f32 %v4732_v9  ;;  %v8376_v55 = vld [vmem:[#allocation5_spill] sm:$0xff] }
 0x3fe   :  { %4733 = vrsqrt.f32 %v2284_v2  ;;  %v1955_v18 = vmul.f32 %v6464_v28, %v6464_v28  ;;  %vm2571_vm12 = vmor %vm2569_vm11, %vm2570_vm10  ;;  %vm2579_vm14 = vweird.f32 %v2284_v2 }
 0x3ff   :  { %v2565_v33 = vmul.f32 %v4732_v9, %v2564_v26  ;;  %2130 = vmatmul.f32.gmra.mxu2 %v1953_v11  ;;  %v2562_v39 = vsel %vm2561_vm9, %v4730_v42, %v2558_v0  ;;  %8373 = vst [vmem:[#allocation124_spill] sm:$0xff] %v6471_v30  ;;  %v2078_v11 = vadd.f32 1e-05, %v2077_v37 }
 0x400   :  { %2333 = vmatmul.f32.gmra.mxu3 %v1950_v17  ;;  %4551 = vmatmul.msk.f32.gmra.mxu0 %vm260_vm0, %v2562_v39 }
 0x401   :  { %v2566_v48 = vmul.f32 0.5, %v2565_v33  ;;  %4615 = vmatmul.msk.f32.gmra.mxu1 %vm260_vm0, %v2562_v39  ;;  %v1952_v39 = vmul.f32 %v6471_v30, %v6471_v30  ;;  %v6489_v30 = vpop.f32.mrf.mxu0 }
 0x402   :  { %v2083_v42 = vpop.f32.mrf.mxu2 }
 0x403   :  { %v2567_v26 = vsub.f32 1.5, %v2566_v48  ;;  %v2286_v0 = vpop.f32.mrf.mxu3  ;;  %v8374_v48 = vld [vmem:[#allocation4_spill] sm:$0xff] }
 0x404   :  { %v4734_v17 = vpop.eup %4733  ;;  %v2287_v61 = vadd.f32 %v2286_v0, %v2078_v11  ;;  %v6482_v63 = vsub.f32 %v8374_v48, %v5979_v49  ;;  %v2081_v0 = vadd.f32 1e-05, %v2080_v12 }
 0x405   :  { %v2574_v33 = vmul.f32 %v4734_v17, %v2284_v2  ;;  %v2568_v15 = vmul.f32 %v4732_v9, %v2567_v26  ;;  %v6487_v26 = vsub.f32 %v8376_v55, %v5945_v53  ;;  %vm2580_vm13 = vweird.f32 %v4734_v17  ;;  %v8381_v2 = vld [vmem:[#allocation7_spill] sm:$0xff] }
 0x406   :  { %4735 = vrsqrt.f32 %v2287_v61  ;;  %8375 = vst [vmem:[#allocation125_spill] sm:$0xff] %v6482_v63  ;;  %v1957_v49 = vmul.f32 %v6482_v63, %v6482_v63  ;;  %vm2581_vm15 = vmor %vm2579_vm14, %vm2580_vm13  ;;  %vm2589_vm2 = vweird.f32 %v2287_v61 }
 0x407   :  { %v2575_v24 = vmul.f32 %v4734_v17, %v2574_v33  ;;  %2133 = vmatmul.f32.gmra.mxu2 %v1955_v18  ;;  %v2572_v37 = vsel %vm2571_vm12, %v4732_v9, %v2568_v15  ;;  %8377 = vst [vmem:[#allocation126_spill] sm:$0xff] %v6487_v26  ;;  %v6491_v15 = vpop.f32.mrf.mxu1  ;;  %v1954_v53 = vmul.f32 %v6487_v26, %v6487_v26 }
 0x408   :  { %2336 = vmatmul.f32.gmra.mxu3 %v1952_v39  ;;  %4552 = vmatmul.msk.f32.gmra.mxu0 %vm260_vm0, %v2572_v37  ;;  %8378 = vst [vmem:[#allocation2_spill] sm:$0xff] %v6491_v15 }
 0x409   :  { %v2576_v11 = vmul.f32 0.5, %v2575_v24  ;;  %4616 = vmatmul.msk.f32.gmra.mxu1 %vm260_vm0, %v2572_v37 }
 0x40a   :  { %v2086_v28 = vpop.f32.mrf.mxu2 }
 0x40b   :  { %v2577_v18 = vsub.f32 1.5, %v2576_v11  ;;  %v2289_v9 = vpop.f32.mrf.mxu3  ;;  %v8379_v11 = vld [vmem:[#allocation6_spill] sm:$0xff] }
 0x40c   :  { %v4736_v33 = vpop.eup %4735  ;;  %v6493_v39 = vadd.f32 %v2289_v9, %v2081_v0  ;;  %v6503_v55 = vsub.f32 %v8379_v11, %v5997_v31  ;;  %v2084_v9 = vadd.f32 1e-05, %v2083_v42  ;;  %v6514_v31 = vpop.f32.mrf.mxu0 }
 0x40d   :  { %v2584_v24 = vmul.f32 %v4736_v33, %v2287_v61  ;;  %v2578_v37 = vmul.f32 %v4734_v17, %v2577_v18  ;;  %v6508_v18 = vsub.f32 %v8381_v2, %v5963_v23  ;;  %vm2590_vm1 = vweird.f32 %v4736_v33 }
 0x40e   :  { %4737 = vrsqrt.f32 %v6493_v39  ;;  %8380 = vst [vmem:[#allocation3_spill] sm:$0xff] %v6503_v55  ;;  %vm2591_vm3 = vmor %vm2589_vm2, %vm2590_vm1  ;;  %vm2599_vm5 = vweird.f32 %v6493_v39 }
 0x40f   :  { %v2585_v12 = vmul.f32 %v4736_v33, %v2584_v24  ;;  %2136 = vmatmul.f32.gmra.mxu2 %v1957_v49  ;;  %v2582_v48 = vsel %vm2581_vm15, %v4734_v17, %v2578_v37  ;;  %8382 = vst [vmem:[#allocation4_spill] sm:$0xff] %v6508_v18  ;;  %v1959_v37 = vmul.f32 %v6503_v55, %v6503_v55  ;;  %v6519_v42 = vpop.f32.mrf.mxu1 }
 0x410   :  { %2339 = vmatmul.f32.gmra.mxu3 %v1954_v53  ;;  %4553 = vmatmul.msk.f32.gmra.mxu0 %vm260_vm0, %v2582_v48  ;;  %v1956_v23 = vmul.f32 %v6508_v18, %v6508_v18  ;;  %8383 = vst [vmem:[#allocation5_spill] sm:$0xff] %v6519_v42  ;;  %v8388_v18 = vld [vmem:[#allocation22_spill] sm:$0xff] }
 0x411   :  { %v2586_v0 = vmul.f32 0.5, %v2585_v12  ;;  %4617 = vmatmul.msk.f32.gmra.mxu1 %vm260_vm0, %v2582_v48 }
 0x412   :  { %v2089_v63 = vpop.f32.mrf.mxu2 }
 0x413   :  { %v2587_v26 = vsub.f32 1.5, %v2586_v0  ;;  %v2292_v24 = vpop.f32.mrf.mxu3  ;;  %v8384_v0 = vld [vmem:[#allocation8_spill] sm:$0xff] }
 0x414   :  { %v4738_v17 = vpop.eup %4737  ;;  %v6510_v49 = vadd.f32 %v2292_v24, %v2084_v9  ;;  %v6524_v2 = vsub.f32 %v8384_v0, %v6015_v35  ;;  %v8386_v9 = vld [vmem:[#allocation9_spill] sm:$0xff] }
 0x415   :  { %v2594_v53 = vmul.f32 %v4738_v17, %v6493_v39  ;;  %v2588_v12 = vmul.f32 %v4736_v33, %v2587_v26  ;;  %v3811_v26 = vld [vmem:[%s7842_s4] sm:$0x3]  ;;  %v6533_v24 = vsub.f32 %v8386_v9, %v5981_v50  ;;  %vm2600_vm4 = vweird.f32 %v4738_v17  ;;  %v8389_v39 = vld [vmem:[#allocation25_spill] sm:$0xff] }
 0x416   :  { %4739 = vrsqrt.f32 %v6510_v49  ;;  %8385 = vst [vmem:[#allocation6_spill] sm:$0xff] %v6524_v2  ;;  %v6544_v0 = vperm.slane %v3811_v26, 0  ;;  %vm2601_vm6 = vmor %vm2599_vm5, %vm2600_vm4  ;;  %vm2609_vm8 = vweird.f32 %v6510_v49 }
 0x417   :  { %v2595_v48 = vmul.f32 %v4738_v17, %v2594_v53  ;;  %2139 = vmatmul.f32.gmra.mxu2 %v1959_v37  ;;  %v2592_v11 = vsel %vm2591_vm3, %v4736_v33, %v2588_v12  ;;  %8387 = vst [vmem:[#allocation7_spill] sm:$0xff] %v6533_v24  ;;  %v2087_v37 = vadd.f32 1e-05, %v2086_v28  ;;  %v3945_v12 = vld [vmem:[%s7843_s5] sm:$0x3]  ;;  %v1958_v55 = vmul.f32 %v6533_v24, %v6533_v24 }
 0x418   :  { %2342 = vmatmul.f32.gmra.mxu3 %v1956_v23  ;;  %4554 = vmatmul.msk.f32.gmra.mxu0 %vm260_vm0, %v2592_v11  ;;  %v6558_v42 = vperm.slane %v3945_v12, 1 }
 0x419   :  { %v2596_v61 = vmul.f32 0.5, %v2595_v48  ;;  %4618 = vmatmul.msk.f32.gmra.mxu1 %vm260_vm0, %v2592_v11  ;;  %v1961_v48 = vmul.f32 %v6524_v2, %v6524_v2  ;;  %v6554_v2 = vperm.slane %v3945_v12, 0 }
 0x41a   :  { %v6535_v33 = vpop.f32.mrf.mxu2 }
 0x41b   :  { %v2597_v53 = vsub.f32 1.5, %v2596_v61  ;;  %v2295_v35 = vpop.f32.mrf.mxu3  ;;  %v6548_v61 = vperm.slane %v3811_v26, 1 }
 0x41c   :  { %v4740_v23 = vpop.eup %4739  ;;  %v6542_v11 = vadd.f32 %v2295_v35, %v2087_v37 }
 0x41d   :  { %v2604_v50 = vmul.f32 %v4740_v23, %v6510_v49  ;;  %v3282_v28 = vpop.f32.mrf.mxu0  ;;  %v2598_v9 = vmul.f32 %v4738_v17, %v2597_v53  ;;  %v8390_v53 = vld [vmem:[#allocation10_spill] sm:$0xff]  ;;  %vm2610_vm7 = vweird.f32 %v4740_v23  ;;  %v8393_v49 = vld [vmem:[#allocation29_spill] sm:$0xff] }
 0x41e   :  { %4741 = vrsqrt.f32 %v6542_v11  ;;  %v3683_v52 = vmul.f32 %v3282_v28, %v8388_v18  ;;  %v3491_v37 = vpop.f32.mrf.mxu1  ;;  %v6562_v15 = vsub.f32 %v8390_v53, %v6033_v58  ;;  %v8392_v53 = vld [vmem:[#allocation26_spill] sm:$0xff]  ;;  %vm2611_vm9 = vmor %vm2609_vm8, %vm2610_vm7  ;;  %vm2619_vm11 = vweird.f32 %v6542_v11 }
 0x41f   :  { %v2605_v35 = vmul.f32 %v4740_v23, %v2604_v50  ;;  %v3684_v8 = vmul.f32 %v3491_v37, %v8389_v39  ;;  %2142 = vmatmul.f32.gmra.mxu2 %v1961_v48  ;;  %v2602_v26 = vsel %vm2601_vm6, %v4738_v17, %v2598_v9  ;;  %v8391_v50 = vld [vmem:[#allocation11_spill] sm:$0xff]  ;;  %v2090_v48 = vadd.f32 1e-05, %v2089_v63 }
 0x420   :  { %v3817_v24 = vmul.f32 %v6544_v0, %v3683_v52  ;;  %2345 = vmatmul.f32.gmra.mxu3 %v1958_v55  ;;  %4555 = vmatmul.msk.f32.gmra.mxu0 %vm260_vm0, %v2602_v26  ;;  %v6570_v12 = vsub.f32 %v8391_v50, %v5999_v27 }
 0x421   :  { %v2606_v18 = vmul.f32 0.5, %v2605_v35  ;;  %v3818_v28 = vmul.f32 %v6548_v61, %v3684_v8  ;;  %4619 = vmatmul.msk.f32.gmra.mxu1 %vm260_vm0, %v2602_v26  ;;  %v1963_v8 = vmul.f32 %v6562_v15, %v6562_v15 }
 0x422   :  { %v3951_v17 = vadd.f32 %v6554_v2, %v3817_v24  ;;  %v6573_v9 = vpop.f32.mrf.mxu2  ;;  %v1960_v26 = vmul.f32 %v6570_v12, %v6570_v12 }
 0x423   :  { %v2607_v58 = vsub.f32 1.5, %v2606_v18  ;;  %v3952_v52 = vadd.f32 %v6558_v42, %v3818_v28  ;;  %v2298_v55 = vpop.f32.mrf.mxu3 }
 0x424   :  { %v4742_v37 = vpop.eup %4741  ;;  %v6578_v35 = vadd.f32 %v2298_v55, %v2090_v48 }
 0x425   :  { %v2614_v27 = vmul.f32 %v4742_v37, %v6542_v11  ;;  %v4079_v63 = vpack.c.bf16 %v3952_v52, %v3951_v17  ;;  %v3285_v39 = vpop.f32.mrf.mxu0  ;;  %v2608_v24 = vmul.f32 %v4740_v23, %v2607_v58  ;;  %v8394_v58 = vld [vmem:[#allocation12_spill] sm:$0xff]  ;;  %vm2620_vm10 = vweird.f32 %v4742_v37  ;;  %v8397_v11 = vld [vmem:[#allocation33_spill] sm:$0xff] }
 0x426   :  { %4743 = vrsqrt.f32 %v6578_v35  ;;  %v3685_v18 = vmul.f32 %v3285_v39, %v8392_v53  ;;  %v3494_v28 = vpop.f32.mrf.mxu1  ;;  %v6592_v52 = vsub.f32 %v8394_v58, %v6051_v43  ;;  %vm2621_vm12 = vmor %vm2619_vm11, %vm2620_vm10  ;;  %vm2629_vm14 = vweird.f32 %v6578_v35 }
 0x427   :  { %v2615_v50 = vmul.f32 %v4742_v37, %v2614_v27  ;;  %4143 = vst [vmem:[%s7844_s6] sm:$0xff] %v4079_v63  ;;  %v3686_v48 = vmul.f32 %v3494_v28, %v8393_v49  ;;  %2145 = vmatmul.f32.gmra.mxu2 %v1963_v8  ;;  %v2612_v17 = vsel %vm2611_vm9, %v4740_v23, %v2608_v24  ;;  %v8395_v63 = vld [vmem:[#allocation13_spill] sm:$0xff]  ;;  %v2093_v23 = vadd.f32 1e-05, %v6535_v33 }
 0x428   :  { %v3819_v55 = vmul.f32 %v6544_v0, %v3685_v18  ;;  %2348 = vmatmul.f32.gmra.mxu3 %v1960_v26  ;;  %4556 = vmatmul.msk.f32.gmra.mxu0 %vm260_vm0, %v2612_v17  ;;  %v6600_v53 = vsub.f32 %v8395_v63, %v6017_v1 }
 0x429   :  { %v2616_v39 = vmul.f32 0.5, %v2615_v50  ;;  %v3820_v27 = vmul.f32 %v6548_v61, %v3686_v48  ;;  %4620 = vmatmul.msk.f32.gmra.mxu1 %vm260_vm0, %v2612_v17  ;;  %v1965_v50 = vmul.f32 %v6592_v52, %v6592_v52 }
 0x42a   :  { %v3953_v8 = vadd.f32 %v6554_v2, %v3819_v55  ;;  %v6604_v43 = vpop.f32.mrf.mxu2  ;;  %v1962_v58 = vmul.f32 %v6600_v53, %v6600_v53  ;;  %v8396_v55 = vld [vmem:[#allocation30_spill] sm:$0xff] }
 0x42b   :  { %v2617_v24 = vsub.f32 1.5, %v2616_v39  ;;  %v3954_v26 = vadd.f32 %v6558_v42, %v3820_v27  ;;  %v2301_v18 = vpop.f32.mrf.mxu3 }
 0x42c   :  { %v4744_v28 = vpop.eup %4743  ;;  %v6609_v49 = vadd.f32 %v2301_v18, %v2093_v23 }
 0x42d   :  { %v2624_v1 = vmul.f32 %v4744_v28, %v6578_v35  ;;  %v4080_v33 = vpack.c.bf16 %v3954_v26, %v3953_v8  ;;  %v3288_v48 = vpop.f32.mrf.mxu0  ;;  %v2618_v17 = vmul.f32 %v4742_v37, %v2617_v24  ;;  %v8398_v24 = vld [vmem:[#allocation14_spill] sm:$0xff]  ;;  %vm2630_vm13 = vweird.f32 %v4744_v28  ;;  %v8401_v35 = vld [vmem:[#allocation37_spill] sm:$0xff] }
 0x42e   :  { %4745 = vrsqrt.f32 %v6609_v49  ;;  %v3687_v39 = vmul.f32 %v3288_v48, %v8396_v55  ;;  %v3497_v27 = vpop.f32.mrf.mxu1  ;;  %v6623_v26 = vsub.f32 %v8398_v24, %v6069_v46  ;;  %vm2631_vm15 = vmor %vm2629_vm14, %vm2630_vm13  ;;  %vm2639_vm2 = vweird.f32 %v6609_v49 }
 0x42f   :  { %v2625_v63 = vmul.f32 %v4744_v28, %v2624_v1  ;;  %4144 = vst [vmem:[%s7844_s6 + $0x8] sm:$0xff] %v4080_v33  ;;  %v3688_v23 = vmul.f32 %v3497_v27, %v8397_v11  ;;  %2148 = vmatmul.f32.gmra.mxu2 %v1965_v50  ;;  %v2622_v8 = vsel %vm2621_vm12, %v4742_v37, %v2618_v17  ;;  %v8399_v33 = vld [vmem:[#allocation15_spill] sm:$0xff]  ;;  %v2096_v37 = vadd.f32 1e-05, %v6573_v9 }
 0x430   :  { %v3821_v18 = vmul.f32 %v6544_v0, %v3687_v39  ;;  %2351 = vmatmul.f32.gmra.mxu3 %v1962_v58  ;;  %4557 = vmatmul.msk.f32.gmra.mxu0 %vm260_vm0, %v2622_v8  ;;  %v6631_v55 = vsub.f32 %v8399_v33, %v6035_v40 }
 0x431   :  { %v2626_v48 = vmul.f32 0.5, %v2625_v63  ;;  %v3822_v1 = vmul.f32 %v6548_v61, %v3688_v23  ;;  %4621 = vmatmul.msk.f32.gmra.mxu1 %vm260_vm0, %v2622_v8  ;;  %v1967_v63 = vmul.f32 %v6623_v26, %v6623_v26 }
 0x432   :  { %v3955_v50 = vadd.f32 %v6554_v2, %v3821_v18  ;;  %v6635_v46 = vpop.f32.mrf.mxu2  ;;  %v1964_v24 = vmul.f32 %v6631_v55, %v6631_v55  ;;  %v8400_v18 = vld [vmem:[#allocation34_spill] sm:$0xff] }
 0x433   :  { %v2627_v17 = vsub.f32 1.5, %v2626_v48  ;;  %v3956_v58 = vadd.f32 %v6558_v42, %v3822_v1  ;;  %v2304_v39 = vpop.f32.mrf.mxu3 }
 0x434   :  { %v4746_v27 = vpop.eup %4745  ;;  %v6640_v11 = vadd.f32 %v2304_v39, %v2096_v37 }
 0x435   :  { %v2634_v40 = vmul.f32 %v4746_v27, %v6609_v49  ;;  %v4081_v9 = vpack.c.bf16 %v3956_v58, %v3955_v50  ;;  %v3291_v23 = vpop.f32.mrf.mxu0  ;;  %v2628_v8 = vmul.f32 %v4744_v28, %v2627_v17  ;;  %v8402_v17 = vld [vmem:[#allocation16_spill] sm:$0xff]  ;;  %vm2640_vm1 = vweird.f32 %v4746_v27  ;;  %v8405_v49 = vld [vmem:[#allocation41_spill] sm:$0xff] }
 0x436   :  { %4747 = vrsqrt.f32 %v6640_v11  ;;  %v3689_v48 = vmul.f32 %v3291_v23, %v8400_v18  ;;  %v3500_v1 = vpop.f32.mrf.mxu1  ;;  %v6654_v58 = vsub.f32 %v8402_v17, %v6087_v51  ;;  %vm2641_vm3 = vmor %vm2639_vm2, %vm2640_vm1  ;;  %vm2649_vm5 = vweird.f32 %v6640_v11 }
 0x437   :  { %v2635_v33 = vmul.f32 %v4746_v27, %v2634_v40  ;;  %4145 = vst [vmem:[%s7844_s6 + $0x10] sm:$0xff] %v4081_v9  ;;  %v3690_v37 = vmul.f32 %v3500_v1, %v8401_v35  ;;  %2151 = vmatmul.f32.gmra.mxu2 %v1967_v63  ;;  %v2632_v50 = vsel %vm2631_vm15, %v4744_v28, %v2628_v8  ;;  %v8403_v9 = vld [vmem:[#allocation17_spill] sm:$0xff]  ;;  %v2099_v28 = vadd.f32 1e-05, %v6604_v43 }
 0x438   :  { %v3823_v39 = vmul.f32 %v6544_v0, %v3689_v48  ;;  %2354 = vmatmul.f32.gmra.mxu3 %v1964_v24  ;;  %4558 = vmatmul.msk.f32.gmra.mxu0 %vm260_vm0, %v2632_v50  ;;  %v6662_v18 = vsub.f32 %v8403_v9, %v6053_v19 }
 0x439   :  { %v2636_v23 = vmul.f32 0.5, %v2635_v33  ;;  %v3824_v40 = vmul.f32 %v6548_v61, %v3690_v37  ;;  %4622 = vmatmul.msk.f32.gmra.mxu1 %vm260_vm0, %v2632_v50  ;;  %v1969_v33 = vmul.f32 %v6654_v58, %v6654_v58 }
 0x43a   :  { %v3957_v63 = vadd.f32 %v6554_v2, %v3823_v39  ;;  %v6666_v51 = vpop.f32.mrf.mxu2  ;;  %v1966_v17 = vmul.f32 %v6662_v18, %v6662_v18  ;;  %v8404_v39 = vld [vmem:[#allocation38_spill] sm:$0xff] }
 0x43b   :  { %v2637_v8 = vsub.f32 1.5, %v2636_v23  ;;  %v3958_v24 = vadd.f32 %v6558_v42, %v3824_v40  ;;  %v2307_v48 = vpop.f32.mrf.mxu3 }
 0x43c   :  { %v4748_v1 = vpop.eup %4747  ;;  %v6671_v35 = vadd.f32 %v2307_v48, %v2099_v28 }
 0x43d   :  { %v2644_v19 = vmul.f32 %v4748_v1, %v6640_v11  ;;  %v4082_v43 = vpack.c.bf16 %v3958_v24, %v3957_v63  ;;  %v3294_v37 = vpop.f32.mrf.mxu0  ;;  %v2638_v50 = vmul.f32 %v4746_v27, %v2637_v8  ;;  %v8406_v8 = vld [vmem:[#allocation18_spill] sm:$0xff]  ;;  %vm2650_vm4 = vweird.f32 %v4748_v1  ;;  %v8409_v11 = vld [vmem:[#allocation45_spill] sm:$0xff] }
 0x43e   :  { %4749 = vrsqrt.f32 %v6671_v35  ;;  %v3691_v23 = vmul.f32 %v3294_v37, %v8404_v39  ;;  %v3503_v40 = vpop.f32.mrf.mxu1  ;;  %v6685_v24 = vsub.f32 %v8406_v8, %v6105_v54  ;;  %vm2651_vm6 = vmor %vm2649_vm5, %vm2650_vm4  ;;  %vm2659_vm8 = vweird.f32 %v6671_v35 }
 0x43f   :  { %v2645_v9 = vmul.f32 %v4748_v1, %v2644_v19  ;;  %4146 = vst [vmem:[%s7844_s6 + $0x18] sm:$0xff] %v4082_v43  ;;  %v3692_v28 = vmul.f32 %v3503_v40, %v8405_v49  ;;  %2154 = vmatmul.f32.gmra.mxu2 %v1969_v33  ;;  %v2642_v63 = vsel %vm2641_vm3, %v4746_v27, %v2638_v50  ;;  %v8407_v43 = vld [vmem:[#allocation19_spill] sm:$0xff]  ;;  %v2102_v27 = vadd.f32 1e-05, %v6635_v46 }
 0x440   :  { %v3825_v48 = vmul.f32 %v6544_v0, %v3691_v23  ;;  %2357 = vmatmul.f32.gmra.mxu3 %v1966_v17  ;;  %4559 = vmatmul.msk.f32.gmra.mxu0 %vm260_vm0, %v2642_v63  ;;  %v6693_v39 = vsub.f32 %v8407_v43, %v6071_v36 }
 0x441   :  { %v2646_v37 = vmul.f32 0.5, %v2645_v9  ;;  %v3826_v19 = vmul.f32 %v6548_v61, %v3692_v28  ;;  %4623 = vmatmul.msk.f32.gmra.mxu1 %vm260_vm0, %v2642_v63  ;;  %v1971_v9 = vmul.f32 %v6685_v24, %v6685_v24 }
 0x442   :  { %v3959_v33 = vadd.f32 %v6554_v2, %v3825_v48  ;;  %v6697_v54 = vpop.f32.mrf.mxu2  ;;  %v1968_v8 = vmul.f32 %v6693_v39, %v6693_v39  ;;  %v8408_v48 = vld [vmem:[#allocation42_spill] sm:$0xff] }
 0x443   :  { %v2647_v50 = vsub.f32 1.5, %v2646_v37  ;;  %v3960_v17 = vadd.f32 %v6558_v42, %v3826_v19  ;;  %v2310_v23 = vpop.f32.mrf.mxu3 }
 0x444   :  { %v4750_v40 = vpop.eup %4749  ;;  %v6702_v49 = vadd.f32 %v2310_v23, %v2102_v27 }
 0x445   :  { %v2654_v36 = vmul.f32 %v4750_v40, %v6671_v35  ;;  %v4083_v46 = vpack.c.bf16 %v3960_v17, %v3959_v33  ;;  %v3297_v28 = vpop.f32.mrf.mxu0  ;;  %v2648_v63 = vmul.f32 %v4748_v1, %v2647_v50  ;;  %v8410_v50 = vld [vmem:[#allocation20_spill] sm:$0xff]  ;;  %vm2660_vm7 = vweird.f32 %v4750_v40  ;;  %v8413_v35 = vld [vmem:[#allocation49_spill] sm:$0xff] }
 0x446   :  { %4751 = vrsqrt.f32 %v6702_v49  ;;  %v3693_v37 = vmul.f32 %v3297_v28, %v8408_v48  ;;  %v3506_v19 = vpop.f32.mrf.mxu1  ;;  %v6716_v17 = vsub.f32 %v8410_v50, %v6123_v60  ;;  %vm2661_vm9 = vmor %vm2659_vm8, %vm2660_vm7  ;;  %vm2669_vm11 = vweird.f32 %v6702_v49 }
 0x447   :  { %v2655_v43 = vmul.f32 %v4750_v40, %v2654_v36  ;;  %4147 = vst [vmem:[%s7844_s6 + $0x20] sm:$0xff] %v4083_v46  ;;  %v3694_v27 = vmul.f32 %v3506_v19, %v8409_v11  ;;  %2157 = vmatmul.f32.gmra.mxu2 %v1971_v9  ;;  %v2652_v33 = vsel %vm2651_vm6, %v4748_v1, %v2648_v63  ;;  %v8411_v46 = vld [vmem:[#allocation21_spill] sm:$0xff]  ;;  %v2105_v1 = vadd.f32 1e-05, %v6666_v51 }
 0x448   :  { %v3827_v23 = vmul.f32 %v6544_v0, %v3693_v37  ;;  %2360 = vmatmul.f32.gmra.mxu3 %v1968_v8  ;;  %4560 = vmatmul.msk.f32.gmra.mxu0 %vm260_vm0, %v2652_v33  ;;  %v6724_v48 = vsub.f32 %v8411_v46, %v6089_v57 }
 0x449   :  { %v2656_v28 = vmul.f32 0.5, %v2655_v43  ;;  %v3828_v36 = vmul.f32 %v6548_v61, %v3694_v27  ;;  %4624 = vmatmul.msk.f32.gmra.mxu1 %vm260_vm0, %v2652_v33  ;;  %v1973_v43 = vmul.f32 %v6716_v17, %v6716_v17 }
 0x44a   :  { %v3961_v9 = vadd.f32 %v6554_v2, %v3827_v23  ;;  %v6728_v60 = vpop.f32.mrf.mxu2  ;;  %v1970_v50 = vmul.f32 %v6724_v48, %v6724_v48  ;;  %v8412_v23 = vld [vmem:[#allocation46_spill] sm:$0xff] }
 0x44b   :  { %v2657_v63 = vsub.f32 1.5, %v2656_v28  ;;  %v3962_v8 = vadd.f32 %v6558_v42, %v3828_v36  ;;  %v2313_v37 = vpop.f32.mrf.mxu3 }
 0x44c   :  { %v4752_v19 = vpop.eup %4751  ;;  %v6733_v11 = vadd.f32 %v2313_v37, %v2105_v1 }
 0x44d   :  { %v2664_v57 = vmul.f32 %v4752_v19, %v6702_v49  ;;  %v4084_v51 = vpack.c.bf16 %v3962_v8, %v3961_v9  ;;  %v3300_v27 = vpop.f32.mrf.mxu0  ;;  %v2658_v33 = vmul.f32 %v4750_v40, %v2657_v63  ;;  %v8414_v63 = vld [vmem:[#allocation23_spill] sm:$0xff]  ;;  %vm2670_vm10 = vweird.f32 %v4752_v19  ;;  %v8417_v49 = vld [vmem:[#allocation53_spill] sm:$0xff] }
 0x44e   :  { %4753 = vrsqrt.f32 %v6733_v11  ;;  %v3695_v28 = vmul.f32 %v3300_v27, %v8412_v23  ;;  %v3509_v36 = vpop.f32.mrf.mxu1  ;;  %v6747_v8 = vsub.f32 %v8414_v63, %v6141_v62  ;;  %vm2671_vm12 = vmor %vm2669_vm11, %vm2670_vm10  ;;  %vm2679_vm14 = vweird.f32 %v6733_v11 }
 0x44f   :  { %v2665_v46 = vmul.f32 %v4752_v19, %v2664_v57  ;;  %4148 = vst [vmem:[%s7844_s6 + $0x28] sm:$0xff] %v4084_v51  ;;  %v3696_v1 = vmul.f32 %v3509_v36, %v8413_v35  ;;  %2160 = vmatmul.f32.gmra.mxu2 %v1973_v43  ;;  %v2662_v9 = vsel %vm2661_vm9, %v4750_v40, %v2658_v33  ;;  %v8415_v51 = vld [vmem:[#allocation24_spill] sm:$0xff]  ;;  %v2108_v40 = vadd.f32 1e-05, %v6697_v54 }
 0x450   :  { %v3829_v37 = vmul.f32 %v6544_v0, %v3695_v28  ;;  %2363 = vmatmul.f32.gmra.mxu3 %v1970_v50  ;;  %4561 = vmatmul.msk.f32.gmra.mxu0 %vm260_vm0, %v2662_v9  ;;  %v6755_v23 = vsub.f32 %v8415_v51, %v6107_v45 }
 0x451   :  { %v2666_v27 = vmul.f32 0.5, %v2665_v46  ;;  %v3830_v57 = vmul.f32 %v6548_v61, %v3696_v1  ;;  %4625 = vmatmul.msk.f32.gmra.mxu1 %vm260_vm0, %v2662_v9  ;;  %v1975_v46 = vmul.f32 %v6747_v8, %v6747_v8 }
 0x452   :  { %v3963_v43 = vadd.f32 %v6554_v2, %v3829_v37  ;;  %v6759_v62 = vpop.f32.mrf.mxu2  ;;  %v1972_v63 = vmul.f32 %v6755_v23, %v6755_v23  ;;  %v8416_v37 = vld [vmem:[#allocation50_spill] sm:$0xff] }
 0x453   :  { %v2667_v33 = vsub.f32 1.5, %v2666_v27  ;;  %v3964_v50 = vadd.f32 %v6558_v42, %v3830_v57  ;;  %v2316_v28 = vpop.f32.mrf.mxu3 }
 0x454   :  { %v4754_v36 = vpop.eup %4753  ;;  %v6764_v35 = vadd.f32 %v2316_v28, %v2108_v40 }
 0x455   :  { %v2674_v45 = vmul.f32 %v4754_v36, %v6733_v11  ;;  %v4085_v54 = vpack.c.bf16 %v3964_v50, %v3963_v43  ;;  %v3303_v1 = vpop.f32.mrf.mxu0  ;;  %v2668_v9 = vmul.f32 %v4752_v19, %v2667_v33  ;;  %v8418_v33 = vld [vmem:[#allocation27_spill] sm:$0xff]  ;;  %vm2680_vm13 = vweird.f32 %v4754_v36  ;;  %v8421_v11 = vld [vmem:[#allocation57_spill] sm:$0xff] }
 0x456   :  { %4755 = vrsqrt.f32 %v6764_v35  ;;  %v3697_v27 = vmul.f32 %v3303_v1, %v8416_v37  ;;  %v3512_v57 = vpop.f32.mrf.mxu1  ;;  %v6778_v50 = vsub.f32 %v8418_v33, %v6159_v4  ;;  %vm2681_vm15 = vmor %vm2679_vm14, %vm2680_vm13  ;;  %vm2689_vm2 = vweird.f32 %v6764_v35 }
 0x457   :  { %v2675_v51 = vmul.f32 %v4754_v36, %v2674_v45  ;;  %4149 = vst [vmem:[%s7844_s6 + $0x30] sm:$0xff] %v4085_v54  ;;  %v3698_v40 = vmul.f32 %v3512_v57, %v8417_v49  ;;  %2163 = vmatmul.f32.gmra.mxu2 %v1975_v46  ;;  %v2672_v43 = vsel %vm2671_vm12, %v4752_v19, %v2668_v9  ;;  %v8419_v54 = vld [vmem:[#allocation28_spill] sm:$0xff]  ;;  %v2111_v19 = vadd.f32 1e-05, %v6728_v60 }
 0x458   :  { %v3831_v28 = vmul.f32 %v6544_v0, %v3697_v27  ;;  %2366 = vmatmul.f32.gmra.mxu3 %v1972_v63  ;;  %4562 = vmatmul.msk.f32.gmra.mxu0 %vm260_vm0, %v2672_v43  ;;  %v6786_v37 = vsub.f32 %v8419_v54, %v6125_v25 }
 0x459   :  { %v2676_v1 = vmul.f32 0.5, %v2675_v51  ;;  %v3832_v45 = vmul.f32 %v6548_v61, %v3698_v40  ;;  %4626 = vmatmul.msk.f32.gmra.mxu1 %vm260_vm0, %v2672_v43  ;;  %v1977_v51 = vmul.f32 %v6778_v50, %v6778_v50 }
 0x45a   :  { %v3965_v46 = vadd.f32 %v6554_v2, %v3831_v28  ;;  %v6790_v4 = vpop.f32.mrf.mxu2  ;;  %v1974_v33 = vmul.f32 %v6786_v37, %v6786_v37  ;;  %v8420_v28 = vld [vmem:[#allocation54_spill] sm:$0xff] }
 0x45b   :  { %v2677_v9 = vsub.f32 1.5, %v2676_v1  ;;  %v3966_v63 = vadd.f32 %v6558_v42, %v3832_v45  ;;  %v2319_v27 = vpop.f32.mrf.mxu3 }
 0x45c   :  { %v4756_v57 = vpop.eup %4755  ;;  %v6795_v49 = vadd.f32 %v2319_v27, %v2111_v19 }
 0x45d   :  { %v2684_v25 = vmul.f32 %v4756_v57, %v6764_v35  ;;  %v4086_v60 = vpack.c.bf16 %v3966_v63, %v3965_v46  ;;  %v3306_v40 = vpop.f32.mrf.mxu0  ;;  %v2678_v43 = vmul.f32 %v4754_v36, %v2677_v9  ;;  %v8422_v9 = vld [vmem:[#allocation31_spill] sm:$0xff]  ;;  %vm2690_vm1 = vweird.f32 %v4756_v57  ;;  %v8425_v35 = vld [vmem:[#allocation61_spill] sm:$0xff] }
 0x45e   :  { %4757 = vrsqrt.f32 %v6795_v49  ;;  %v3699_v1 = vmul.f32 %v3306_v40, %v8420_v28  ;;  %v3515_v45 = vpop.f32.mrf.mxu1  ;;  %v6809_v63 = vsub.f32 %v8422_v9, %v6177_v6  ;;  %vm2691_vm3 = vmor %vm2689_vm2, %vm2690_vm1  ;;  %vm2699_vm5 = vweird.f32 %v6795_v49 }
 0x45f   :  { %v2685_v54 = vmul.f32 %v4756_v57, %v2684_v25  ;;  %4150 = vst [vmem:[%s7844_s6 + $0x38] sm:$0xff] %v4086_v60  ;;  %v3700_v19 = vmul.f32 %v3515_v45, %v8421_v11  ;;  %2166 = vmatmul.f32.gmra.mxu2 %v1977_v51  ;;  %v2682_v46 = vsel %vm2681_vm15, %v4754_v36, %v2678_v43  ;;  %v8423_v60 = vld [vmem:[#allocation32_spill] sm:$0xff]  ;;  %v2114_v36 = vadd.f32 1e-05, %v6759_v62 }
 0x460   :  { %v3833_v27 = vmul.f32 %v6544_v0, %v3699_v1  ;;  %2369 = vmatmul.f32.gmra.mxu3 %v1974_v33  ;;  %4563 = vmatmul.msk.f32.gmra.mxu0 %vm260_vm0, %v2682_v46  ;;  %v6817_v28 = vsub.f32 %v8423_v60, %v6143_v10 }
 0x461   :  { %v2686_v40 = vmul.f32 0.5, %v2685_v54  ;;  %v3834_v25 = vmul.f32 %v6548_v61, %v3700_v19  ;;  %4627 = vmatmul.msk.f32.gmra.mxu1 %vm260_vm0, %v2682_v46  ;;  %v1979_v54 = vmul.f32 %v6809_v63, %v6809_v63 }
 0x462   :  { %v3967_v51 = vadd.f32 %v6554_v2, %v3833_v27  ;;  %v6821_v6 = vpop.f32.mrf.mxu2  ;;  %v1976_v9 = vmul.f32 %v6817_v28, %v6817_v28  ;;  %v8424_v27 = vld [vmem:[#allocation58_spill] sm:$0xff] }
 0x463   :  { %v2687_v43 = vsub.f32 1.5, %v2686_v40  ;;  %v3968_v33 = vadd.f32 %v6558_v42, %v3834_v25  ;;  %v2322_v1 = vpop.f32.mrf.mxu3 }
 0x464   :  { %v4758_v45 = vpop.eup %4757  ;;  %v6826_v11 = vadd.f32 %v2322_v1, %v2114_v36 }
 0x465   :  { %v2694_v10 = vmul.f32 %v4758_v45, %v6795_v49  ;;  %v4087_v62 = vpack.c.bf16 %v3968_v33, %v3967_v51  ;;  %v3309_v19 = vpop.f32.mrf.mxu0  ;;  %v2688_v46 = vmul.f32 %v4756_v57, %v2687_v43  ;;  %v8426_v43 = vld [vmem:[#allocation35_spill] sm:$0xff]  ;;  %vm2700_vm4 = vweird.f32 %v4758_v45  ;;  %v8430_v49 = vld [vmem:[#allocation65_spill] sm:$0xff] }
 0x466   :  { %4759 = vrsqrt.f32 %v6826_v11  ;;  %v3701_v40 = vmul.f32 %v3309_v19, %v8424_v27  ;;  %v3518_v25 = vpop.f32.mrf.mxu1  ;;  %v6840_v33 = vsub.f32 %v8426_v43, %v6195_v32  ;;  %vm2701_vm6 = vmor %vm2699_vm5, %vm2700_vm4  ;;  %vm2709_vm8 = vweird.f32 %v6826_v11 }
 0x467   :  { %v2695_v60 = vmul.f32 %v4758_v45, %v2694_v10  ;;  %4151 = vst [vmem:[%s7844_s6 + $0x40] sm:$0xff] %v4087_v62  ;;  %v3702_v36 = vmul.f32 %v3518_v25, %v8425_v35  ;;  %2169 = vmatmul.f32.gmra.mxu2 %v1979_v54  ;;  %v2692_v51 = vsel %vm2691_vm3, %v4756_v57, %v2688_v46  ;;  %v8428_v62 = vld [vmem:[#allocation36_spill] sm:$0xff]  ;;  %v2117_v57 = vadd.f32 1e-05, %v6790_v4 }
 0x468   :  { %8427 = vst [vmem:[#allocation8_spill] sm:$0xff] %v6840_v33  ;;  %v3835_v1 = vmul.f32 %v6544_v0, %v3701_v40  ;;  %2372 = vmatmul.f32.gmra.mxu3 %v1976_v9  ;;  %4564 = vmatmul.msk.f32.gmra.mxu0 %vm260_vm0, %v2692_v51  ;;  %v6848_v27 = vsub.f32 %v8428_v62, %v6161_v44 }
 0x469   :  { %v2696_v19 = vmul.f32 0.5, %v2695_v60  ;;  %v3836_v10 = vmul.f32 %v6548_v61, %v3702_v36  ;;  %4628 = vmatmul.msk.f32.gmra.mxu1 %vm260_vm0, %v2692_v51  ;;  %v1981_v60 = vmul.f32 %v6840_v33, %v6840_v33 }
 0x46a   :  { %v3969_v54 = vadd.f32 %v6554_v2, %v3835_v1  ;;  %v6852_v32 = vpop.f32.mrf.mxu2  ;;  %v1978_v43 = vmul.f32 %v6848_v27, %v6848_v27  ;;  %v8429_v1 = vld [vmem:[#allocation62_spill] sm:$0xff] }
 0x46b   :  { %v2697_v46 = vsub.f32 1.5, %v2696_v19  ;;  %v3970_v9 = vadd.f32 %v6558_v42, %v3836_v10  ;;  %v2325_v40 = vpop.f32.mrf.mxu3 }
 0x46c   :  { %v4760_v25 = vpop.eup %4759  ;;  %v6857_v35 = vadd.f32 %v2325_v40, %v2117_v57 }
 0x46d   :  { %v2704_v44 = vmul.f32 %v4760_v25, %v6826_v11  ;;  %v4088_v4 = vpack.c.bf16 %v3970_v9, %v3969_v54  ;;  %v3312_v36 = vpop.f32.mrf.mxu0  ;;  %v2698_v51 = vmul.f32 %v4758_v45, %v2697_v46  ;;  %v8431_v46 = vld [vmem:[#allocation39_spill] sm:$0xff]  ;;  %vm2710_vm7 = vweird.f32 %v4760_v25  ;;  %v8435_v11 = vld [vmem:[#allocation70_spill] sm:$0xff] }
 0x46e   :  { %4761 = vrsqrt.f32 %v6857_v35  ;;  %v3703_v19 = vmul.f32 %v3312_v36, %v8429_v1  ;;  %v3521_v10 = vpop.f32.mrf.mxu1  ;;  %v6871_v9 = vsub.f32 %v8431_v46, %v6213_v21  ;;  %vm2711_vm9 = vmor %vm2709_vm8, %vm2710_vm7  ;;  %vm2719_vm11 = vweird.f32 %v6857_v35 }
 0x46f   :  { %v2705_v62 = vmul.f32 %v4760_v25, %v2704_v44  ;;  %4152 = vst [vmem:[%s7844_s6 + $0x48] sm:$0xff] %v4088_v4  ;;  %v3704_v57 = vmul.f32 %v3521_v10, %v8430_v49  ;;  %2172 = vmatmul.f32.gmra.mxu2 %v1981_v60  ;;  %v2702_v54 = vsel %vm2701_vm6, %v4758_v45, %v2698_v51  ;;  %v8433_v4 = vld [vmem:[#allocation40_spill] sm:$0xff]  ;;  %v2120_v45 = vadd.f32 1e-05, %v6821_v6 }
 0x470   :  { %8432 = vst [vmem:[#allocation9_spill] sm:$0xff] %v6871_v9  ;;  %v3837_v40 = vmul.f32 %v6544_v0, %v3703_v19  ;;  %2375 = vmatmul.f32.gmra.mxu3 %v1978_v43  ;;  %4565 = vmatmul.msk.f32.gmra.mxu0 %vm260_vm0, %v2702_v54  ;;  %v6879_v1 = vsub.f32 %v8433_v4, %v6179_v47 }
 0x471   :  { %v2706_v36 = vmul.f32 0.5, %v2705_v62  ;;  %v3838_v44 = vmul.f32 %v6548_v61, %v3704_v57  ;;  %4629 = vmatmul.msk.f32.gmra.mxu1 %vm260_vm0, %v2702_v54  ;;  %v1983_v62 = vmul.f32 %v6871_v9, %v6871_v9 }
 0x472   :  { %v3971_v60 = vadd.f32 %v6554_v2, %v3837_v40  ;;  %v6883_v21 = vpop.f32.mrf.mxu2  ;;  %v1980_v46 = vmul.f32 %v6879_v1, %v6879_v1  ;;  %v8434_v40 = vld [vmem:[#allocation66_spill] sm:$0xff] }
 0x473   :  { %v2707_v51 = vsub.f32 1.5, %v2706_v36  ;;  %v3972_v43 = vadd.f32 %v6558_v42, %v3838_v44  ;;  %v2328_v19 = vpop.f32.mrf.mxu3 }
 0x474   :  { %v4762_v10 = vpop.eup %4761  ;;  %v6888_v49 = vadd.f32 %v2328_v19, %v2120_v45 }
 0x475   :  { %v2714_v47 = vmul.f32 %v4762_v10, %v6857_v35  ;;  %v4089_v6 = vpack.c.bf16 %v3972_v43, %v3971_v60  ;;  %v3315_v57 = vpop.f32.mrf.mxu0  ;;  %v2708_v54 = vmul.f32 %v4760_v25, %v2707_v51  ;;  %v8436_v43 = vld [vmem:[#allocation143_spill] sm:$0xff]  ;;  %vm2720_vm10 = vweird.f32 %v4762_v10  ;;  %v8442_v35 = vld [vmem:[#allocation74_spill] sm:$0xff] }
 0x476   :  { %4763 = vrsqrt.f32 %v6888_v49  ;;  %v3705_v36 = vmul.f32 %v3315_v57, %v8434_v40  ;;  %v3524_v44 = vpop.f32.mrf.mxu1  ;;  %v8437_v51 = vld [vmem:[#allocation43_spill] sm:$0xff]  ;;  %v8439_v40 = vld [vmem:[#allocation141_spill] sm:$0xff]  ;;  %vm2721_vm12 = vmor %vm2719_vm11, %vm2720_vm10  ;;  %vm2729_vm14 = vweird.f32 %v6888_v49 }
 0x477   :  { %v2715_v4 = vmul.f32 %v4762_v10, %v2714_v47  ;;  %4153 = vst [vmem:[%s7844_s6 + $0x50] sm:$0xff] %v4089_v6  ;;  %v3706_v45 = vmul.f32 %v3524_v44, %v8435_v11  ;;  %2175 = vmatmul.f32.gmra.mxu2 %v1983_v62  ;;  %v2712_v60 = vsel %vm2711_vm9, %v4760_v25, %v2708_v54  ;;  %v8440_v6 = vld [vmem:[#allocation44_spill] sm:$0xff]  ;;  %v2123_v25 = vadd.f32 1e-05, %v6852_v32 }
 0x478   :  { %v6902_v19 = vsub.f32 %v8437_v51, %v8436_v43  ;;  %v3839_v9 = vmul.f32 %v6544_v0, %v3705_v36  ;;  %2378 = vmatmul.f32.gmra.mxu3 %v1980_v46  ;;  %4566 = vmatmul.msk.f32.gmra.mxu0 %vm260_vm0, %v2712_v60  ;;  %v6910_v33 = vsub.f32 %v8440_v6, %v8439_v40 }
 0x479   :  { %v2716_v57 = vmul.f32 0.5, %v2715_v4  ;;  %v3840_v47 = vmul.f32 %v6548_v61, %v3706_v45  ;;  %4630 = vmatmul.msk.f32.gmra.mxu1 %vm260_vm0, %v2712_v60 }
 0x47a   :  { %8438 = vst [vmem:[#allocation22_spill] sm:$0xff] %v6902_v19  ;;  %v3973_v62 = vadd.f32 %v6554_v2, %v3839_v9  ;;  %v6914_v54 = vpop.f32.mrf.mxu2  ;;  %v1985_v11 = vmul.f32 %v6902_v19, %v6902_v19  ;;  %v1982_v51 = vmul.f32 %v6910_v33, %v6910_v33 }
 0x47b   :  { %v2717_v44 = vsub.f32 1.5, %v2716_v57  ;;  %v3974_v46 = vadd.f32 %v6558_v42, %v3840_v47  ;;  %v2331_v36 = vpop.f32.mrf.mxu3  ;;  %v8441_v57 = vld [vmem:[#allocation69_spill] sm:$0xff] }
 0x47c   :  { %v4764_v4 = vpop.eup %4763  ;;  %v6919_v45 = vadd.f32 %v2331_v36, %v2123_v25 }
 0x47d   :  { %v2724_v60 = vmul.f32 %v4764_v4, %v6888_v49  ;;  %v4090_v32 = vpack.c.bf16 %v3974_v46, %v3973_v62  ;;  %v3318_v43 = vpop.f32.mrf.mxu0  ;;  %v2718_v9 = vmul.f32 %v4762_v10, %v2717_v44  ;;  %v8443_v44 = vld [vmem:[#allocation47_spill] sm:$0xff]  ;;  %vm2730_vm13 = vweird.f32 %v4764_v4  ;;  %v8448_v49 = vld [vmem:[#allocation80_spill] sm:$0xff] }
 0x47e   :  { %4765 = vrsqrt.f32 %v6919_v45  ;;  %v3707_v47 = vmul.f32 %v3318_v43, %v8441_v57  ;;  %v3527_v40 = vpop.f32.mrf.mxu1  ;;  %v6933_v46 = vsub.f32 %v8443_v44, %v6245_v14  ;;  %v8445_v57 = vld [vmem:[#allocation142_spill] sm:$0xff]  ;;  %vm2731_vm15 = vmor %vm2729_vm14, %vm2730_vm13  ;;  %vm2739_vm2 = vweird.f32 %v6919_v45 }
 0x47f   :  { %v2725_v6 = vmul.f32 %v4764_v4, %v2724_v60  ;;  %4154 = vst [vmem:[%s7844_s6 + $0x58] sm:$0xff] %v4090_v32  ;;  %v3708_v25 = vmul.f32 %v3527_v40, %v8442_v35  ;;  %2178 = vmatmul.f32.gmra.mxu2 %v1985_v11  ;;  %v2722_v62 = vsel %vm2721_vm12, %v4762_v10, %v2718_v9  ;;  %v8446_v32 = vld [vmem:[#allocation48_spill] sm:$0xff]  ;;  %v2126_v10 = vadd.f32 1e-05, %v6883_v21 }
 0x480   :  { %8444 = vst [vmem:[#allocation25_spill] sm:$0xff] %v6933_v46  ;;  %v3841_v36 = vmul.f32 %v6544_v0, %v3707_v47  ;;  %2381 = vmatmul.f32.gmra.mxu3 %v1982_v51  ;;  %4567 = vmatmul.msk.f32.gmra.mxu0 %vm260_vm0, %v2722_v62  ;;  %v6941_v19 = vsub.f32 %v8446_v32, %v8445_v57 }
 0x481   :  { %v2726_v43 = vmul.f32 0.5, %v2725_v6  ;;  %v3842_v60 = vmul.f32 %v6548_v61, %v3708_v25  ;;  %4631 = vmatmul.msk.f32.gmra.mxu1 %vm260_vm0, %v2722_v62  ;;  %v1987_v6 = vmul.f32 %v6933_v46, %v6933_v46 }
 0x482   :  { %v3975_v11 = vadd.f32 %v6554_v2, %v3841_v36  ;;  %v6945_v14 = vpop.f32.mrf.mxu2  ;;  %v1984_v36 = vmul.f32 %v6941_v19, %v6941_v19 }
 0x483   :  { %v2727_v9 = vsub.f32 1.5, %v2726_v43  ;;  %v3976_v51 = vadd.f32 %v6558_v42, %v3842_v60  ;;  %v2334_v47 = vpop.f32.mrf.mxu3  ;;  %v8447_v43 = vld [vmem:[#allocation73_spill] sm:$0xff] }
 0x484   :  { %v4766_v40 = vpop.eup %4765  ;;  %v6950_v35 = vadd.f32 %v2334_v47, %v2126_v10 }
 0x485   :  { %v2734_v25 = vmul.f32 %v4766_v40, %v6919_v45  ;;  %v4091_v21 = vpack.c.bf16 %v3976_v51, %v3975_v11  ;;  %v3321_v62 = vpop.f32.mrf.mxu0  ;;  %v2728_v44 = vmul.f32 %v4764_v4, %v2727_v9  ;;  %v8449_v9 = vld [vmem:[#allocation51_spill] sm:$0xff]  ;;  %vm2740_vm1 = vweird.f32 %v4766_v40  ;;  %v8453_v45 = vld [vmem:[#allocation84_spill] sm:$0xff] }
 0x486   :  { %4767 = vrsqrt.f32 %v6950_v35  ;;  %v3709_v60 = vmul.f32 %v3321_v62, %v8447_v43  ;;  %v3530_v57 = vpop.f32.mrf.mxu1  ;;  %v6964_v51 = vsub.f32 %v8449_v9, %v6263_v59  ;;  %v8450_v43 = vld [vmem:[#allocation144_spill] sm:$0xff]  ;;  %vm2741_vm3 = vmor %vm2739_vm2, %vm2740_vm1  ;;  %vm2749_vm5 = vweird.f32 %v6950_v35 }
 0x487   :  { %v2735_v32 = vmul.f32 %v4766_v40, %v2734_v25  ;;  %4155 = vst [vmem:[%s7844_s6 + $0x60] sm:$0xff] %v4091_v21  ;;  %v3710_v10 = vmul.f32 %v3530_v57, %v8448_v49  ;;  %2181 = vmatmul.f32.gmra.mxu2 %v1987_v6  ;;  %v2732_v11 = vsel %vm2731_vm15, %v4764_v4, %v2728_v44  ;;  %v8451_v21 = vld [vmem:[#allocation52_spill] sm:$0xff]  ;;  %v2129_v4 = vadd.f32 1e-05, %v6914_v54 }
 0x488   :  { %v3843_v47 = vmul.f32 %v6544_v0, %v3709_v60  ;;  %2384 = vmatmul.f32.gmra.mxu3 %v1984_v36  ;;  %4568 = vmatmul.msk.f32.gmra.mxu0 %vm260_vm0, %v2732_v11  ;;  %v6972_v46 = vsub.f32 %v8451_v21, %v8450_v43 }
 0x489   :  { %v2736_v62 = vmul.f32 0.5, %v2735_v32  ;;  %v3844_v25 = vmul.f32 %v6548_v61, %v3710_v10  ;;  %4632 = vmatmul.msk.f32.gmra.mxu1 %vm260_vm0, %v2732_v11  ;;  %v1989_v32 = vmul.f32 %v6964_v51, %v6964_v51 }
 0x48a   :  { %v3977_v6 = vadd.f32 %v6554_v2, %v3843_v47  ;;  %v6976_v59 = vpop.f32.mrf.mxu2  ;;  %v1986_v47 = vmul.f32 %v6972_v46, %v6972_v46 }
 0x48b   :  { %v2737_v44 = vsub.f32 1.5, %v2736_v62  ;;  %v3978_v36 = vadd.f32 %v6558_v42, %v3844_v25  ;;  %v2337_v60 = vpop.f32.mrf.mxu3  ;;  %v8452_v62 = vld [vmem:[#allocation77_spill] sm:$0xff] }
 0x48c   :  { %v4768_v57 = vpop.eup %4767  ;;  %v6981_v49 = vadd.f32 %v2337_v60, %v2129_v4 }
 0x48d   :  { %v2744_v10 = vmul.f32 %v4768_v57, %v6950_v35  ;;  %v4092_v54 = vpack.c.bf16 %v3978_v36, %v3977_v6  ;;  %v3324_v11 = vpop.f32.mrf.mxu0  ;;  %v2738_v9 = vmul.f32 %v4766_v40, %v2737_v44  ;;  %v8454_v44 = vld [vmem:[#allocation55_spill] sm:$0xff]  ;;  %vm2750_vm4 = vweird.f32 %v4768_v57  ;;  %v8458_v35 = vld [vmem:[#allocation88_spill] sm:$0xff] }
 0x48e   :  { %4769 = vrsqrt.f32 %v6981_v49  ;;  %v3711_v25 = vmul.f32 %v3324_v11, %v8452_v62  ;;  %v3533_v43 = vpop.f32.mrf.mxu1  ;;  %v6995_v36 = vsub.f32 %v8454_v44, %v6281_v7  ;;  %vm2751_vm6 = vmor %vm2749_vm5, %vm2750_vm4  ;;  %vm2759_vm8 = vweird.f32 %v6981_v49 }
 0x48f   :  { %v2745_v21 = vmul.f32 %v4768_v57, %v2744_v10  ;;  %4156 = vst [vmem:[%s7844_s6 + $0x68] sm:$0xff] %v4092_v54  ;;  %v3712_v4 = vmul.f32 %v3533_v43, %v8453_v45  ;;  %2184 = vmatmul.f32.gmra.mxu2 %v1989_v32  ;;  %v2742_v6 = vsel %vm2741_vm3, %v4766_v40, %v2738_v9  ;;  %v8456_v54 = vld [vmem:[#allocation56_spill] sm:$0xff]  ;;  %v2132_v40 = vadd.f32 1e-05, %v6945_v14 }
 0x490   :  { %8455 = vst [vmem:[#allocation10_spill] sm:$0xff] %v6995_v36  ;;  %v3845_v60 = vmul.f32 %v6544_v0, %v3711_v25  ;;  %2387 = vmatmul.f32.gmra.mxu3 %v1986_v47  ;;  %4569 = vmatmul.msk.f32.gmra.mxu0 %vm260_vm0, %v2742_v6  ;;  %v7003_v62 = vsub.f32 %v8456_v54, %v6247_v5 }
 0x491   :  { %v2746_v11 = vmul.f32 0.5, %v2745_v21  ;;  %v3846_v10 = vmul.f32 %v6548_v61, %v3712_v4  ;;  %4633 = vmatmul.msk.f32.gmra.mxu1 %vm260_vm0, %v2742_v6  ;;  %v1991_v21 = vmul.f32 %v6995_v36, %v6995_v36 }
 0x492   :  { %v3979_v32 = vadd.f32 %v6554_v2, %v3845_v60  ;;  %v7007_v7 = vpop.f32.mrf.mxu2  ;;  %v1988_v44 = vmul.f32 %v7003_v62, %v7003_v62  ;;  %v8457_v60 = vld [vmem:[#allocation81_spill] sm:$0xff] }
 0x493   :  { %v2747_v9 = vsub.f32 1.5, %v2746_v11  ;;  %v3980_v47 = vadd.f32 %v6558_v42, %v3846_v10  ;;  %v2340_v25 = vpop.f32.mrf.mxu3 }
 0x494   :  { %v4770_v43 = vpop.eup %4769  ;;  %v7012_v45 = vadd.f32 %v2340_v25, %v2132_v40 }
 0x495   :  { %v2754_v5 = vmul.f32 %v4770_v43, %v6981_v49  ;;  %v4093_v14 = vpack.c.bf16 %v3980_v47, %v3979_v32  ;;  %v3327_v4 = vpop.f32.mrf.mxu0  ;;  %v2748_v6 = vmul.f32 %v4768_v57, %v2747_v9  ;;  %v8459_v9 = vld [vmem:[#allocation59_spill] sm:$0xff]  ;;  %vm2760_vm7 = vweird.f32 %v4770_v43  ;;  %v8463_v49 = vld [vmem:[#allocation140_spill] sm:$0xff] }
 0x496   :  { %4771 = vrsqrt.f32 %v7012_v45  ;;  %v3713_v11 = vmul.f32 %v3327_v4, %v8457_v60  ;;  %v3536_v10 = vpop.f32.mrf.mxu1  ;;  %v7026_v47 = vsub.f32 %v8459_v9, %v6299_v34  ;;  %vm2761_vm9 = vmor %vm2759_vm8, %vm2760_vm7  ;;  %vm2769_vm11 = vweird.f32 %v7012_v45 }
 0x497   :  { %v2755_v54 = vmul.f32 %v4770_v43, %v2754_v5  ;;  %4157 = vst [vmem:[%s7844_s6 + $0x70] sm:$0xff] %v4093_v14  ;;  %v3714_v40 = vmul.f32 %v3536_v10, %v8458_v35  ;;  %2187 = vmatmul.f32.gmra.mxu2 %v1991_v21  ;;  %v2752_v32 = vsel %vm2751_vm6, %v4768_v57, %v2748_v6  ;;  %v8461_v14 = vld [vmem:[#allocation60_spill] sm:$0xff]  ;;  %v2135_v57 = vadd.f32 1e-05, %v6976_v59 }
 0x498   :  { %8460 = vst [vmem:[#allocation11_spill] sm:$0xff] %v7026_v47  ;;  %v3847_v25 = vmul.f32 %v6544_v0, %v3713_v11  ;;  %2390 = vmatmul.f32.gmra.mxu3 %v1988_v44  ;;  %4570 = vmatmul.msk.f32.gmra.mxu0 %vm260_vm0, %v2752_v32  ;;  %v7034_v60 = vsub.f32 %v8461_v14, %v6265_v3 }
 0x499   :  { %v2756_v4 = vmul.f32 0.5, %v2755_v54  ;;  %v3848_v5 = vmul.f32 %v6548_v61, %v3714_v40  ;;  %4634 = vmatmul.msk.f32.gmra.mxu1 %vm260_vm0, %v2752_v32  ;;  %v1993_v54 = vmul.f32 %v7026_v47, %v7026_v47 }
 0x49a   :  { %v3981_v21 = vadd.f32 %v6554_v2, %v3847_v25  ;;  %v7038_v34 = vpop.f32.mrf.mxu2  ;;  %v1990_v9 = vmul.f32 %v7034_v60, %v7034_v60  ;;  %v8462_v25 = vld [vmem:[#allocation85_spill] sm:$0xff] }
 0x49b   :  { %v2757_v6 = vsub.f32 1.5, %v2756_v4  ;;  %v3982_v44 = vadd.f32 %v6558_v42, %v3848_v5  ;;  %v2343_v11 = vpop.f32.mrf.mxu3 }
 0x49c   :  { %v4772_v10 = vpop.eup %4771  ;;  %v7043_v35 = vadd.f32 %v2343_v11, %v2135_v57 }
 0x49d   :  { %v2764_v3 = vmul.f32 %v4772_v10, %v7012_v45  ;;  %v4094_v59 = vpack.c.bf16 %v3982_v44, %v3981_v21  ;;  %v3330_v40 = vpop.f32.mrf.mxu0  ;;  %v2758_v32 = vmul.f32 %v4770_v43, %v2757_v6  ;;  %v8464_v44 = vld [vmem:[#allocation128_spill] sm:$0xff]  ;;  %v8465_v6 = vld [vmem:[#allocation63_spill] sm:$0xff]  ;;  %vm2770_vm10 = vweird.f32 %v4772_v10  ;;  %v8471_v45 = vld [vmem:[#allocation98_spill] sm:$0xff] }
 0x49e   :  { %4773 = vrsqrt.f32 %v7043_v35  ;;  %v3715_v4 = vmul.f32 %v3330_v40, %v8462_v25  ;;  %v3539_v5 = vpop.f32.mrf.mxu1  ;;  %v7057_v11 = vsub.f32 %v8465_v6, %v8464_v44  ;;  %v8467_v25 = vld [vmem:[#allocation147_spill] sm:$0xff]  ;;  %vm2771_vm12 = vmor %vm2769_vm11, %vm2770_vm10  ;;  %vm2779_vm14 = vweird.f32 %v7043_v35 }
 0x49f   :  { %v2765_v14 = vmul.f32 %v4772_v10, %v2764_v3  ;;  %4158 = vst [vmem:[%s7844_s6 + $0x78] sm:$0xff] %v4094_v59  ;;  %v3716_v57 = vmul.f32 %v3539_v5, %v8463_v49  ;;  %2190 = vmatmul.f32.gmra.mxu2 %v1993_v54  ;;  %v2762_v21 = vsel %vm2761_vm9, %v4770_v43, %v2758_v32  ;;  %v8468_v59 = vld [vmem:[#allocation64_spill] sm:$0xff]  ;;  %v2138_v43 = vadd.f32 1e-05, %v7007_v7 }
 0x4a0   :  { %8466 = vst [vmem:[#allocation26_spill] sm:$0xff] %v7057_v11  ;;  %v3849_v47 = vmul.f32 %v6544_v0, %v3715_v4  ;;  %2393 = vmatmul.f32.gmra.mxu3 %v1990_v9  ;;  %4571 = vmatmul.msk.f32.gmra.mxu0 %vm260_vm0, %v2762_v21  ;;  %v7065_v36 = vsub.f32 %v8468_v59, %v8467_v25 }
 0x4a1   :  { %v2766_v40 = vmul.f32 0.5, %v2765_v14  ;;  %v3850_v3 = vmul.f32 %v6548_v61, %v3716_v57  ;;  %4635 = vmatmul.msk.f32.gmra.mxu1 %vm260_vm0, %v2762_v21  ;;  %v1995_v49 = vmul.f32 %v7057_v11, %v7057_v11 }
 0x4a2   :  { %8469 = vst [vmem:[#allocation29_spill] sm:$0xff] %v7065_v36  ;;  %v3983_v54 = vadd.f32 %v6554_v2, %v3849_v47  ;;  %v7069_v32 = vpop.f32.mrf.mxu2  ;;  %v1992_v6 = vmul.f32 %v7065_v36, %v7065_v36 }
 0x4a3   :  { %v2767_v5 = vsub.f32 1.5, %v2766_v40  ;;  %v3984_v9 = vadd.f32 %v6558_v42, %v3850_v3  ;;  %v2346_v4 = vpop.f32.mrf.mxu3  ;;  %v8470_v40 = vld [vmem:[#allocation89_spill] sm:$0xff] }
 0x4a4   :  { %v4774_v14 = vpop.eup %4773  ;;  %v7074_v57 = vadd.f32 %v2346_v4, %v2138_v43 }
 0x4a5   :  { %v2774_v21 = vmul.f32 %v4774_v14, %v7043_v35  ;;  %v4095_v7 = vpack.c.bf16 %v3984_v9, %v3983_v54  ;;  %v3333_v44 = vpop.f32.mrf.mxu0  ;;  %v2768_v47 = vmul.f32 %v4772_v10, %v2767_v5  ;;  %v8472_v9 = vld [vmem:[#allocation129_spill] sm:$0xff]  ;;  %v8473_v5 = vld [vmem:[#allocation67_spill] sm:$0xff]  ;;  %vm2780_vm13 = vweird.f32 %v4774_v14 }
 0x4a6   :  { %4775 = vrsqrt.f32 %v7074_v57  ;;  %v3717_v3 = vmul.f32 %v3333_v44, %v8470_v40  ;;  %v3542_v25 = vpop.f32.mrf.mxu1  ;;  %v7088_v4 = vsub.f32 %v8473_v5, %v8472_v9  ;;  %v8475_v40 = vld [vmem:[#allocation108_spill] sm:$0xff]  ;;  %vm2781_vm15 = vmor %vm2779_vm14, %vm2780_vm13  ;;  %v8478_v35 = vld [vmem:[#allocation101_spill] sm:$0xff]  ;;  %vm2789_vm2 = vweird.f32 %v7074_v57 }
 0x4a7   :  { %v2775_v59 = vmul.f32 %v4774_v14, %v2774_v21  ;;  %4159 = vst [vmem:[%s7844_s6 + $0x80] sm:$0xff] %v4095_v7  ;;  %v3718_v43 = vmul.f32 %v3542_v25, %v8471_v45  ;;  %2193 = vmatmul.f32.gmra.mxu2 %v1995_v49  ;;  %v2772_v54 = vsel %vm2771_vm12, %v4772_v10, %v2768_v47  ;;  %v8476_v7 = vld [vmem:[#allocation68_spill] sm:$0xff]  ;;  %v2141_v10 = vadd.f32 1e-05, %v7038_v34 }
 0x4a8   :  { %8474 = vst [vmem:[#allocation12_spill] sm:$0xff] %v7088_v4  ;;  %v3851_v11 = vmul.f32 %v6544_v0, %v3717_v3  ;;  %2396 = vmatmul.f32.gmra.mxu3 %v1992_v6  ;;  %4572 = vmatmul.msk.f32.gmra.mxu0 %vm260_vm0, %v2772_v54  ;;  %v7096_v36 = vsub.f32 %v8476_v7, %v8475_v40 }
 0x4a9   :  { %v2776_v44 = vmul.f32 0.5, %v2775_v59  ;;  %v3852_v21 = vmul.f32 %v6548_v61, %v3718_v43  ;;  %4636 = vmatmul.msk.f32.gmra.mxu1 %vm260_vm0, %v2772_v54  ;;  %v1997_v45 = vmul.f32 %v7088_v4, %v7088_v4 }
 0x4aa   :  { %v3985_v49 = vadd.f32 %v6554_v2, %v3851_v11  ;;  %v7100_v47 = vpop.f32.mrf.mxu2  ;;  %v1994_v5 = vmul.f32 %v7096_v36, %v7096_v36 }
 0x4ab   :  { %v2777_v25 = vsub.f32 1.5, %v2776_v44  ;;  %v3986_v6 = vadd.f32 %v6558_v42, %v3852_v21  ;;  %v2349_v3 = vpop.f32.mrf.mxu3  ;;  %v8477_v44 = vld [vmem:[#allocation92_spill] sm:$0xff] }
 0x4ac   :  { %v4776_v59 = vpop.eup %4775  ;;  %v7105_v43 = vadd.f32 %v2349_v3, %v2141_v10 }
 0x4ad   :  { %v2784_v54 = vmul.f32 %v4776_v59, %v7074_v57  ;;  %v4096_v34 = vpack.c.bf16 %v3986_v6, %v3985_v49  ;;  %v3336_v9 = vpop.f32.mrf.mxu0  ;;  %v2778_v11 = vmul.f32 %v4774_v14, %v2777_v25  ;;  %v8479_v25 = vld [vmem:[#allocation71_spill] sm:$0xff]  ;;  %vm2790_vm1 = vweird.f32 %v4776_v59  ;;  %v8484_v57 = vld [vmem:[#allocation145_spill] sm:$0xff] }
 0x4ae   :  { %4777 = vrsqrt.f32 %v7105_v43  ;;  %v3719_v21 = vmul.f32 %v3336_v9, %v8477_v44  ;;  %v3545_v40 = vpop.f32.mrf.mxu1  ;;  %v7119_v6 = vsub.f32 %v8479_v25, %v6357_v13  ;;  %v8481_v44 = vld [vmem:[#allocation110_spill] sm:$0xff]  ;;  %vm2791_vm3 = vmor %vm2789_vm2, %vm2790_vm1  ;;  %vm2799_vm5 = vweird.f32 %v7105_v43 }
 0x4af   :  { %v2785_v7 = vmul.f32 %v4776_v59, %v2784_v54  ;;  %4160 = vst [vmem:[%s7844_s6 + $0x88] sm:$0xff] %v4096_v34  ;;  %v3720_v10 = vmul.f32 %v3545_v40, %v8478_v35  ;;  %2196 = vmatmul.f32.gmra.mxu2 %v1997_v45  ;;  %v2782_v49 = vsel %vm2781_vm15, %v4774_v14, %v2778_v11  ;;  %v8482_v34 = vld [vmem:[#allocation72_spill] sm:$0xff]  ;;  %v2144_v14 = vadd.f32 1e-05, %v7069_v32 }
 0x4b0   :  { %8480 = vst [vmem:[#allocation13_spill] sm:$0xff] %v7119_v6  ;;  %v3853_v3 = vmul.f32 %v6544_v0, %v3719_v21  ;;  %2399 = vmatmul.f32.gmra.mxu3 %v1994_v5  ;;  %4573 = vmatmul.msk.f32.gmra.mxu0 %vm260_vm0, %v2782_v49  ;;  %v7127_v4 = vsub.f32 %v8482_v34, %v8481_v44 }
 0x4b1   :  { %v2786_v9 = vmul.f32 0.5, %v2785_v7  ;;  %v3854_v54 = vmul.f32 %v6548_v61, %v3720_v10  ;;  %4637 = vmatmul.msk.f32.gmra.mxu1 %vm260_vm0, %v2782_v49  ;;  %v1999_v7 = vmul.f32 %v7119_v6, %v7119_v6 }
 0x4b2   :  { %v3987_v45 = vadd.f32 %v6554_v2, %v3853_v3  ;;  %v7131_v13 = vpop.f32.mrf.mxu2  ;;  %v1996_v3 = vmul.f32 %v7127_v4, %v7127_v4 }
 0x4b3   :  { %v2787_v11 = vsub.f32 1.5, %v2786_v9  ;;  %v3988_v5 = vadd.f32 %v6558_v42, %v3854_v54  ;;  %v2352_v21 = vpop.f32.mrf.mxu3  ;;  %v8483_v9 = vld [vmem:[#allocation95_spill] sm:$0xff] }
 0x4b4   :  { %v4778_v40 = vpop.eup %4777  ;;  %v7136_v35 = vadd.f32 %v2352_v21, %v2144_v14 }
 0x4b5   :  { %v2794_v10 = vmul.f32 %v4778_v40, %v7105_v43  ;;  %v4097_v32 = vpack.c.bf16 %v3988_v5, %v3987_v45  ;;  %v3339_v49 = vpop.f32.mrf.mxu0  ;;  %v2788_v25 = vmul.f32 %v4776_v59, %v2787_v11  ;;  %v8485_v11 = vld [vmem:[#allocation75_spill] sm:$0xff]  ;;  %vm2800_vm4 = vweird.f32 %v4778_v40  ;;  %v8490_v43 = vld [vmem:[#allocation105_spill] sm:$0xff] }
 0x4b6   :  { %4779 = vrsqrt.f32 %v7136_v35  ;;  %v3721_v54 = vmul.f32 %v3339_v49, %v8483_v9  ;;  %v3548_v44 = vpop.f32.mrf.mxu1  ;;  %v7150_v5 = vsub.f32 %v8485_v11, %v6380_v16  ;;  %v8487_v9 = vld [vmem:[#allocation112_spill] sm:$0xff]  ;;  %vm2801_vm6 = vmor %vm2799_vm5, %vm2800_vm4  ;;  %vm2809_vm8 = vweird.f32 %v7136_v35 }
 0x4b7   :  { %v2795_v34 = vmul.f32 %v4778_v40, %v2794_v10  ;;  %4161 = vst [vmem:[%s7844_s6 + $0x90] sm:$0xff] %v4097_v32  ;;  %v3722_v14 = vmul.f32 %v3548_v44, %v8484_v57  ;;  %2199 = vmatmul.f32.gmra.mxu2 %v1999_v7  ;;  %v2792_v45 = vsel %vm2791_vm3, %v4776_v59, %v2788_v25  ;;  %v8488_v32 = vld [vmem:[#allocation76_spill] sm:$0xff]  ;;  %v2147_v59 = vadd.f32 1e-05, %v7100_v47 }
 0x4b8   :  { %8486 = vst [vmem:[#allocation30_spill] sm:$0xff] %v7150_v5  ;;  %v3855_v21 = vmul.f32 %v6544_v0, %v3721_v54  ;;  %2402 = vmatmul.f32.gmra.mxu3 %v1996_v3  ;;  %4574 = vmatmul.msk.f32.gmra.mxu0 %vm260_vm0, %v2792_v45  ;;  %v7158_v6 = vsub.f32 %v8488_v32, %v8487_v9 }
 0x4b9   :  { %v2796_v49 = vmul.f32 0.5, %v2795_v34  ;;  %v3856_v10 = vmul.f32 %v6548_v61, %v3722_v14  ;;  %4638 = vmatmul.msk.f32.gmra.mxu1 %vm260_vm0, %v2792_v45  ;;  %v2001_v34 = vmul.f32 %v7150_v5, %v7150_v5 }
 0x4ba   :  { %v3989_v7 = vadd.f32 %v6554_v2, %v3855_v21  ;;  %v7162_v16 = vpop.f32.mrf.mxu2  ;;  %v1998_v21 = vmul.f32 %v7158_v6, %v7158_v6 }
 0x4bb   :  { %v2797_v25 = vsub.f32 1.5, %v2796_v49  ;;  %v3990_v3 = vadd.f32 %v6558_v42, %v3856_v10  ;;  %v2355_v54 = vpop.f32.mrf.mxu3  ;;  %v8489_v49 = vld [vmem:[#allocation99_spill] sm:$0xff] }
 0x4bc   :  { %v4780_v44 = vpop.eup %4779  ;;  %v7167_v57 = vadd.f32 %v2355_v54, %v2147_v59 }
 0x4bd   :  { %v2804_v14 = vmul.f32 %v4780_v44, %v7136_v35  ;;  %v4098_v47 = vpack.c.bf16 %v3990_v3, %v3989_v7  ;;  %v3342_v45 = vpop.f32.mrf.mxu0  ;;  %v2798_v11 = vmul.f32 %v4778_v40, %v2797_v25  ;;  %v8491_v25 = vld [vmem:[#allocation78_spill] sm:$0xff]  ;;  %vm2810_vm7 = vweird.f32 %v4780_v44 }
 0x4be   :  { %4781 = vrsqrt.f32 %v7167_v57  ;;  %v3723_v10 = vmul.f32 %v3342_v45, %v8489_v49  ;;  %v3551_v9 = vpop.f32.mrf.mxu1  ;;  %v7181_v3 = vsub.f32 %v8491_v25, %v6403_v20  ;;  %v8493_v49 = vld [vmem:[#allocation131_spill] sm:$0xff]  ;;  %vm2811_vm9 = vmor %vm2809_vm8, %vm2810_vm7  ;;  %v8496_v35 = vld [vmem:[#allocation146_spill] sm:$0xff]  ;;  %vm2819_vm11 = vweird.f32 %v7167_v57 }
 0x4bf   :  { %v2805_v32 = vmul.f32 %v4780_v44, %v2804_v14  ;;  %4162 = vst [vmem:[%s7844_s6 + $0x98] sm:$0xff] %v4098_v47  ;;  %v3724_v59 = vmul.f32 %v3551_v9, %v8490_v43  ;;  %2202 = vmatmul.f32.gmra.mxu2 %v2001_v34  ;;  %v2802_v7 = vsel %vm2801_vm6, %v4778_v40, %v2798_v11  ;;  %v8494_v47 = vld [vmem:[#allocation79_spill] sm:$0xff]  ;;  %v2150_v40 = vadd.f32 1e-05, %v7131_v13 }
 0x4c0   :  { %8492 = vst [vmem:[#allocation33_spill] sm:$0xff] %v7181_v3  ;;  %v3857_v54 = vmul.f32 %v6544_v0, %v3723_v10  ;;  %2405 = vmatmul.f32.gmra.mxu3 %v1998_v21  ;;  %4575 = vmatmul.msk.f32.gmra.mxu0 %vm260_vm0, %v2802_v7  ;;  %v7189_v5 = vsub.f32 %v8494_v47, %v8493_v49 }
 0x4c1   :  { %v2806_v45 = vmul.f32 0.5, %v2805_v32  ;;  %v3858_v14 = vmul.f32 %v6548_v61, %v3724_v59  ;;  %4639 = vmatmul.msk.f32.gmra.mxu1 %vm260_vm0, %v2802_v7  ;;  %v2003_v32 = vmul.f32 %v7181_v3, %v7181_v3 }
 0x4c2   :  { %v3991_v34 = vadd.f32 %v6554_v2, %v3857_v54  ;;  %v7193_v20 = vpop.f32.mrf.mxu2  ;;  %v2000_v54 = vmul.f32 %v7189_v5, %v7189_v5 }
 0x4c3   :  { %v2807_v11 = vsub.f32 1.5, %v2806_v45  ;;  %v3992_v21 = vadd.f32 %v6558_v42, %v3858_v14  ;;  %v2358_v10 = vpop.f32.mrf.mxu3  ;;  %v8495_v45 = vld [vmem:[#allocation103_spill] sm:$0xff] }
 0x4c4   :  { %v4782_v9 = vpop.eup %4781  ;;  %v7198_v43 = vadd.f32 %v2358_v10, %v2150_v40 }
 0x4c5   :  { %v2814_v59 = vmul.f32 %v4782_v9, %v7167_v57  ;;  %v4099_v13 = vpack.c.bf16 %v3992_v21, %v3991_v34  ;;  %v3345_v7 = vpop.f32.mrf.mxu0  ;;  %v2808_v25 = vmul.f32 %v4780_v44, %v2807_v11  ;;  %v8497_v11 = vld [vmem:[#allocation82_spill] sm:$0xff]  ;;  %vm2820_vm10 = vweird.f32 %v4782_v9  ;;  %v8502_v57 = vld [vmem:[#allocation127_spill] sm:$0xff] }
 0x4c6   :  { %4783 = vrsqrt.f32 %v7198_v43  ;;  %v3725_v14 = vmul.f32 %v3345_v7, %v8495_v45  ;;  %v3554_v49 = vpop.f32.mrf.mxu1  ;;  %v7212_v21 = vsub.f32 %v8497_v11, %v6423_v41  ;;  %v8499_v45 = vld [vmem:[#allocation116_spill] sm:$0xff]  ;;  %vm2821_vm12 = vmor %vm2819_vm11, %vm2820_vm10  ;;  %vm2829_vm14 = vweird.f32 %v7198_v43 }
 0x4c7   :  { %v2815_v47 = vmul.f32 %v4782_v9, %v2814_v59  ;;  %4163 = vst [vmem:[%s7844_s6 + $0xa0] sm:$0xff] %v4099_v13  ;;  %v3726_v40 = vmul.f32 %v3554_v49, %v8496_v35  ;;  %2205 = vmatmul.f32.gmra.mxu2 %v2003_v32  ;;  %v2812_v34 = vsel %vm2811_vm9, %v4780_v44, %v2808_v25  ;;  %v8500_v13 = vld [vmem:[#allocation83_spill] sm:$0xff]  ;;  %v2153_v44 = vadd.f32 1e-05, %v7162_v16 }
 0x4c8   :  { %8498 = vst [vmem:[#allocation14_spill] sm:$0xff] %v7212_v21  ;;  %v3859_v10 = vmul.f32 %v6544_v0, %v3725_v14  ;;  %2408 = vmatmul.f32.gmra.mxu3 %v2000_v54  ;;  %4576 = vmatmul.msk.f32.gmra.mxu0 %vm260_vm0, %v2812_v34  ;;  %v7220_v3 = vsub.f32 %v8500_v13, %v8499_v45 }
 0x4c9   :  { %v2816_v7 = vmul.f32 0.5, %v2815_v47  ;;  %v3860_v59 = vmul.f32 %v6548_v61, %v3726_v40  ;;  %4640 = vmatmul.msk.f32.gmra.mxu1 %vm260_vm0, %v2812_v34  ;;  %v2005_v47 = vmul.f32 %v7212_v21, %v7212_v21 }
 0x4ca   :  { %v3993_v32 = vadd.f32 %v6554_v2, %v3859_v10  ;;  %v7224_v41 = vpop.f32.mrf.mxu2  ;;  %v2002_v10 = vmul.f32 %v7220_v3, %v7220_v3 }
 0x4cb   :  { %v2817_v25 = vsub.f32 1.5, %v2816_v7  ;;  %v3994_v54 = vadd.f32 %v6558_v42, %v3860_v59  ;;  %v2361_v14 = vpop.f32.mrf.mxu3  ;;  %v8501_v7 = vld [vmem:[#allocation104_spill] sm:$0xff] }
 0x4cc   :  { %v4784_v49 = vpop.eup %4783  ;;  %v7229_v35 = vadd.f32 %v2361_v14, %v2153_v44 }
 0x4cd   :  { %v2824_v40 = vmul.f32 %v4784_v49, %v7198_v43  ;;  %v4100_v16 = vpack.c.bf16 %v3994_v54, %v3993_v32  ;;  %v3348_v34 = vpop.f32.mrf.mxu0  ;;  %v2818_v11 = vmul.f32 %v4782_v9, %v2817_v25  ;;  %v8503_v25 = vld [vmem:[#allocation86_spill] sm:$0xff]  ;;  %vm2830_vm13 = vweird.f32 %v4784_v49  ;;  %v8508_v43 = vld [vmem:[#allocation109_spill] sm:$0xff] }
 0x4ce   :  { %4785 = vrsqrt.f32 %v7229_v35  ;;  %v3727_v59 = vmul.f32 %v3348_v34, %v8501_v7  ;;  %v3557_v45 = vpop.f32.mrf.mxu1  ;;  %v7243_v54 = vsub.f32 %v8503_v25, %v6443_v29  ;;  %v8505_v7 = vld [vmem:[#allocation118_spill] sm:$0xff]  ;;  %vm2831_vm15 = vmor %vm2829_vm14, %vm2830_vm13  ;;  %vm2839_vm2 = vweird.f32 %v7229_v35 }
 0x4cf   :  { %v2825_v13 = vmul.f32 %v4784_v49, %v2824_v40  ;;  %4164 = vst [vmem:[%s7844_s6 + $0xa8] sm:$0xff] %v4100_v16  ;;  %v3728_v44 = vmul.f32 %v3557_v45, %v8502_v57  ;;  %2208 = vmatmul.f32.gmra.mxu2 %v2005_v47  ;;  %v2822_v32 = vsel %vm2821_vm12, %v4782_v9, %v2818_v11  ;;  %v8506_v16 = vld [vmem:[#allocation87_spill] sm:$0xff]  ;;  %v2156_v9 = vadd.f32 1e-05, %v7193_v20 }
 0x4d0   :  { %8504 = vst [vmem:[#allocation15_spill] sm:$0xff] %v7243_v54  ;;  %v3861_v14 = vmul.f32 %v6544_v0, %v3727_v59  ;;  %2411 = vmatmul.f32.gmra.mxu3 %v2002_v10  ;;  %4577 = vmatmul.msk.f32.gmra.mxu0 %vm260_vm0, %v2822_v32  ;;  %v7251_v21 = vsub.f32 %v8506_v16, %v8505_v7 }
 0x4d1   :  { %v2826_v34 = vmul.f32 0.5, %v2825_v13  ;;  %v3862_v40 = vmul.f32 %v6548_v61, %v3728_v44  ;;  %4641 = vmatmul.msk.f32.gmra.mxu1 %vm260_vm0, %v2822_v32  ;;  %v2007_v13 = vmul.f32 %v7243_v54, %v7243_v54 }
 0x4d2   :  { %v3995_v47 = vadd.f32 %v6554_v2, %v3861_v14  ;;  %v7255_v29 = vpop.f32.mrf.mxu2  ;;  %v2004_v14 = vmul.f32 %v7251_v21, %v7251_v21 }
 0x4d3   :  { %v2827_v11 = vsub.f32 1.5, %v2826_v34  ;;  %v3996_v10 = vadd.f32 %v6558_v42, %v3862_v40  ;;  %v2364_v59 = vpop.f32.mrf.mxu3  ;;  %v8507_v34 = vld [vmem:[#allocation106_spill] sm:$0xff] }
 0x4d4   :  { %v4786_v45 = vpop.eup %4785  ;;  %v7260_v57 = vadd.f32 %v2364_v59, %v2156_v9 }
 0x4d5   :  { %v2834_v44 = vmul.f32 %v4786_v45, %v7229_v35  ;;  %v4101_v20 = vpack.c.bf16 %v3996_v10, %v3995_v47  ;;  %v3351_v32 = vpop.f32.mrf.mxu0  ;;  %v2828_v25 = vmul.f32 %v4784_v49, %v2827_v11  ;;  %v8509_v11 = vld [vmem:[#allocation90_spill] sm:$0xff]  ;;  %vm2840_vm1 = vweird.f32 %v4786_v45  ;;  %v8513_v35 = vld [vmem:[#allocation111_spill] sm:$0xff] }
 0x4d6   :  { %4787 = vrsqrt.f32 %v7260_v57  ;;  %v3729_v40 = vmul.f32 %v3351_v32, %v8507_v34  ;;  %v3560_v7 = vpop.f32.mrf.mxu1  ;;  %v7274_v10 = vsub.f32 %v8509_v11, %v6466_v38  ;;  %v8510_v34 = vld [vmem:[#allocation120_spill] sm:$0xff]  ;;  %vm2841_vm3 = vmor %vm2839_vm2, %vm2840_vm1  ;;  %vm2849_vm5 = vweird.f32 %v7260_v57 }
 0x4d7   :  { %v2835_v16 = vmul.f32 %v4786_v45, %v2834_v44  ;;  %4165 = vst [vmem:[%s7844_s6 + $0xb0] sm:$0xff] %v4101_v20  ;;  %v3730_v9 = vmul.f32 %v3560_v7, %v8508_v43  ;;  %2211 = vmatmul.f32.gmra.mxu2 %v2007_v13  ;;  %v2832_v47 = vsel %vm2831_vm15, %v4784_v49, %v2828_v25  ;;  %v8511_v20 = vld [vmem:[#allocation91_spill] sm:$0xff]  ;;  %v2159_v49 = vadd.f32 1e-05, %v7224_v41 }
 0x4d8   :  { %v3863_v59 = vmul.f32 %v6544_v0, %v3729_v40  ;;  %2414 = vmatmul.f32.gmra.mxu3 %v2004_v14  ;;  %4578 = vmatmul.msk.f32.gmra.mxu0 %vm260_vm0, %v2832_v47  ;;  %v7282_v54 = vsub.f32 %v8511_v20, %v8510_v34 }
 0x4d9   :  { %v2836_v32 = vmul.f32 0.5, %v2835_v16  ;;  %v3864_v44 = vmul.f32 %v6548_v61, %v3730_v9  ;;  %4642 = vmatmul.msk.f32.gmra.mxu1 %vm260_vm0, %v2832_v47  ;;  %v2009_v16 = vmul.f32 %v7274_v10, %v7274_v10 }
 0x4da   :  { %v3997_v13 = vadd.f32 %v6554_v2, %v3863_v59  ;;  %v7286_v38 = vpop.f32.mrf.mxu2  ;;  %v2006_v59 = vmul.f32 %v7282_v54, %v7282_v54 }
 0x4db   :  { %v2837_v25 = vsub.f32 1.5, %v2836_v32  ;;  %v3998_v14 = vadd.f32 %v6558_v42, %v3864_v44  ;;  %v2367_v40 = vpop.f32.mrf.mxu3  ;;  %v8512_v32 = vld [vmem:[#allocation107_spill] sm:$0xff] }
 0x4dc   :  { %v4788_v7 = vpop.eup %4787  ;;  %v7291_v43 = vadd.f32 %v2367_v40, %v2159_v49 }
 0x4dd   :  { %v2844_v9 = vmul.f32 %v4788_v7, %v7260_v57  ;;  %v4102_v41 = vpack.c.bf16 %v3998_v14, %v3997_v13  ;;  %v3354_v47 = vpop.f32.mrf.mxu0  ;;  %v2838_v11 = vmul.f32 %v4786_v45, %v2837_v25  ;;  %v8514_v25 = vld [vmem:[#allocation93_spill] sm:$0xff]  ;;  %vm2850_vm4 = vweird.f32 %v4788_v7 }
 0x4de   :  { %4789 = vrsqrt.f32 %v7291_v43  ;;  %v3731_v44 = vmul.f32 %v3354_v47, %v8512_v32  ;;  %v3563_v34 = vpop.f32.mrf.mxu1  ;;  %v7305_v14 = vsub.f32 %v8514_v25, %v6489_v30  ;;  %vm2851_vm6 = vmor %vm2849_vm5, %vm2850_vm4  ;;  %v8518_v57 = vld [vmem:[#allocation113_spill] sm:$0xff]  ;;  %vm2859_vm8 = vweird.f32 %v7291_v43 }
 0x4df   :  { %v2845_v20 = vmul.f32 %v4788_v7, %v2844_v9  ;;  %4166 = vst [vmem:[%s7844_s6 + $0xb8] sm:$0xff] %v4102_v41  ;;  %v3732_v49 = vmul.f32 %v3563_v34, %v8513_v35  ;;  %2214 = vmatmul.f32.gmra.mxu2 %v2009_v16  ;;  %v2842_v13 = vsel %vm2841_vm3, %v4786_v45, %v2838_v11  ;;  %v8516_v41 = vld [vmem:[#allocation94_spill] sm:$0xff]  ;;  %v2162_v45 = vadd.f32 1e-05, %v7255_v29 }
 0x4e0   :  { %8515 = vst [vmem:[#allocation34_spill] sm:$0xff] %v7305_v14  ;;  %v3865_v40 = vmul.f32 %v6544_v0, %v3731_v44  ;;  %2417 = vmatmul.f32.gmra.mxu3 %v2006_v59  ;;  %4579 = vmatmul.msk.f32.gmra.mxu0 %vm260_vm0, %v2842_v13  ;;  %v7313_v32 = vsub.f32 %v8516_v41, %v6445_v56 }
 0x4e1   :  { %v2846_v47 = vmul.f32 0.5, %v2845_v20  ;;  %v3866_v9 = vmul.f32 %v6548_v61, %v3732_v49  ;;  %4643 = vmatmul.msk.f32.gmra.mxu1 %vm260_vm0, %v2842_v13  ;;  %v2011_v20 = vmul.f32 %v7305_v14, %v7305_v14 }
 0x4e2   :  { %v3999_v16 = vadd.f32 %v6554_v2, %v3865_v40  ;;  %v7317_v30 = vpop.f32.mrf.mxu2  ;;  %v2008_v25 = vmul.f32 %v7313_v32, %v7313_v32  ;;  %v8517_v40 = vld [vmem:[#allocation130_spill] sm:$0xff] }
 0x4e3   :  { %v2847_v11 = vsub.f32 1.5, %v2846_v47  ;;  %v4000_v59 = vadd.f32 %v6558_v42, %v3866_v9  ;;  %v2370_v44 = vpop.f32.mrf.mxu3 }
 0x4e4   :  { %v4790_v34 = vpop.eup %4789  ;;  %v7322_v35 = vadd.f32 %v2370_v44, %v2162_v45 }
 0x4e5   :  { %v2854_v56 = vmul.f32 %v4790_v34, %v7291_v43  ;;  %v4103_v29 = vpack.c.bf16 %v4000_v59, %v3999_v16  ;;  %v3357_v49 = vpop.f32.mrf.mxu0  ;;  %v2848_v13 = vmul.f32 %v4788_v7, %v2847_v11  ;;  %v8519_v11 = vld [vmem:[#allocation96_spill] sm:$0xff]  ;;  %vm2860_vm7 = vweird.f32 %v4790_v34 }
 0x4e6   :  { %4791 = vrsqrt.f32 %v7322_v35  ;;  %v3733_v47 = vmul.f32 %v3357_v49, %v8517_v40  ;;  %v3566_v9 = vpop.f32.mrf.mxu1  ;;  %v7336_v59 = vsub.f32 %v8519_v11, %v6514_v31  ;;  %vm2861_vm9 = vmor %vm2859_vm8, %vm2860_vm7  ;;  %v8523_v43 = vld [vmem:[#allocation136_spill] sm:$0xff]  ;;  %vm2869_vm11 = vweird.f32 %v7322_v35 }
 0x4e7   :  { %v2855_v41 = vmul.f32 %v4790_v34, %v2854_v56  ;;  %4167 = vst [vmem:[%s7844_s6 + $0xc0] sm:$0xff] %v4103_v29  ;;  %v3734_v45 = vmul.f32 %v3566_v9, %v8518_v57  ;;  %2217 = vmatmul.f32.gmra.mxu2 %v2011_v20  ;;  %v2852_v16 = vsel %vm2851_vm6, %v4788_v7, %v2848_v13  ;;  %v8521_v29 = vld [vmem:[#allocation97_spill] sm:$0xff]  ;;  %v2165_v7 = vadd.f32 1e-05, %v7286_v38 }
 0x4e8   :  { %8520 = vst [vmem:[#allocation37_spill] sm:$0xff] %v7336_v59  ;;  %v3867_v44 = vmul.f32 %v6544_v0, %v3733_v47  ;;  %2420 = vmatmul.f32.gmra.mxu3 %v2008_v25  ;;  %4580 = vmatmul.msk.f32.gmra.mxu0 %vm260_vm0, %v2852_v16  ;;  %v7344_v40 = vsub.f32 %v8521_v29, %v6473_v22 }
 0x4e9   :  { %v2856_v49 = vmul.f32 0.5, %v2855_v41  ;;  %v3868_v56 = vmul.f32 %v6548_v61, %v3734_v45  ;;  %4644 = vmatmul.msk.f32.gmra.mxu1 %vm260_vm0, %v2852_v16  ;;  %v2013_v41 = vmul.f32 %v7336_v59, %v7336_v59 }
 0x4ea   :  { %v4001_v20 = vadd.f32 %v6554_v2, %v3867_v44  ;;  %v2170_v31 = vpop.f32.mrf.mxu2  ;;  %v2010_v11 = vmul.f32 %v7344_v40, %v7344_v40  ;;  %v8522_v44 = vld [vmem:[#allocation132_spill] sm:$0xff] }
 0x4eb   :  { %v2857_v13 = vsub.f32 1.5, %v2856_v49  ;;  %v4002_v47 = vadd.f32 %v6558_v42, %v3868_v56  ;;  %v2373_v25 = vpop.f32.mrf.mxu3  ;;  %v2171_v59 = vadd.f32 1e-05, %v2170_v31 }
 0x4ec   :  { %v4792_v9 = vpop.eup %4791  ;;  %v7351_v57 = vadd.f32 %v2373_v25, %v2165_v7 }
 0x4ed   :  { %v2864_v22 = vmul.f32 %v4792_v9, %v7322_v35  ;;  %v4104_v45 = vpack.c.bf16 %v4002_v47, %v4001_v20  ;;  %v3360_v38 = vpop.f32.mrf.mxu0  ;;  %v2858_v16 = vmul.f32 %v4790_v34, %v2857_v13  ;;  %vm2870_vm10 = vweird.f32 %v4792_v9  ;;  %v8527_v35 = vld [vmem:[#allocation133_spill] sm:$0xff] }
 0x4ee   :  { %4793 = vrsqrt.f32 %v7351_v57  ;;  %v3735_v49 = vmul.f32 %v3360_v38, %v8522_v44  ;;  %v3569_v56 = vpop.f32.mrf.mxu1  ;;  %v8524_v38 = vld [vmem:[#allocation2_spill] sm:$0xff]  ;;  %vm2871_vm12 = vmor %vm2869_vm11, %vm2870_vm10  ;;  %vm2879_vm14 = vweird.f32 %v7351_v57 }
 0x4ef   :  { %v2865_v29 = vmul.f32 %v4792_v9, %v2864_v22  ;;  %4168 = vst [vmem:[%s7844_s6 + $0xc8] sm:$0xff] %v4104_v45  ;;  %v3736_v7 = vmul.f32 %v3569_v56, %v8523_v43  ;;  %2220 = vmatmul.f32.gmra.mxu2 %v2013_v41  ;;  %v2862_v20 = vsel %vm2861_vm9, %v4790_v34, %v2858_v16  ;;  %v8525_v22 = vld [vmem:[#allocation100_spill] sm:$0xff]  ;;  %v2168_v45 = vadd.f32 1e-05, %v7317_v30 }
 0x4f0   :  { %v3869_v13 = vmul.f32 %v6544_v0, %v3735_v49  ;;  %2423 = vmatmul.f32.gmra.mxu3 %v2010_v11  ;;  %4581 = vmatmul.msk.f32.gmra.mxu0 %vm260_vm0, %v2862_v20  ;;  %v7369_v44 = vsub.f32 %v8525_v22, %v8524_v38 }
 0x4f1   :  { %v2866_v47 = vmul.f32 0.5, %v2865_v29  ;;  %v3870_v25 = vmul.f32 %v6548_v61, %v3736_v7  ;;  %4645 = vmatmul.msk.f32.gmra.mxu1 %vm260_vm0, %v2862_v20 }
 0x4f2   :  { %v4003_v56 = vadd.f32 %v6554_v2, %v3869_v13  ;;  %v2173_v41 = vpop.f32.mrf.mxu2  ;;  %v2012_v30 = vmul.f32 %v7369_v44, %v7369_v44  ;;  %v8526_v13 = vld [vmem:[#allocation134_spill] sm:$0xff] }
 0x4f3   :  { %v2867_v34 = vsub.f32 1.5, %v2866_v47  ;;  %v4004_v16 = vadd.f32 %v6558_v42, %v3870_v25  ;;  %v2376_v11 = vpop.f32.mrf.mxu3 }
 0x4f4   :  { %v4794_v49 = vpop.eup %4793  ;;  %v7374_v29 = vadd.f32 %v2376_v11, %v2168_v45 }
 0x4f5   :  { %v2874_v43 = vmul.f32 %v4794_v49, %v7351_v57  ;;  %v4105_v7 = vpack.c.bf16 %v4004_v16, %v4003_v56  ;;  %v3363_v20 = vpop.f32.mrf.mxu0  ;;  %v2868_v38 = vmul.f32 %v4792_v9, %v2867_v34  ;;  %vm2880_vm13 = vweird.f32 %v4794_v49 }
 0x4f6   :  { %4795 = vrsqrt.f32 %v7374_v29  ;;  %v3737_v47 = vmul.f32 %v3363_v20, %v8526_v13  ;;  %v3572_v25 = vpop.f32.mrf.mxu1  ;;  %v8528_v20 = vld [vmem:[#allocation5_spill] sm:$0xff]  ;;  %v8529_v13 = vld [vmem:[#allocation102_spill] sm:$0xff]  ;;  %vm2881_vm15 = vmor %vm2879_vm14, %vm2880_vm13  ;;  %vm2889_vm2 = vweird.f32 %v7374_v29 }
 0x4f7   :  { %v2875_v22 = vmul.f32 %v4794_v49, %v2874_v43  ;;  %4169 = vst [vmem:[%s7844_s6 + $0xd0] sm:$0xff] %v4105_v7  ;;  %v3738_v45 = vmul.f32 %v3572_v25, %v8527_v35  ;;  %v2872_v11 = vsel %vm2871_vm12, %v4792_v9, %v2868_v38  ;;  %v7392_v43 = vsub.f32 %v8529_v13, %v8528_v20 }
 0x4f8   :  { %v3871_v56 = vmul.f32 %v6544_v0, %v3737_v47  ;;  %2426 = vmatmul.f32.gmra.mxu3 %v2012_v30  ;;  %4582 = vmatmul.msk.f32.gmra.mxu0 %vm260_vm0, %v2872_v11 }
 0x4f9   :  { %v2876_v34 = vmul.f32 0.5, %v2875_v22  ;;  %v3872_v16 = vmul.f32 %v6548_v61, %v3738_v45  ;;  %4646 = vmatmul.msk.f32.gmra.mxu1 %vm260_vm0, %v2872_v11  ;;  %8530 = vst [vmem:[#allocation16_spill] sm:$0xff] %v7392_v43  ;;  %v2014_v31 = vmul.f32 %v7392_v43, %v7392_v43 }
 0x4fa   :  { %v4005_v7 = vadd.f32 %v6554_v2, %v3871_v56  ;;  %v2176_v14 = vpop.f32.mrf.mxu2  ;;  %v8531_v56 = vld [vmem:[#allocation114_spill] sm:$0xff] }
 0x4fb   :  { %v2877_v25 = vsub.f32 1.5, %v2876_v34  ;;  %v4006_v9 = vadd.f32 %v6558_v42, %v3872_v16  ;;  %v2379_v38 = vpop.f32.mrf.mxu3 }
 0x4fc   :  { %v4796_v30 = vpop.eup %4795  ;;  %v7396_v47 = vadd.f32 %v2379_v38, %v2171_v59  ;;  %v8532_v59 = vld [vmem:[#allocation135_spill] sm:$0xff]  ;;  %v2174_v38 = vadd.f32 1e-05, %v2173_v41 }
 0x4fd   :  { %v2884_v22 = vmul.f32 %v4796_v30, %v7374_v29  ;;  %v4106_v35 = vpack.c.bf16 %v4006_v9, %v4005_v7  ;;  %v3366_v45 = vpop.f32.mrf.mxu0  ;;  %v2878_v11 = vmul.f32 %v4794_v49, %v2877_v25  ;;  %vm2890_vm1 = vweird.f32 %v4796_v30  ;;  %v8533_v41 = vld [vmem:[#allocation115_spill] sm:$0xff] }
 0x4fe   :  { %4797 = vrsqrt.f32 %v7396_v47  ;;  %v3739_v34 = vmul.f32 %v3366_v45, %v8531_v56  ;;  %v3575_v16 = vpop.f32.mrf.mxu1  ;;  %vm2891_vm3 = vmor %vm2889_vm2, %vm2890_vm1  ;;  %vm2899_vm5 = vweird.f32 %v7396_v47 }
 0x4ff   :  { %v2885_v20 = vmul.f32 %v4796_v30, %v2884_v22  ;;  %4170 = vst [vmem:[%s7844_s6 + $0xd8] sm:$0xff] %v4106_v35  ;;  %v3740_v57 = vmul.f32 %v3575_v16, %v8532_v59  ;;  %v2882_v13 = vsel %vm2881_vm15, %v4794_v49, %v2878_v11 }
 0x500   :  { %v3873_v7 = vmul.f32 %v6544_v0, %v3739_v34  ;;  %2429 = vmatmul.f32.gmra.mxu3 %v2014_v31  ;;  %4583 = vmatmul.msk.f32.gmra.mxu0 %vm260_vm0, %v2882_v13 }
 0x501   :  { %v2886_v25 = vmul.f32 0.5, %v2885_v20  ;;  %v3874_v9 = vmul.f32 %v6548_v61, %v3740_v57  ;;  %4647 = vmatmul.msk.f32.gmra.mxu1 %vm260_vm0, %v2882_v13 }
 0x502   :  { %v4007_v22 = vadd.f32 %v6554_v2, %v3873_v7  ;;  %v2179_v45 = vpop.f32.mrf.mxu2 }
 0x503   :  { %v2887_v56 = vsub.f32 1.5, %v2886_v25  ;;  %v4008_v35 = vadd.f32 %v6558_v42, %v3874_v9  ;;  %v2382_v43 = vpop.f32.mrf.mxu3 }
 0x504   :  { %v4798_v49 = vpop.eup %4797  ;;  %v7414_v11 = vadd.f32 %v2382_v43, %v2174_v38  ;;  %v8534_v43 = vld [vmem:[#allocation137_spill] sm:$0xff] }
 0x505   :  { %v2894_v31 = vmul.f32 %v4798_v49, %v7396_v47  ;;  %v4107_v34 = vpack.c.bf16 %v4008_v35, %v4007_v22  ;;  %v3369_v16 = vpop.f32.mrf.mxu0  ;;  %v2888_v20 = vmul.f32 %v4796_v30, %v2887_v56  ;;  %v2177_v22 = vadd.f32 1e-05, %v2176_v14  ;;  %v8535_v14 = vld [vmem:[#allocation117_spill] sm:$0xff] }
 0x506   :  { %4799 = vrsqrt.f32 %v7414_v11  ;;  %v3741_v59 = vmul.f32 %v3369_v16, %v8533_v41  ;;  %v3578_v57 = vpop.f32.mrf.mxu1  ;;  %vm2900_vm4 = vweird.f32 %v4798_v49  ;;  %vm2909_vm8 = vweird.f32 %v7414_v11 }
 0x507   :  { %v2895_v13 = vmul.f32 %v4798_v49, %v2894_v31  ;;  %4171 = vst [vmem:[%s7844_s6 + $0xe0] sm:$0xff] %v4107_v34  ;;  %v3742_v7 = vmul.f32 %v3578_v57, %v8534_v43  ;;  %v2892_v25 = vsel %vm2891_vm3, %v4796_v30, %v2888_v20  ;;  %vm2901_vm6 = vmor %vm2899_vm5, %vm2900_vm4 }
 0x508   :  { %v3875_v29 = vmul.f32 %v6544_v0, %v3741_v59  ;;  %4584 = vmatmul.msk.f32.gmra.mxu0 %vm260_vm0, %v2892_v25 }
 0x509   :  { %v2896_v9 = vmul.f32 0.5, %v2895_v13  ;;  %v3876_v38 = vmul.f32 %v6548_v61, %v3742_v7  ;;  %4648 = vmatmul.msk.f32.gmra.mxu1 %vm260_vm0, %v2892_v25 }
 0x50a   :  { %v4009_v56 = vadd.f32 %v6554_v2, %v3875_v29  ;;  %v2182_v35 = vpop.f32.mrf.mxu2  ;;  %v8536_v29 = vld [vmem:[#allocation138_spill] sm:$0xff] }
 0x50b   :  { %v2897_v31 = vsub.f32 1.5, %v2896_v9  ;;  %v4010_v16 = vadd.f32 %v6558_v42, %v3876_v38  ;;  %v2385_v34 = vpop.f32.mrf.mxu3 }
 0x50c   :  { %v4800_v41 = vpop.eup %4799  ;;  %v7430_v30 = vadd.f32 %v2385_v34, %v2177_v22 }
 0x50d   :  { %v2904_v20 = vmul.f32 %v4800_v41, %v7414_v11  ;;  %v4108_v59 = vpack.c.bf16 %v4010_v16, %v4009_v56  ;;  %v3372_v57 = vpop.f32.mrf.mxu0  ;;  %v2898_v13 = vmul.f32 %v4798_v49, %v2897_v31  ;;  %v2180_v31 = vadd.f32 1e-05, %v2179_v45  ;;  %v8537_v45 = vld [vmem:[#allocation119_spill] sm:$0xff] }
 0x50e   :  { %4801 = vrsqrt.f32 %v7430_v30  ;;  %v3743_v43 = vmul.f32 %v3372_v57, %v8535_v14  ;;  %v3581_v7 = vpop.f32.mrf.mxu1  ;;  %vm2910_vm7 = vweird.f32 %v4800_v41  ;;  %vm2919_vm11 = vweird.f32 %v7430_v30 }
 0x50f   :  { %v2905_v25 = vmul.f32 %v4800_v41, %v2904_v20  ;;  %4172 = vst [vmem:[%s7844_s6 + $0xe8] sm:$0xff] %v4108_v59  ;;  %v3744_v9 = vmul.f32 %v3581_v7, %v8536_v29  ;;  %v2902_v38 = vsel %vm2901_vm6, %v4798_v49, %v2898_v13  ;;  %vm2911_vm9 = vmor %vm2909_vm8, %vm2910_vm7 }
 0x510   :  { %v3877_v47 = vmul.f32 %v6544_v0, %v3743_v43  ;;  %4585 = vmatmul.msk.f32.gmra.mxu0 %vm260_vm0, %v2902_v38 }
 0x511   :  { %v2906_v22 = vmul.f32 0.5, %v2905_v25  ;;  %v3878_v56 = vmul.f32 %v6548_v61, %v3744_v9  ;;  %4649 = vmatmul.msk.f32.gmra.mxu1 %vm260_vm0, %v2902_v38 }
 0x512   :  { %v4011_v16 = vadd.f32 %v6554_v2, %v3877_v47  ;;  %v2185_v34 = vpop.f32.mrf.mxu2  ;;  %v8538_v47 = vld [vmem:[#allocation123_spill] sm:$0xff] }
 0x513   :  { %v2907_v20 = vsub.f32 1.5, %v2906_v22  ;;  %v4012_v57 = vadd.f32 %v6558_v42, %v3878_v56  ;;  %v2388_v59 = vpop.f32.mrf.mxu3 }
 0x514   :  { %v4802_v14 = vpop.eup %4801  ;;  %v7446_v49 = vadd.f32 %v2388_v59, %v2180_v31 }
 0x515   :  { %v2914_v13 = vmul.f32 %v4802_v14, %v7430_v30  ;;  %v4109_v43 = vpack.c.bf16 %v4012_v57, %v4011_v16  ;;  %v3375_v7 = vpop.f32.mrf.mxu0  ;;  %v2908_v25 = vmul.f32 %v4800_v41, %v2907_v20  ;;  %v2183_v20 = vadd.f32 1e-05, %v2182_v35  ;;  %v8539_v35 = vld [vmem:[#allocation121_spill] sm:$0xff] }
 0x516   :  { %4803 = vrsqrt.f32 %v7446_v49  ;;  %v3745_v29 = vmul.f32 %v3375_v7, %v8537_v45  ;;  %v3584_v9 = vpop.f32.mrf.mxu1  ;;  %vm2920_vm10 = vweird.f32 %v4802_v14  ;;  %vm2929_vm14 = vweird.f32 %v7446_v49 }
 0x517   :  { %v2915_v38 = vmul.f32 %v4802_v14, %v2914_v13  ;;  %4173 = vst [vmem:[%s7844_s6 + $0xf0] sm:$0xff] %v4109_v43  ;;  %v3746_v22 = vmul.f32 %v3584_v9, %v8538_v47  ;;  %v2912_v56 = vsel %vm2911_vm9, %v4800_v41, %v2908_v25  ;;  %vm2921_vm12 = vmor %vm2919_vm11, %vm2920_vm10 }
 0x518   :  { %v3879_v11 = vmul.f32 %v6544_v0, %v3745_v29  ;;  %4586 = vmatmul.msk.f32.gmra.mxu0 %vm260_vm0, %v2912_v56 }
 0x519   :  { %v2916_v31 = vmul.f32 0.5, %v2915_v38  ;;  %v3880_v16 = vmul.f32 %v6548_v61, %v3746_v22  ;;  %4650 = vmatmul.msk.f32.gmra.mxu1 %vm260_vm0, %v2912_v56 }
 0x51a   :  { %v4013_v57 = vadd.f32 %v6554_v2, %v3879_v11  ;;  %v2188_v59 = vpop.f32.mrf.mxu2  ;;  %v8540_v11 = vld [vmem:[#allocation124_spill] sm:$0xff] }
 0x51b   :  { %v2917_v13 = vsub.f32 1.5, %v2916_v31  ;;  %v4014_v7 = vadd.f32 %v6558_v42, %v3880_v16  ;;  %v2391_v43 = vpop.f32.mrf.mxu3 }
 0x51c   :  { %v4804_v45 = vpop.eup %4803  ;;  %v7462_v41 = vadd.f32 %v2391_v43, %v2183_v20 }
 0x51d   :  { %v2924_v25 = vmul.f32 %v4804_v45, %v7446_v49  ;;  %v4110_v29 = vpack.c.bf16 %v4014_v7, %v4013_v57  ;;  %v3378_v9 = vpop.f32.mrf.mxu0  ;;  %v2918_v38 = vmul.f32 %v4802_v14, %v2917_v13  ;;  %v2186_v13 = vadd.f32 1e-05, %v2185_v34  ;;  %v8541_v34 = vld [vmem:[#allocation122_spill] sm:$0xff] }
 0x51e   :  { %4805 = vrsqrt.f32 %v7462_v41  ;;  %v3747_v47 = vmul.f32 %v3378_v9, %v8539_v35  ;;  %v3587_v22 = vpop.f32.mrf.mxu1  ;;  %vm2930_vm13 = vweird.f32 %v4804_v45  ;;  %vm2939_vm2 = vweird.f32 %v7462_v41 }
 0x51f   :  { %v2925_v56 = vmul.f32 %v4804_v45, %v2924_v25  ;;  %4174 = vst [vmem:[%s7844_s6 + $0xf8] sm:$0xff] %v4110_v29  ;;  %v3748_v31 = vmul.f32 %v3587_v22, %v8540_v11  ;;  %v2922_v16 = vsel %vm2921_vm12, %v4802_v14, %v2918_v38  ;;  %vm2931_vm15 = vmor %vm2929_vm14, %vm2930_vm13 }
 0x520   :  { %v3881_v30 = vmul.f32 %v6544_v0, %v3747_v47  ;;  %4587 = vmatmul.msk.f32.gmra.mxu0 %vm260_vm0, %v2922_v16 }
 0x521   :  { %v2926_v20 = vmul.f32 0.5, %v2925_v56  ;;  %v3882_v57 = vmul.f32 %v6548_v61, %v3748_v31  ;;  %4651 = vmatmul.msk.f32.gmra.mxu1 %vm260_vm0, %v2922_v16 }
 0x522   :  { %v4015_v7 = vadd.f32 %v6554_v2, %v3881_v30  ;;  %v2191_v43 = vpop.f32.mrf.mxu2  ;;  %v8542_v30 = vld [vmem:[#allocation126_spill] sm:$0xff] }
 0x523   :  { %v2927_v25 = vsub.f32 1.5, %v2926_v20  ;;  %v4016_v9 = vadd.f32 %v6558_v42, %v3882_v57  ;;  %v2394_v29 = vpop.f32.mrf.mxu3 }
 0x524   :  { %v4806_v35 = vpop.eup %4805  ;;  %v7478_v14 = vadd.f32 %v2394_v29, %v2186_v13 }
 0x525   :  { %v2934_v38 = vmul.f32 %v4806_v35, %v7462_v41  ;;  %v4111_v47 = vpack.c.bf16 %v4016_v9, %v4015_v7  ;;  %v3381_v22 = vpop.f32.mrf.mxu0  ;;  %v2928_v56 = vmul.f32 %v4804_v45, %v2927_v25  ;;  %v2189_v25 = vadd.f32 1e-05, %v2188_v59  ;;  %v8543_v59 = vld [vmem:[#allocation139_spill] sm:$0xff] }
 0x526   :  { %4807 = vrsqrt.f32 %v7478_v14  ;;  %v3749_v11 = vmul.f32 %v3381_v22, %v8541_v34  ;;  %v3590_v31 = vpop.f32.mrf.mxu1  ;;  %vm2940_vm1 = vweird.f32 %v4806_v35  ;;  %vm2949_vm5 = vweird.f32 %v7478_v14 }
 0x527   :  { %v2935_v16 = vmul.f32 %v4806_v35, %v2934_v38  ;;  %4175 = vst [vmem:[%s7844_s6 + $0x100] sm:$0xff] %v4111_v47  ;;  %v3750_v20 = vmul.f32 %v3590_v31, %v8542_v30  ;;  %v2932_v57 = vsel %vm2931_vm15, %v4804_v45, %v2928_v56  ;;  %vm2941_vm3 = vmor %vm2939_vm2, %vm2940_vm1 }
 0x528   :  { %v3883_v49 = vmul.f32 %v6544_v0, %v3749_v11  ;;  %4588 = vmatmul.msk.f32.gmra.mxu0 %vm260_vm0, %v2932_v57 }
 0x529   :  { %v2936_v13 = vmul.f32 0.5, %v2935_v16  ;;  %v3884_v7 = vmul.f32 %v6548_v61, %v3750_v20  ;;  %4652 = vmatmul.msk.f32.gmra.mxu1 %vm260_vm0, %v2932_v57 }
 0x52a   :  { %v4017_v9 = vadd.f32 %v6554_v2, %v3883_v49  ;;  %v2194_v29 = vpop.f32.mrf.mxu2  ;;  %v8544_v49 = vld [vmem:[#allocation4_spill] sm:$0xff] }
 0x52b   :  { %v2937_v38 = vsub.f32 1.5, %v2936_v13  ;;  %v4018_v22 = vadd.f32 %v6558_v42, %v3884_v7  ;;  %v2397_v47 = vpop.f32.mrf.mxu3 }
 0x52c   :  { %v4808_v34 = vpop.eup %4807  ;;  %v7494_v45 = vadd.f32 %v2397_v47, %v2189_v25 }
 0x52d   :  { %v2944_v56 = vmul.f32 %v4808_v34, %v7478_v14  ;;  %v4112_v11 = vpack.c.bf16 %v4018_v22, %v4017_v9  ;;  %v3384_v31 = vpop.f32.mrf.mxu0  ;;  %v2938_v16 = vmul.f32 %v4806_v35, %v2937_v38  ;;  %v2192_v38 = vadd.f32 1e-05, %v2191_v43  ;;  %v8545_v43 = vld [vmem:[#allocation125_spill] sm:$0xff] }
 0x52e   :  { %4809 = vrsqrt.f32 %v7494_v45  ;;  %v3751_v30 = vmul.f32 %v3384_v31, %v8543_v59  ;;  %v3593_v20 = vpop.f32.mrf.mxu1  ;;  %vm2950_vm4 = vweird.f32 %v4808_v34  ;;  %vm2959_vm8 = vweird.f32 %v7494_v45 }
 0x52f   :  { %v2945_v57 = vmul.f32 %v4808_v34, %v2944_v56  ;;  %4176 = vst [vmem:[%s7844_s6 + $0x108] sm:$0xff] %v4112_v11  ;;  %v3752_v13 = vmul.f32 %v3593_v20, %v8544_v49  ;;  %v2942_v7 = vsel %vm2941_vm3, %v4806_v35, %v2938_v16  ;;  %vm2951_vm6 = vmor %vm2949_vm5, %vm2950_vm4 }
 0x530   :  { %v3885_v41 = vmul.f32 %v6544_v0, %v3751_v30  ;;  %4589 = vmatmul.msk.f32.gmra.mxu0 %vm260_vm0, %v2942_v7 }
 0x531   :  { %v2946_v25 = vmul.f32 0.5, %v2945_v57  ;;  %v3886_v9 = vmul.f32 %v6548_v61, %v3752_v13  ;;  %4653 = vmatmul.msk.f32.gmra.mxu1 %vm260_vm0, %v2942_v7 }
 0x532   :  { %v4019_v22 = vadd.f32 %v6554_v2, %v3885_v41  ;;  %v2197_v47 = vpop.f32.mrf.mxu2  ;;  %v8546_v41 = vld [vmem:[#allocation7_spill] sm:$0xff] }
 0x533   :  { %v2947_v56 = vsub.f32 1.5, %v2946_v25  ;;  %v4020_v31 = vadd.f32 %v6558_v42, %v3886_v9  ;;  %v2400_v11 = vpop.f32.mrf.mxu3 }
 0x534   :  { %v4810_v59 = vpop.eup %4809  ;;  %v7510_v35 = vadd.f32 %v2400_v11, %v2192_v38 }
 0x535   :  { %v2954_v16 = vmul.f32 %v4810_v59, %v7494_v45  ;;  %v4113_v30 = vpack.c.bf16 %v4020_v31, %v4019_v22  ;;  %v3387_v20 = vpop.f32.mrf.mxu0  ;;  %v2948_v57 = vmul.f32 %v4808_v34, %v2947_v56  ;;  %v2195_v56 = vadd.f32 1e-05, %v2194_v29  ;;  %v8547_v29 = vld [vmem:[#allocation3_spill] sm:$0xff] }
 0x536   :  { %4811 = vrsqrt.f32 %v7510_v35  ;;  %v3753_v49 = vmul.f32 %v3387_v20, %v8545_v43  ;;  %v3596_v13 = vpop.f32.mrf.mxu1  ;;  %vm2960_vm7 = vweird.f32 %v4810_v59  ;;  %vm2969_vm11 = vweird.f32 %v7510_v35 }
 0x537   :  { %v2955_v7 = vmul.f32 %v4810_v59, %v2954_v16  ;;  %4177 = vst [vmem:[%s7844_s6 + $0x110] sm:$0xff] %v4113_v30  ;;  %v3754_v25 = vmul.f32 %v3596_v13, %v8546_v41  ;;  %v2952_v9 = vsel %vm2951_vm6, %v4808_v34, %v2948_v57  ;;  %vm2961_vm9 = vmor %vm2959_vm8, %vm2960_vm7 }
 0x538   :  { %v3887_v14 = vmul.f32 %v6544_v0, %v3753_v49  ;;  %4590 = vmatmul.msk.f32.gmra.mxu0 %vm260_vm0, %v2952_v9 }
 0x539   :  { %v2956_v38 = vmul.f32 0.5, %v2955_v7  ;;  %v3888_v22 = vmul.f32 %v6548_v61, %v3754_v25  ;;  %4654 = vmatmul.msk.f32.gmra.mxu1 %vm260_vm0, %v2952_v9 }
 0x53a   :  { %v4021_v31 = vadd.f32 %v6554_v2, %v3887_v14  ;;  %v2200_v11 = vpop.f32.mrf.mxu2 }
 0x53b   :  { %v2957_v16 = vsub.f32 1.5, %v2956_v38  ;;  %v4022_v20 = vadd.f32 %v6558_v42, %v3888_v22  ;;  %v2403_v30 = vpop.f32.mrf.mxu3 }
 0x53c   :  { %v4812_v43 = vpop.eup %4811  ;;  %v7526_v34 = vadd.f32 %v2403_v30, %v2195_v56 }
 0x53d   :  { %v2964_v57 = vmul.f32 %v4812_v43, %v7510_v35  ;;  %v4114_v49 = vpack.c.bf16 %v4022_v20, %v4021_v31  ;;  %v3390_v13 = vpop.f32.mrf.mxu0  ;;  %v2958_v7 = vmul.f32 %v4810_v59, %v2957_v16  ;;  %v2198_v31 = vadd.f32 1e-05, %v2197_v47 }
 0x53e   :  { %4813 = vrsqrt.f32 %v7526_v34  ;;  %v3755_v41 = vmul.f32 %v3390_v13, %v8547_v29  ;;  %v3599_v25 = vpop.f32.mrf.mxu1  ;;  %vm2970_vm10 = vweird.f32 %v4812_v43  ;;  %vm2979_vm14 = vweird.f32 %v7526_v34 }
 0x53f   :  { %v2965_v9 = vmul.f32 %v4812_v43, %v2964_v57  ;;  %4178 = vst [vmem:[%s7844_s6 + $0x118] sm:$0xff] %v4114_v49  ;;  %v3756_v14 = vmul.f32 %v3599_v25, %v6570_v12  ;;  %v2962_v38 = vsel %vm2961_vm9, %v4810_v59, %v2958_v7  ;;  %v8548_v25 = vld [vmem:[#allocation6_spill] sm:$0xff]  ;;  %vm2971_vm12 = vmor %vm2969_vm11, %vm2970_vm10 }
 0x540   :  { %v3889_v45 = vmul.f32 %v6544_v0, %v3755_v41  ;;  %4591 = vmatmul.msk.f32.gmra.mxu0 %vm260_vm0, %v2962_v38 }
 0x541   :  { %v2966_v22 = vmul.f32 0.5, %v2965_v9  ;;  %v3890_v56 = vmul.f32 %v6548_v61, %v3756_v14  ;;  %4655 = vmatmul.msk.f32.gmra.mxu1 %vm260_vm0, %v2962_v38 }
 0x542   :  { %v4023_v16 = vadd.f32 %v6554_v2, %v3889_v45  ;;  %v2203_v57 = vpop.f32.mrf.mxu2 }
 0x543   :  { %v2967_v20 = vsub.f32 1.5, %v2966_v22  ;;  %v4024_v30 = vadd.f32 %v6558_v42, %v3890_v56  ;;  %v2406_v49 = vpop.f32.mrf.mxu3 }
 0x544   :  { %v4814_v12 = vpop.eup %4813  ;;  %v2407_v59 = vadd.f32 %v2406_v49, %v2198_v31  ;;  %v2201_v31 = vadd.f32 1e-05, %v2200_v11 }
 0x545   :  { %v2974_v13 = vmul.f32 %v4814_v12, %v7526_v34  ;;  %v4115_v7 = vpack.c.bf16 %v4024_v30, %v4023_v16  ;;  %v3393_v29 = vpop.f32.mrf.mxu0  ;;  %v2968_v41 = vmul.f32 %v4812_v43, %v2967_v20  ;;  %vm2980_vm13 = vweird.f32 %v4814_v12 }
 0x546   :  { %4815 = vrsqrt.f32 %v2407_v59  ;;  %v3757_v47 = vmul.f32 %v3393_v29, %v8548_v25  ;;  %v3602_v9 = vpop.f32.mrf.mxu1  ;;  %vm2981_vm15 = vmor %vm2979_vm14, %vm2980_vm13  ;;  %vm2989_vm2 = vweird.f32 %v2407_v59 }
 0x547   :  { %v2975_v14 = vmul.f32 %v4814_v12, %v2974_v13  ;;  %4179 = vst [vmem:[%s7844_s6 + $0x120] sm:$0xff] %v4115_v7  ;;  %v3758_v38 = vmul.f32 %v3602_v9, %v6600_v53  ;;  %v2972_v45 = vsel %vm2971_vm12, %v4812_v43, %v2968_v41 }
 0x548   :  { %v3891_v35 = vmul.f32 %v6544_v0, %v3757_v47  ;;  %4592 = vmatmul.msk.f32.gmra.mxu0 %vm260_vm0, %v2972_v45 }
 0x549   :  { %v2976_v22 = vmul.f32 0.5, %v2975_v14  ;;  %v3892_v56 = vmul.f32 %v6548_v61, %v3758_v38  ;;  %4656 = vmatmul.msk.f32.gmra.mxu1 %vm260_vm0, %v2972_v45 }
 0x54a   :  { %v4025_v16 = vadd.f32 %v6554_v2, %v3891_v35  ;;  %v2206_v29 = vpop.f32.mrf.mxu2 }
 0x54b   :  { %v2977_v20 = vsub.f32 1.5, %v2976_v22  ;;  %v4026_v30 = vadd.f32 %v6558_v42, %v3892_v56  ;;  %v2409_v49 = vpop.f32.mrf.mxu3 }
 0x54c   :  { %v4816_v13 = vpop.eup %4815  ;;  %v7555_v53 = vadd.f32 %v2409_v49, %v2201_v31 }
 0x54d   :  { %v2984_v43 = vmul.f32 %v4816_v13, %v2407_v59  ;;  %v4116_v7 = vpack.c.bf16 %v4026_v30, %v4025_v16  ;;  %v3396_v41 = vpop.f32.mrf.mxu0  ;;  %v2978_v25 = vmul.f32 %v4814_v12, %v2977_v20  ;;  %vm2990_vm1 = vweird.f32 %v4816_v13 }
 0x54e   :  { %4817 = vrsqrt.f32 %v7555_v53  ;;  %v3759_v11 = vmul.f32 %v3396_v41, %v6562_v15  ;;  %v3605_v47 = vpop.f32.mrf.mxu1  ;;  %v2204_v15 = vadd.f32 1e-05, %v2203_v57  ;;  %vm2991_vm3 = vmor %vm2989_vm2, %vm2990_vm1  ;;  %vm2999_vm5 = vweird.f32 %v7555_v53 }
 0x54f   :  { %v2985_v9 = vmul.f32 %v4816_v13, %v2984_v43  ;;  %4180 = vst [vmem:[%s7844_s6 + $0x128] sm:$0xff] %v4116_v7  ;;  %v3760_v14 = vmul.f32 %v3605_v47, %v6631_v55  ;;  %v2982_v38 = vsel %vm2981_vm15, %v4814_v12, %v2978_v25 }
 0x550   :  { %v3893_v34 = vmul.f32 %v6544_v0, %v3759_v11  ;;  %4593 = vmatmul.msk.f32.gmra.mxu0 %vm260_vm0, %v2982_v38 }
 0x551   :  { %v2986_v45 = vmul.f32 0.5, %v2985_v9  ;;  %v3894_v35 = vmul.f32 %v6548_v61, %v3760_v14  ;;  %4657 = vmatmul.msk.f32.gmra.mxu1 %vm260_vm0, %v2982_v38 }
 0x552   :  { %v4027_v22 = vadd.f32 %v6554_v2, %v3893_v34  ;;  %v2209_v25 = vpop.f32.mrf.mxu2 }
 0x553   :  { %v2987_v56 = vsub.f32 1.5, %v2986_v45  ;;  %v4028_v31 = vadd.f32 %v6558_v42, %v3894_v35  ;;  %v2412_v16 = vpop.f32.mrf.mxu3 }
 0x554   :  { %v4818_v20 = vpop.eup %4817  ;;  %v7570_v55 = vadd.f32 %v2412_v16, %v2204_v15 }
 0x555   :  { %v2994_v12 = vmul.f32 %v4818_v20, %v7555_v53  ;;  %v4117_v30 = vpack.c.bf16 %v4028_v31, %v4027_v22  ;;  %v3399_v49 = vpop.f32.mrf.mxu0  ;;  %v2988_v43 = vmul.f32 %v4816_v13, %v2987_v56  ;;  %vm3000_vm4 = vweird.f32 %v4818_v20 }
 0x556   :  { %4819 = vrsqrt.f32 %v7570_v55  ;;  %v3761_v57 = vmul.f32 %v3399_v49, %v6592_v52  ;;  %v3608_v7 = vpop.f32.mrf.mxu1  ;;  %v2207_v52 = vadd.f32 1e-05, %v2206_v29  ;;  %vm3001_vm6 = vmor %vm2999_vm5, %vm3000_vm4  ;;  %vm3009_vm8 = vweird.f32 %v7570_v55 }
 0x557   :  { %v2995_v41 = vmul.f32 %v4818_v20, %v2994_v12  ;;  %4181 = vst [vmem:[%s7844_s6 + $0x130] sm:$0xff] %v4117_v30  ;;  %v3762_v11 = vmul.f32 %v3608_v7, %v6662_v18  ;;  %v2992_v59 = vsel %vm2991_vm3, %v4816_v13, %v2988_v43 }
 0x558   :  { %v3895_v47 = vmul.f32 %v6544_v0, %v3761_v57  ;;  %4594 = vmatmul.msk.f32.gmra.mxu0 %vm260_vm0, %v2992_v59 }
 0x559   :  { %v2996_v9 = vmul.f32 0.5, %v2995_v41  ;;  %v3896_v14 = vmul.f32 %v6548_v61, %v3762_v11  ;;  %4658 = vmatmul.msk.f32.gmra.mxu1 %vm260_vm0, %v2992_v59 }
 0x55a   :  { %v4029_v38 = vadd.f32 %v6554_v2, %v3895_v47  ;;  %v2212_v57 = vpop.f32.mrf.mxu2 }
 0x55b   :  { %v2997_v34 = vsub.f32 1.5, %v2996_v9  ;;  %v4030_v45 = vadd.f32 %v6558_v42, %v3896_v14  ;;  %v2415_v35 = vpop.f32.mrf.mxu3 }
 0x55c   :  { %v4820_v15 = vpop.eup %4819  ;;  %v7585_v18 = vadd.f32 %v2415_v35, %v2207_v52 }
 0x55d   :  { %v3004_v13 = vmul.f32 %v4820_v15, %v7570_v55  ;;  %v4118_v22 = vpack.c.bf16 %v4030_v45, %v4029_v38  ;;  %v3402_v56 = vpop.f32.mrf.mxu0  ;;  %v2998_v31 = vmul.f32 %v4818_v20, %v2997_v34  ;;  %vm3010_vm7 = vweird.f32 %v4820_v15 }
 0x55e   :  { %4821 = vrsqrt.f32 %v7585_v18  ;;  %v3763_v29 = vmul.f32 %v3402_v56, %v6623_v26  ;;  %v3611_v16 = vpop.f32.mrf.mxu1  ;;  %v2210_v26 = vadd.f32 1e-05, %v2209_v25  ;;  %vm3011_vm9 = vmor %vm3009_vm8, %vm3010_vm7  ;;  %vm3019_vm11 = vweird.f32 %v7585_v18 }
 0x55f   :  { %v3005_v12 = vmul.f32 %v4820_v15, %v3004_v13  ;;  %4182 = vst [vmem:[%s7844_s6 + $0x138] sm:$0xff] %v4118_v22  ;;  %v3764_v30 = vmul.f32 %v3611_v16, %v6693_v39  ;;  %v3002_v49 = vsel %vm3001_vm6, %v4818_v20, %v2998_v31 }
 0x560   :  { %v3897_v53 = vmul.f32 %v6544_v0, %v3763_v29  ;;  %4595 = vmatmul.msk.f32.gmra.mxu0 %vm260_vm0, %v3002_v49 }
 0x561   :  { %v3006_v43 = vmul.f32 0.5, %v3005_v12  ;;  %v3898_v7 = vmul.f32 %v6548_v61, %v3764_v30  ;;  %4659 = vmatmul.msk.f32.gmra.mxu1 %vm260_vm0, %v3002_v49 }
 0x562   :  { %v4031_v41 = vadd.f32 %v6554_v2, %v3897_v53  ;;  %v2215_v16 = vpop.f32.mrf.mxu2 }
 0x563   :  { %v3007_v11 = vsub.f32 1.5, %v3006_v43  ;;  %v4032_v59 = vadd.f32 %v6558_v42, %v3898_v7  ;;  %v2418_v47 = vpop.f32.mrf.mxu3 }
 0x564   :  { %v4822_v39 = vpop.eup %4821  ;;  %v7601_v20 = vadd.f32 %v2418_v47, %v2210_v26 }
 0x565   :  { %v3014_v9 = vmul.f32 %v4822_v39, %v7585_v18  ;;  %v4119_v14 = vpack.c.bf16 %v4032_v59, %v4031_v41  ;;  %v3405_v52 = vpop.f32.mrf.mxu0  ;;  %v3008_v38 = vmul.f32 %v4820_v15, %v3007_v11  ;;  %vm3020_vm10 = vweird.f32 %v4822_v39 }
 0x566   :  { %4823 = vrsqrt.f32 %v7601_v20  ;;  %v3765_v25 = vmul.f32 %v3405_v52, %v6654_v58  ;;  %v3614_v34 = vpop.f32.mrf.mxu1  ;;  %v2213_v58 = vadd.f32 1e-05, %v2212_v57  ;;  %vm3021_vm12 = vmor %vm3019_vm11, %vm3020_vm10  ;;  %vm3029_vm14 = vweird.f32 %v7601_v20 }
 0x567   :  { %v3015_v45 = vmul.f32 %v4822_v39, %v3014_v9  ;;  %4183 = vst [vmem:[%s7844_s6 + $0x140] sm:$0xff] %v4119_v14  ;;  %v3766_v35 = vmul.f32 %v3614_v34, %v6724_v48  ;;  %v3012_v13 = vsel %vm3011_vm9, %v4820_v15, %v3008_v38 }
 0x568   :  { %v3899_v55 = vmul.f32 %v6544_v0, %v3765_v25  ;;  %4596 = vmatmul.msk.f32.gmra.mxu0 %vm260_vm0, %v3012_v13 }
 0x569   :  { %v3016_v22 = vmul.f32 0.5, %v3015_v45  ;;  %v3900_v56 = vmul.f32 %v6548_v61, %v3766_v35  ;;  %4660 = vmatmul.msk.f32.gmra.mxu1 %vm260_vm0, %v3012_v13 }
 0x56a   :  { %v4033_v31 = vadd.f32 %v6554_v2, %v3899_v55 }
 0x56b   :  { %v3017_v29 = vsub.f32 1.5, %v3016_v22  ;;  %v4034_v12 = vadd.f32 %v6558_v42, %v3900_v56  ;;  %v2421_v30 = vpop.f32.mrf.mxu3 }
 0x56c   :  { %v4824_v48 = vpop.eup %4823  ;;  %v2422_v15 = vadd.f32 %v2421_v30, %v2213_v58 }
 0x56d   :  { %v3024_v49 = vmul.f32 %v4824_v48, %v7601_v20  ;;  %v4120_v53 = vpack.c.bf16 %v4034_v12, %v4033_v31  ;;  %v3408_v43 = vpop.f32.mrf.mxu0  ;;  %v3018_v7 = vmul.f32 %v4822_v39, %v3017_v29  ;;  %vm3030_vm13 = vweird.f32 %v4824_v48 }
 0x56e   :  { %4825 = vrsqrt.f32 %v2422_v15  ;;  %v3767_v57 = vmul.f32 %v3408_v43, %v6685_v24  ;;  %v3617_v26 = vpop.f32.mrf.mxu1  ;;  %v2216_v24 = vadd.f32 1e-05, %v2215_v16  ;;  %vm3031_vm15 = vmor %vm3029_vm14, %vm3030_vm13  ;;  %vm3039_vm2 = vweird.f32 %v2422_v15 }
 0x56f   :  { %v3025_v41 = vmul.f32 %v4824_v48, %v3024_v49  ;;  %4184 = vst [vmem:[%s7844_s6 + $0x148] sm:$0xff] %v4120_v53  ;;  %v3768_v11 = vmul.f32 %v3617_v26, %v6755_v23  ;;  %v3022_v59 = vsel %vm3021_vm12, %v4822_v39, %v3018_v7  ;;  %v2218_v39 = vpop.f32.mrf.mxu2 }
 0x570   :  { %v3901_v18 = vmul.f32 %v6544_v0, %v3767_v57  ;;  %4597 = vmatmul.msk.f32.gmra.mxu0 %vm260_vm0, %v3022_v59 }
 0x571   :  { %v3026_v47 = vmul.f32 0.5, %v3025_v41  ;;  %v3902_v9 = vmul.f32 %v6548_v61, %v3768_v11  ;;  %4661 = vmatmul.msk.f32.gmra.mxu1 %vm260_vm0, %v3022_v59 }
 0x572   :  { %v4035_v14 = vadd.f32 %v6554_v2, %v3901_v18 }
 0x573   :  { %v3027_v52 = vsub.f32 1.5, %v3026_v47  ;;  %v4036_v38 = vadd.f32 %v6558_v42, %v3902_v9  ;;  %v2424_v25 = vpop.f32.mrf.mxu3 }
 0x574   :  { %v4826_v34 = vpop.eup %4825  ;;  %v7630_v23 = vadd.f32 %v2424_v25, %v2216_v24 }
 0x575   :  { %v3034_v45 = vmul.f32 %v4826_v34, %v2422_v15  ;;  %v4121_v35 = vpack.c.bf16 %v4036_v38, %v4035_v14  ;;  %v3411_v13 = vpop.f32.mrf.mxu0  ;;  %v3028_v55 = vmul.f32 %v4824_v48, %v3027_v52  ;;  %vm3040_vm1 = vweird.f32 %v4826_v34 }
 0x576   :  { %4827 = vrsqrt.f32 %v7630_v23  ;;  %v3769_v22 = vmul.f32 %v3411_v13, %v6716_v17  ;;  %v3620_v56 = vpop.f32.mrf.mxu1  ;;  %v2219_v17 = vadd.f32 1e-05, %v2218_v39  ;;  %vm3041_vm3 = vmor %vm3039_vm2, %vm3040_vm1  ;;  %vm3049_vm5 = vweird.f32 %v7630_v23 }
 0x577   :  { %v3035_v58 = vmul.f32 %v4826_v34, %v3034_v45  ;;  %4185 = vst [vmem:[%s7844_s6 + $0x150] sm:$0xff] %v4121_v35  ;;  %v3770_v31 = vmul.f32 %v3620_v56, %v6786_v37  ;;  %v3032_v29 = vsel %vm3031_vm15, %v4824_v48, %v3028_v55  ;;  %v2221_v18 = vpop.f32.mrf.mxu2 }
 0x578   :  { %v3903_v20 = vmul.f32 %v6544_v0, %v3769_v22  ;;  %4598 = vmatmul.msk.f32.gmra.mxu0 %vm260_vm0, %v3032_v29 }
 0x579   :  { %v3036_v16 = vmul.f32 0.5, %v3035_v58  ;;  %v3904_v12 = vmul.f32 %v6548_v61, %v3770_v31  ;;  %4662 = vmatmul.msk.f32.gmra.mxu1 %vm260_vm0, %v3032_v29 }
 0x57a   :  { %v4037_v30 = vadd.f32 %v6554_v2, %v3903_v20 }
 0x57b   :  { %v3037_v49 = vsub.f32 1.5, %v3036_v16  ;;  %v4038_v53 = vadd.f32 %v6558_v42, %v3904_v12  ;;  %v2427_v43 = vpop.f32.mrf.mxu3 }
 0x57c   :  { %v4828_v7 = vpop.eup %4827  ;;  %v2428_v37 = vadd.f32 %v2427_v43, %v2219_v17 }
 0x57d   :  { %v3044_v48 = vmul.f32 %v4828_v7, %v7630_v23  ;;  %v4122_v57 = vpack.c.bf16 %v4038_v53, %v4037_v30  ;;  %v3414_v26 = vpop.f32.mrf.mxu0  ;;  %v3038_v41 = vmul.f32 %v4826_v34, %v3037_v49  ;;  %vm3050_vm4 = vweird.f32 %v4828_v7 }
 0x57e   :  { %4829 = vrsqrt.f32 %v2428_v37  ;;  %v3771_v11 = vmul.f32 %v3414_v26, %v6747_v8  ;;  %v3623_v59 = vpop.f32.mrf.mxu1  ;;  %v2222_v8 = vadd.f32 1e-05, %v2221_v18  ;;  %vm3051_vm6 = vmor %vm3049_vm5, %vm3050_vm4  ;;  %vm3059_vm8 = vweird.f32 %v2428_v37 }
 0x57f   :  { %v3045_v47 = vmul.f32 %v4828_v7, %v3044_v48  ;;  %4186 = vst [vmem:[%s7844_s6 + $0x158] sm:$0xff] %v4122_v57  ;;  %v3772_v9 = vmul.f32 %v3623_v59, %v6817_v28  ;;  %v3042_v24 = vsel %vm3041_vm3, %v4826_v34, %v3038_v41 }
 0x580   :  { %v3905_v15 = vmul.f32 %v6544_v0, %v3771_v11  ;;  %4599 = vmatmul.msk.f32.gmra.mxu0 %vm260_vm0, %v3042_v24 }
 0x581   :  { %v3046_v14 = vmul.f32 0.5, %v3045_v47  ;;  %v3906_v52 = vmul.f32 %v6548_v61, %v3772_v9  ;;  %4663 = vmatmul.msk.f32.gmra.mxu1 %vm260_vm0, %v3042_v24 }
 0x582   :  { %v4039_v38 = vadd.f32 %v6554_v2, %v3905_v15 }
 0x583   :  { %v3047_v25 = vsub.f32 1.5, %v3046_v14  ;;  %v4040_v39 = vadd.f32 %v6558_v42, %v3906_v52  ;;  %v2430_v45 = vpop.f32.mrf.mxu3 }
 0x584   :  { %v4830_v35 = vpop.eup %4829  ;;  %v2431_v28 = vadd.f32 %v2430_v45, %v2222_v8 }
 0x585   :  { %v3054_v34 = vmul.f32 %v4830_v35, %v2428_v37  ;;  %v4123_v13 = vpack.c.bf16 %v4040_v39, %v4039_v38  ;;  %v3417_v55 = vpop.f32.mrf.mxu0  ;;  %v3048_v22 = vmul.f32 %v4828_v7, %v3047_v25  ;;  %vm3060_vm7 = vweird.f32 %v4830_v35 }
 0x586   :  { %4831 = vrsqrt.f32 %v2431_v28  ;;  %v3773_v56 = vmul.f32 %v3417_v55, %v6778_v50  ;;  %v3626_v58 = vpop.f32.mrf.mxu1  ;;  %vm3061_vm9 = vmor %vm3059_vm8, %vm3060_vm7  ;;  %vm3069_vm11 = vweird.f32 %v2431_v28  ;;  %v8550_v55 = vld [vmem:[#allocation9_spill] sm:$0xff] }
 0x587   :  { %v3055_v31 = vmul.f32 %v4830_v35, %v3054_v34  ;;  %4187 = vst [vmem:[%s7844_s6 + $0x160] sm:$0xff] %v4123_v13  ;;  %v3774_v29 = vmul.f32 %v3626_v58, %v6848_v27  ;;  %v3052_v20 = vsel %vm3051_vm6, %v4828_v7, %v3048_v22 }
 0x588   :  { %v3907_v16 = vmul.f32 %v6544_v0, %v3773_v56  ;;  %4600 = vmatmul.msk.f32.gmra.mxu0 %vm260_vm0, %v3052_v20 }
 0x589   :  { %v3056_v23 = vmul.f32 0.5, %v3055_v31  ;;  %v3908_v12 = vmul.f32 %v6548_v61, %v3774_v29  ;;  %4664 = vmatmul.msk.f32.gmra.mxu1 %vm260_vm0, %v3052_v20 }
 0x58a   :  { %v4041_v50 = vadd.f32 %v6554_v2, %v3907_v16 }
 0x58b   :  { %v3057_v17 = vsub.f32 1.5, %v3056_v23  ;;  %v4042_v30 = vadd.f32 %v6558_v42, %v3908_v12  ;;  %v8551_v12 = vld [vmem:[#allocation22_spill] sm:$0xff] }
 0x58c   :  { %v4832_v49 = vpop.eup %4831 }
 0x58d   :  { %v3058_v53 = vmul.f32 %v4830_v35, %v3057_v17  ;;  %v3064_v27 = vmul.f32 %v4832_v49, %v2431_v28  ;;  %v4124_v43 = vpack.c.bf16 %v4042_v30, %v4041_v50  ;;  %v3420_v7 = vpop.f32.mrf.mxu0  ;;  %vm3070_vm10 = vweird.f32 %v4832_v49 }
 0x58e   :  { %v3775_v48 = vmul.f32 %v3420_v7, %v6809_v63  ;;  %v3629_v57 = vpop.f32.mrf.mxu1  ;;  %vm3071_vm12 = vmor %vm3069_vm11, %vm3070_vm10 }
 0x58f   :  { %v3062_v26 = vsel %vm3061_vm9, %v4830_v35, %v3058_v53  ;;  %v3065_v41 = vmul.f32 %v4832_v49, %v3064_v27  ;;  %4188 = vst [vmem:[%s7844_s6 + $0x168] sm:$0xff] %v4124_v43  ;;  %v3776_v11 = vmul.f32 %v3629_v57, %v6879_v1  ;;  %v8549_v1 = vld [vmem:[#allocation8_spill] sm:$0xff] }
 0x590   :  { %v3909_v59 = vmul.f32 %v6544_v0, %v3775_v48  ;;  %4601 = vmatmul.msk.f32.vlgmr.msrb.gmra.mxu2 %vm260_vm0, %v3062_v26  ;;  %v8552_v48 = vld [vmem:[#allocation25_spill] sm:$0xff] }
 0x591   :  { %v3066_v37 = vmul.f32 0.5, %v3065_v41  ;;  %v3910_v18 = vmul.f32 %v6548_v61, %v3776_v11  ;;  %4665 = vmatmul.msk.f32.gmra.mxu1 %vm260_vm0, %v3062_v26 }
 0x592   :  { %v4043_v63 = vadd.f32 %v6554_v2, %v3909_v59 }
 0x593   :  { %v3067_v47 = vsub.f32 1.5, %v3066_v37  ;;  %v4044_v9 = vadd.f32 %v6558_v42, %v3910_v18 }
 0x595   :  { %v4125_v24 = vpack.c.bf16 %v4044_v9, %v4043_v63  ;;  %v3423_v15 = vpop.f32.mrf.mxu0  ;;  %v3068_v14 = vmul.f32 %v4832_v49, %v3067_v47 }
 0x596   :  { %v3777_v52 = vmul.f32 %v3423_v15, %v8549_v1  ;;  %v3632_v8 = vpop.f32.mrf.mxu1 }
 0x597   :  { %4189 = vst [vmem:[%s7844_s6 + $0x170] sm:$0xff] %v4125_v24  ;;  %v3778_v38 = vmul.f32 %v3632_v8, %v6910_v33  ;;  %v3072_v25 = vsel %vm3071_vm12, %v4832_v49, %v3068_v14 }
 0x598   :  { %v3911_v39 = vmul.f32 %v6544_v0, %v3777_v52  ;;  %4602 = vmatmul.msk.f32.gmra.mxu2 %vm260_vm0, %v3072_v25 }
 0x599   :  { %v3912_v45 = vmul.f32 %v6548_v61, %v3778_v38  ;;  %4666 = vmatmul.msk.f32.gmra.mxu1 %vm260_vm0, %v3072_v25  ;;  %v8553_v38 = vld [vmem:[#allocation10_spill] sm:$0xff] }
 0x59a   :  { %v4045_v35 = vadd.f32 %v6554_v2, %v3911_v39  ;;  %v8554_v39 = vld [vmem:[#allocation29_spill] sm:$0xff] }
 0x59b   :  { %v4046_v28 = vadd.f32 %v6558_v42, %v3912_v45 }
 0x59d   :  { %v4126_v34 = vpack.c.bf16 %v4046_v28, %v4045_v35  ;;  %v3426_v13 = vpop.f32.mrf.mxu0 }
 0x59e   :  { %v3779_v22 = vmul.f32 %v3426_v13, %v8550_v55  ;;  %v3635_v56 = vpop.f32.mrf.mxu1 }
 0x59f   :  { %4190 = vst [vmem:[%s7844_s6 + $0x178] sm:$0xff] %v4126_v34  ;;  %v3780_v33 = vmul.f32 %v3635_v56, %v6941_v19 }
 0x5a0   :  { %v3913_v58 = vmul.f32 %v6544_v0, %v3779_v22  ;;  %v8555_v22 = vld [vmem:[#allocation11_spill] sm:$0xff] }
 0x5a1   :  { %v3914_v31 = vmul.f32 %v6548_v61, %v3780_v33 }
 0x5a2   :  { %v4047_v29 = vadd.f32 %v6554_v2, %v3913_v58 }
 0x5a3   :  { %v4048_v20 = vadd.f32 %v6558_v42, %v3914_v31 }
 0x5a5   :  { %v4127_v16 = vpack.c.bf16 %v4048_v20, %v4047_v29  ;;  %v3429_v23 = vpop.f32.mrf.mxu0 }
 0x5a6   :  { %v3781_v50 = vmul.f32 %v3429_v23, %v8551_v12  ;;  %v3638_v17 = vpop.f32.mrf.mxu1 }
 0x5a7   :  { %4191 = vst [vmem:[%s7844_s6 + $0x180] sm:$0xff] %v4127_v16  ;;  %v3782_v30 = vmul.f32 %v3638_v17, %v6972_v46 }
 0x5a8   :  { %v3915_v19 = vmul.f32 %v6544_v0, %v3781_v50  ;;  %v8556_v50 = vld [vmem:[#allocation26_spill] sm:$0xff] }
 0x5a9   :  { %v3916_v49 = vmul.f32 %v6548_v61, %v3782_v30 }
 0x5aa   :  { %v4049_v53 = vadd.f32 %v6554_v2, %v3915_v19 }
 0x5ab   :  { %v4050_v27 = vadd.f32 %v6558_v42, %v3916_v49 }
 0x5ad   :  { %v4128_v43 = vpack.c.bf16 %v4050_v27, %v4049_v53  ;;  %v3432_v7 = vpop.f32.mrf.mxu0 }
 0x5ae   :  { %v3783_v57 = vmul.f32 %v3432_v7, %v8552_v48  ;;  %v3641_v26 = vpop.f32.mrf.mxu1  ;;  %v8557_v48 = vld [vmem:[#allocation12_spill] sm:$0xff] }
 0x5af   :  { %4192 = vst [vmem:[%s7844_s6 + $0x188] sm:$0xff] %v4128_v43  ;;  %v3784_v41 = vmul.f32 %v3641_v26, %v7003_v62 }
 0x5b0   :  { %v3917_v46 = vmul.f32 %v6544_v0, %v3783_v57 }
 0x5b1   :  { %v3918_v11 = vmul.f32 %v6548_v61, %v3784_v41 }
 0x5b2   :  { %v4051_v59 = vadd.f32 %v6554_v2, %v3917_v46 }
 0x5b3   :  { %v4052_v37 = vadd.f32 %v6558_v42, %v3918_v11 }
 0x5b5   :  { %v4129_v18 = vpack.c.bf16 %v4052_v37, %v4051_v59  ;;  %v3435_v63 = vpop.f32.mrf.mxu0 }
 0x5b6   :  { %v3785_v47 = vmul.f32 %v3435_v63, %v6964_v51  ;;  %v3644_v9 = vpop.f32.mrf.mxu1  ;;  %v8558_v63 = vld [vmem:[#allocation13_spill] sm:$0xff] }
 0x5b7   :  { %4193 = vst [vmem:[%s7844_s6 + $0x190] sm:$0xff] %v4129_v18  ;;  %v3786_v24 = vmul.f32 %v3644_v9, %v7034_v60 }
 0x5b8   :  { %v3919_v62 = vmul.f32 %v6544_v0, %v3785_v47 }
 0x5b9   :  { %v3920_v15 = vmul.f32 %v6548_v61, %v3786_v24 }
 0x5ba   :  { %v4053_v14 = vadd.f32 %v6554_v2, %v3919_v62 }
 0x5bb   :  { %v4054_v1 = vadd.f32 %v6558_v42, %v3920_v15 }
 0x5bd   :  { %v4130_v52 = vpack.c.bf16 %v4054_v1, %v4053_v14  ;;  %v3438_v8 = vpop.f32.mrf.mxu0 }
 0x5be   :  { %v3787_v25 = vmul.f32 %v3438_v8, %v8553_v38  ;;  %v3647_v51 = vpop.f32.mrf.mxu1  ;;  %v8559_v8 = vld [vmem:[#allocation30_spill] sm:$0xff] }
 0x5bf   :  { %4194 = vst [vmem:[%s7844_s6 + $0x198] sm:$0xff] %v4130_v52  ;;  %v3788_v45 = vmul.f32 %v3647_v51, %v8554_v39 }
 0x5c0   :  { %v3921_v60 = vmul.f32 %v6544_v0, %v3787_v25 }
 0x5c1   :  { %v3922_v35 = vmul.f32 %v6548_v61, %v3788_v45 }
 0x5c2   :  { %v4055_v28 = vadd.f32 %v6554_v2, %v3921_v60 }
 0x5c3   :  { %v4056_v34 = vadd.f32 %v6558_v42, %v3922_v35 }
 0x5c5   :  { %v4131_v13 = vpack.c.bf16 %v4056_v34, %v4055_v28  ;;  %v3441_v55 = vpop.f32.mrf.mxu0  ;;  %v8560_v34 = vld [vmem:[#allocation33_spill] sm:$0xff] }
 0x5c6   :  { %v3789_v56 = vmul.f32 %v3441_v55, %v8555_v22  ;;  %v3650_v33 = vpop.f32.mrf.mxu1 }
 0x5c7   :  { %4195 = vst [vmem:[%s7844_s6 + $0x1a0] sm:$0xff] %v4131_v13  ;;  %v3790_v58 = vmul.f32 %v3650_v33, %v7096_v36 }
 0x5c8   :  { %v3923_v31 = vmul.f32 %v6544_v0, %v3789_v56 }
 0x5c9   :  { %v3924_v29 = vmul.f32 %v6548_v61, %v3790_v58 }
 0x5ca   :  { %v4057_v20 = vadd.f32 %v6554_v2, %v3923_v31 }
 0x5cb   :  { %v4058_v16 = vadd.f32 %v6558_v42, %v3924_v29 }
 0x5cd   :  { %v4132_v23 = vpack.c.bf16 %v4058_v16, %v4057_v20  ;;  %v3444_v12 = vpop.f32.mrf.mxu0  ;;  %v8561_v20 = vld [vmem:[#allocation14_spill] sm:$0xff] }
 0x5ce   :  { %v3791_v17 = vmul.f32 %v3444_v12, %v8556_v50  ;;  %v3653_v30 = vpop.f32.mrf.mxu1 }
 0x5cf   :  { %4196 = vst [vmem:[%s7844_s6 + $0x1a8] sm:$0xff] %v4132_v23  ;;  %v3792_v19 = vmul.f32 %v3653_v30, %v7127_v4 }
 0x5d0   :  { %v3925_v36 = vmul.f32 %v6544_v0, %v3791_v17 }
 0x5d1   :  { %v3926_v49 = vmul.f32 %v6548_v61, %v3792_v19 }
 0x5d2   :  { %v4059_v53 = vadd.f32 %v6554_v2, %v3925_v36 }
 0x5d3   :  { %v4060_v27 = vadd.f32 %v6558_v42, %v3926_v49  ;;  %v8562_v49 = vld [vmem:[#allocation15_spill] sm:$0xff] }
 0x5d5   :  { %v4133_v43 = vpack.c.bf16 %v4060_v27, %v4059_v53  ;;  %v3447_v7 = vpop.f32.mrf.mxu0 }
 0x5d6   :  { %v3793_v57 = vmul.f32 %v3447_v7, %v8557_v48  ;;  %v3656_v26 = vpop.f32.mrf.mxu1 }
 0x5d7   :  { %4197 = vst [vmem:[%s7844_s6 + $0x1b0] sm:$0xff] %v4133_v43  ;;  %v3794_v41 = vmul.f32 %v3656_v26, %v7158_v6 }
 0x5d8   :  { %v3927_v4 = vmul.f32 %v6544_v0, %v3793_v57 }
 0x5d9   :  { %v3928_v46 = vmul.f32 %v6548_v61, %v3794_v41 }
 0x5da   :  { %v4061_v11 = vadd.f32 %v6554_v2, %v3927_v4 }
 0x5db   :  { %v4062_v59 = vadd.f32 %v6558_v42, %v3928_v46 }
 0x5dd   :  { %v4134_v37 = vpack.c.bf16 %v4062_v59, %v4061_v11  ;;  %v3450_v18 = vpop.f32.mrf.mxu0 }
 0x5de   :  { %v3795_v47 = vmul.f32 %v3450_v18, %v8558_v63  ;;  %v3659_v9 = vpop.f32.mrf.mxu1 }
 0x5df   :  { %4198 = vst [vmem:[%s7844_s6 + $0x1b8] sm:$0xff] %v4134_v37  ;;  %v3796_v24 = vmul.f32 %v3659_v9, %v7189_v5 }
 0x5e0   :  { %v3929_v6 = vmul.f32 %v6544_v0, %v3795_v47 }
 0x5e1   :  { %v3930_v62 = vmul.f32 %v6548_v61, %v3796_v24 }
 0x5e2   :  { %v4063_v15 = vadd.f32 %v6554_v2, %v3929_v6 }
 0x5e3   :  { %v4064_v14 = vadd.f32 %v6558_v42, %v3930_v62 }
 0x5e5   :  { %v4135_v1 = vpack.c.bf16 %v4064_v14, %v4063_v15  ;;  %v3453_v52 = vpop.f32.mrf.mxu0 }
 0x5e6   :  { %v3797_v38 = vmul.f32 %v3453_v52, %v8559_v8  ;;  %v3662_v25 = vpop.f32.mrf.mxu1  ;;  %v8564_v52 = vld [vmem:[#allocation16_spill] sm:$0xff] }
 0x5e7   :  { %4199 = vst [vmem:[%s7844_s6 + $0x1c0] sm:$0xff] %v4135_v1  ;;  %v3798_v51 = vmul.f32 %v3662_v25, %v7220_v3 }
 0x5e8   :  { %v3931_v5 = vmul.f32 %v6544_v0, %v3797_v38 }
 0x5e9   :  { %v3932_v39 = vmul.f32 %v6548_v61, %v3798_v51  ;;  %v8565_v51 = vld [vmem:[#allocation37_spill] sm:$0xff] }
 0x5ea   :  { %v4065_v45 = vadd.f32 %v6554_v2, %v3931_v5 }
 0x5eb   :  { %v4066_v60 = vadd.f32 %v6558_v42, %v3932_v39 }
 0x5ed   :  { %v4136_v35 = vpack.c.bf16 %v4066_v60, %v4065_v45  ;;  %v3456_v28 = vpop.f32.mrf.mxu0 }
 0x5ee   :  { %v3799_v13 = vmul.f32 %v3456_v28, %v8560_v34  ;;  %v3665_v55 = vpop.f32.mrf.mxu1 }
 0x5ef   :  { %4200 = vst [vmem:[%s7844_s6 + $0x1c8] sm:$0xff] %v4136_v35  ;;  %v3800_v22 = vmul.f32 %v3665_v55, %v7251_v21 }
 0x5f0   :  { %v3933_v3 = vmul.f32 %v6544_v0, %v3799_v13 }
 0x5f1   :  { %v3934_v56 = vmul.f32 %v6548_v61, %v3800_v22 }
 0x5f2   :  { %v4067_v33 = vadd.f32 %v6554_v2, %v3933_v3 }
 0x5f3   :  { %v4068_v58 = vadd.f32 %v6558_v42, %v3934_v56 }
 0x5f5   :  { %v4137_v31 = vpack.c.bf16 %v4068_v58, %v4067_v33  ;;  %v3459_v29 = vpop.f32.mrf.mxu0 }
 0x5f6   :  { %v3801_v16 = vmul.f32 %v3459_v29, %v8561_v20  ;;  %v3668_v23 = vpop.f32.mrf.mxu1 }
 0x5f7   :  { %4201 = vst [vmem:[%s7844_s6 + $0x1d0] sm:$0xff] %v4137_v31  ;;  %v3802_v12 = vmul.f32 %v3668_v23, %v7282_v54 }
 0x5f8   :  { %v3935_v21 = vmul.f32 %v6544_v0, %v3801_v16 }
 0x5f9   :  { %v3936_v50 = vmul.f32 %v6548_v61, %v3802_v12 }
 0x5fa   :  { %v4069_v17 = vadd.f32 %v6554_v2, %v3935_v21 }
 0x5fb   :  { %v4070_v30 = vadd.f32 %v6558_v42, %v3936_v50 }
 0x5fd   :  { %v4138_v19 = vpack.c.bf16 %v4070_v30, %v4069_v17  ;;  %v3462_v36 = vpop.f32.mrf.mxu0 }
 0x5fe   :  { %v3803_v53 = vmul.f32 %v3462_v36, %v8562_v49  ;;  %v3671_v27 = vpop.f32.mrf.mxu1 }
 0x5ff   :  { %4202 = vst [vmem:[%s7844_s6 + $0x1d8] sm:$0xff] %v4138_v19  ;;  %v3804_v43 = vmul.f32 %v3671_v27, %v7313_v32 }
 0x600   :  { %v3937_v54 = vmul.f32 %v6544_v0, %v3803_v53 }
 0x601   :  { %v3938_v7 = vmul.f32 %v6548_v61, %v3804_v43 }
 0x602   :  { %v4071_v48 = vadd.f32 %v6554_v2, %v3937_v54 }
 0x603   :  { %v4072_v57 = vadd.f32 %v6558_v42, %v3938_v7 }
 0x605   :  { %v4139_v26 = vpack.c.bf16 %v4072_v57, %v4071_v48  ;;  %v3465_v41 = vpop.f32.mrf.mxu0 }
 0x606   :  { %v3805_v4 = vmul.f32 %v3465_v41, %v7274_v10  ;;  %v3674_v46 = vpop.f32.mrf.mxu1 }
 0x607   :  { %4203 = vst [vmem:[%s7844_s6 + $0x1e0] sm:$0xff] %v4139_v26  ;;  %v3806_v11 = vmul.f32 %v3674_v46, %v7344_v40  ;;  %v8563_v40 = vld [vmem:[#allocation34_spill] sm:$0xff] }
 0x608   :  { %v3939_v32 = vmul.f32 %v6544_v0, %v3805_v4 }
 0x609   :  { %v3940_v59 = vmul.f32 %v6548_v61, %v3806_v11 }
 0x60a   :  { %v4073_v37 = vadd.f32 %v6554_v2, %v3939_v32 }
 0x60b   :  { %v4074_v18 = vadd.f32 %v6558_v42, %v3940_v59 }
 0x60d   :  { %v4140_v63 = vpack.c.bf16 %v4074_v18, %v4073_v37 }
 0x60e   :  { %v3677_v47 = vpop.f32.mrf.mxu1 }
 0x60f   :  { %4204 = vst [vmem:[%s7844_s6 + $0x1e8] sm:$0xff] %v4140_v63  ;;  %v3808_v10 = vmul.f32 %v3677_v47, %v7369_v44 }
 0x611   :  { %v3942_v24 = vmul.f32 %v6548_v61, %v3808_v10 }
 0x613   :  { %v3468_v9 = vpop.f32.mrf.mxu2  ;;  %v4076_v14 = vadd.f32 %v6558_v42, %v3942_v24 }
 0x614   :  { %v3807_v6 = vmul.f32 %v3468_v9, %v8563_v40 }
 0x616   :  { %v3941_v62 = vmul.f32 %v6544_v0, %v3807_v6  ;;  %v3680_v15 = vpop.f32.mrf.mxu1 }
 0x617   :  { %v3810_v8 = vmul.f32 %v3680_v15, %v8564_v52 }
 0x618   :  { %v4075_v1 = vadd.f32 %v6554_v2, %v3941_v62 }
 0x619   :  { %v3944_v44 = vmul.f32 %v6548_v61, %v3810_v8 }
 0x61a   :  { %v4141_v38 = vpack.c.bf16 %v4076_v14, %v4075_v1 }
 0x61b   :  { %v3471_v25 = vpop.f32.mrf.mxu2  ;;  %v4078_v45 = vadd.f32 %v6558_v42, %v3944_v44 }
 0x61c   :  { %4205 = vst [vmem:[%s7844_s6 + $0x1f0] sm:$0xff] %v4141_v38  ;;  %v3809_v5 = vmul.f32 %v3471_v25, %v8565_v51 }
 0x61e   :  { %v3943_v39 = vmul.f32 %v6544_v0, %v3809_v5 }
 0x620   :  { %v4077_v60 = vadd.f32 %v6554_v2, %v3943_v39 }
 0x622   :  { %v4142_v35 = vpack.c.bf16 %v4078_v45, %v4077_v60 }
 0x624   :  { %4206 = vst [vmem:[%s7844_s6 + $0x1f8] sm:$0xff] %v4142_v35 }

</bundles_post_ra>
